<compile_context>
chip_gen: v5e
topology: v5e:2x2
jax: 0.10.0
libtpu: 0.0.40
codegen_flags: <defaults>
</compile_context>

<pallas_src>
import functools

import jax
import jax.numpy as jnp
from jax import lax
from jax.experimental import pallas as pl
from jax.experimental.pallas import tpu as pltpu


_NEG_SLOPE = 0.01  # F.leaky_relu default


def _leaky_relu(x):
    return jnp.where(x > 0, x, _NEG_SLOPE * x)


def local_estimator_kernel(x_ref, w1_ref, b1_ref, w2_ref, b2_ref,
                           w3_ref, b3_ref, o_ref, *, compute_dtype):
    """Fused 3-layer MLP on one row tile; writes a lane-dense (1, tm) row."""
    x = x_ref[...]                                                   # (tm, D)
    w1 = w1_ref[...]
    if compute_dtype is not None:
        # Free VPU cast of VMEM-resident operands -> cheaper bf16 MXU passes.
        x = x.astype(compute_dtype)
        w1 = w1.astype(compute_dtype)
    # Layer 1 (MXU; f32 accumulation regardless of operand dtype).
    h = jnp.dot(x, w1, preferred_element_type=jnp.float32)
    h = _leaky_relu(h + b1_ref[...])                                 # (tm, 64) f32
    # Layer 2 (MXU; f32 operands -> elementwise work stays f32, v5e-safe).
    h = jnp.dot(h, w2_ref[...], preferred_element_type=jnp.float32)
    h = _leaky_relu(h + b2_ref[...])                                 # (tm, 32) f32
    # Layer 3: contract the feature axis of h against W3 (PyTorch (1, 32)
    # layout) -> (1, tm) lane-dense row.  Avoids the lane-sparse (tm, 1)
    # result / masked-store path.
    out = lax.dot_general(w3_ref[...], h, (((1,), (1,)), ((), ())),
                          preferred_element_type=jnp.float32)        # (1, tm)
    o_ref[...] = (out + b3_ref[...]).astype(o_ref.dtype)


@functools.partial(jax.jit, static_argnames=("tm", "compute_dtype"))
def local_estimator_forward(x, w1, b1, w2, b2, w3, b3, *, tm=8192,
                            compute_dtype=jnp.bfloat16):
    """x: (N, D) packed sequence positions (features on lanes). Returns (N, 1)."""
    N, D = x.shape
    H1 = w1.shape[1]   # 64
    H2 = w2.shape[1]   # 32

    # Big row tiles amortize the ~0.35us/step pipeline overhead.  Keep tm a
    # multiple of 256 (sublane-aligned x blocks, lane-dense output blocks) and
    # never over-pad tiny inputs.  tm is a tunable: shrink it if you want a
    # grid >= 2 so the "parallel" axis can shard across both v7x TensorCores.
    tm = max(256, min(tm, pl.cdiv(N, 256) * 256))
    n_tiles = pl.cdiv(N, tm)
    n_pad = n_tiles * tm
    if n_pad != N:
        # Zero-pad the ragged tail so every x block read is fully in bounds.
        # Only paid when N % tm != 0 (one extra pass over x).
        x = jnp.pad(x, ((0, n_pad - N), (0, 0)))

    kernel = functools.partial(local_estimator_kernel,
                               compute_dtype=compute_dtype)

    out_row = pl.pallas_call(
        kernel,
        out_shape=jax.ShapeDtypeStruct((1, n_pad), jnp.float32),
        grid_spec=pltpu.PrefetchScalarGridSpec(
            num_scalar_prefetch=0,
            grid=(n_tiles,),
            in_specs=[
                pl.BlockSpec((tm, D), lambda i: (i, 0)),     # x tile
                pl.BlockSpec((D, H1), lambda i: (0, 0)),     # W1, stored (in, out)
                pl.BlockSpec((1, H1), lambda i: (0, 0)),     # b1
                pl.BlockSpec((H1, H2), lambda i: (0, 0)),    # W2, stored (in, out)
                pl.BlockSpec((1, H2), lambda i: (0, 0)),     # b2
                pl.BlockSpec((1, H2), lambda i: (0, 0)),     # W3, PyTorch (out, in)
                pl.BlockSpec((1, 1), lambda i: (0, 0)),      # b3
            ],
            out_specs=pl.BlockSpec((1, tm), lambda i: (0, i)),
        ),
        compiler_params=pltpu.CompilerParams(
            dimension_semantics=("parallel",)),
    )(x, w1, b1, w2, b2, w3, b3)

    # Row-major: tile i, lane j  <->  input row i*tm + j.
    return out_row[0, :N, None]


def init_params(key, input_size):
    """Deterministic init mirroring nn.Linear default (U[-1/sqrt(fan_in), +])."""
    def uniform(k, shape, fan_in):
        bound = 1.0 / jnp.sqrt(fan_in)
        return jax.random.uniform(k, shape, jnp.float32, -bound, bound)

    k = jax.random.split(key, 6)
    w1 = uniform(k[0], (input_size, 64), input_size)   # stored (in, out)
    b1 = uniform(k[1], (1, 64), input_size)
    w2 = uniform(k[2], (64, 32), 64)                   # stored (in, out)
    b2 = uniform(k[3], (1, 32), 64)
    w3 = uniform(k[4], (1, 32), 32)                    # PyTorch (out, in) layout
    b3 = uniform(k[5], (1, 1), 32)
    return w1, b1, w2, b2, w3, b3


def reference_forward(x, w1, b1, w2, b2, w3, b3):
    h = jax.nn.leaky_relu(x @ w1 + b1, negative_slope=_NEG_SLOPE)
    h = jax.nn.leaky_relu(h @ w2 + b2, negative_slope=_NEG_SLOPE)
    return h @ w3.T + b3


if __name__ == "__main__":
    input_size = 32    # feature dim of packed spatio-temporal states
    N = 2048           # packed sequence positions

    key = jax.random.PRNGKey(0)
    kx, kp = jax.random.split(key)
    x = jax.random.normal(kx, (N, input_size), jnp.float32)
    params = init_params(kp, input_size)
    w1, b1, w2, b2, w3, b3 = params

    # --- default path (in-kernel bf16 layer-1 operands) --------------------
    out = local_estimator_forward(x, *params)
    out = jax.block_until_ready(out)
    assert out.shape == (N, 1), out.shape
    # Reference with matching bf16 rounding of the layer-1 operands.
    x_r = x.astype(jnp.bfloat16).astype(jnp.float32)
    w1_r = w1.astype(jnp.bfloat16).astype(jnp.float32)
    ref = reference_forward(x_r, w1_r, b1, w2, b2, w3, b3)
    err = float(jnp.max(jnp.abs(out - ref)))
    assert jnp.allclose(out, ref, atol=2e-3, rtol=2e-3), err

    # --- pure-f32 path with ragged N (exercises tile clamp + zero padding) --
    N2 = 300
    x2 = jax.random.normal(jax.random.PRNGKey(1), (N2, input_size), jnp.float32)
    out2 = local_estimator_forward(x2, *params, compute_dtype=None)
    out2 = jax.block_until_ready(out2)
    ref2 = reference_forward(x2, *params)
    err2 = float(jnp.max(jnp.abs(out2 - ref2)))
    assert out2.shape == (N2, 1), out2.shape
    assert jnp.allclose(out2, ref2, atol=1e-4, rtol=1e-4), err2

    # TODO(synk): eval_on_batch (MSELoss) is training-only and not part of the
    # forward pass; it is intentionally not implemented as a kernel.
    print("KERNEL_OK")
</pallas_src>

<mosaic_0001>
module attributes {stable_mosaic.version = 11 : i64} {
  func.func @local_estimator_kernel(%arg0: i32, %arg1: memref<2048x32xf32, #tpu.memory_space<vmem>>, %arg2: memref<32x64xf32, #tpu.memory_space<vmem>>, %arg3: memref<1x64xf32, #tpu.memory_space<vmem>>, %arg4: memref<64x32xf32, #tpu.memory_space<vmem>>, %arg5: memref<1x32xf32, #tpu.memory_space<vmem>>, %arg6: memref<1x32xf32, #tpu.memory_space<vmem>>, %arg7: memref<1x1xf32, #tpu.memory_space<vmem>>, %arg8: memref<1x2048xf32, #tpu.memory_space<vmem>>) attributes {dimension_semantics = [#tpu.dimension_semantics<parallel>], iteration_bounds = array<i64: 1>, scalar_prefetch = 0 : i64, scratch_operands = 0 : i64, tpu.core_type = #tpu.core_type<tc>, window_params = [{transform_indices = @transform_0, window_bounds = array<i64: 2048, 32>}, {pipeline_mode = #tpu.pipeline_mode<synchronous>, transform_indices = @transform_1, window_bounds = array<i64: 32, 64>}, {pipeline_mode = #tpu.pipeline_mode<synchronous>, transform_indices = @transform_2, window_bounds = array<i64: 1, 64>}, {pipeline_mode = #tpu.pipeline_mode<synchronous>, transform_indices = @transform_3, window_bounds = array<i64: 64, 32>}, {pipeline_mode = #tpu.pipeline_mode<synchronous>, transform_indices = @transform_4, window_bounds = array<i64: 1, 32>}, {pipeline_mode = #tpu.pipeline_mode<synchronous>, transform_indices = @transform_5, window_bounds = array<i64: 1, 32>}, {pipeline_mode = #tpu.pipeline_mode<synchronous>, transform_indices = @transform_6, window_bounds = array<i64: 1, 1>}, {transform_indices = @transform_7, window_bounds = array<i64: 1, 2048>}]} {
    %c0 = arith.constant 0 : index
    %c0_0 = arith.constant 0 : index
    %0 = vector.load %arg1[%c0, %c0_0] : memref<2048x32xf32, #tpu.memory_space<vmem>>, vector<2048x32xf32>
    %c0_1 = arith.constant 0 : index
    %c0_2 = arith.constant 0 : index
    %1 = vector.load %arg2[%c0_1, %c0_2] : memref<32x64xf32, #tpu.memory_space<vmem>>, vector<32x64xf32>
    %2 = arith.truncf %0 : vector<2048x32xf32> to vector<2048x32xbf16>
    %3 = arith.truncf %1 : vector<32x64xf32> to vector<32x64xbf16>
    %cst = arith.constant dense<0.000000e+00> : vector<2048x64xf32>
    %4 = tpu.matmul %2, %3, %cst {dimension_numbers = #tpu.dot_dimension_numbers<[1], [0], [0], [1], [0, 0, 1, 1], [], []>} : vector<2048x32xbf16>, vector<32x64xbf16>, vector<2048x64xf32> -> vector<2048x64xf32>
    %c0_3 = arith.constant 0 : index
    %c0_4 = arith.constant 0 : index
    %5 = vector.load %arg3[%c0_3, %c0_4] : memref<1x64xf32, #tpu.memory_space<vmem>>, vector<1x64xf32>
    %6 = vector.broadcast %5 : vector<1x64xf32> to vector<2048x64xf32>
    %7 = arith.addf %4, %6 : vector<2048x64xf32>
    %cst_5 = arith.constant 0.000000e+00 : f32
    %8 = vector.broadcast %cst_5 : f32 to vector<2048x64xf32>
    %9 = arith.cmpf ogt, %7, %8 : vector<2048x64xf32>
    %cst_6 = arith.constant 0.00999999977 : f32
    %10 = vector.broadcast %cst_6 : f32 to vector<2048x64xf32>
    %11 = arith.mulf %10, %7 : vector<2048x64xf32>
    %12 = arith.select %9, %7, %11 : vector<2048x64xi1>, vector<2048x64xf32>
    %c0_7 = arith.constant 0 : index
    %c0_8 = arith.constant 0 : index
    %13 = vector.load %arg4[%c0_7, %c0_8] : memref<64x32xf32, #tpu.memory_space<vmem>>, vector<64x32xf32>
    %cst_9 = arith.constant dense<0.000000e+00> : vector<2048x32xf32>
    %14 = tpu.matmul %12, %13, %cst_9 {dimension_numbers = #tpu.dot_dimension_numbers<[1], [0], [0], [1], [0, 0, 1, 1], [], []>} : vector<2048x64xf32>, vector<64x32xf32>, vector<2048x32xf32> -> vector<2048x32xf32>
    %c0_10 = arith.constant 0 : index
    %c0_11 = arith.constant 0 : index
    %15 = vector.load %arg5[%c0_10, %c0_11] : memref<1x32xf32, #tpu.memory_space<vmem>>, vector<1x32xf32>
    %16 = vector.broadcast %15 : vector<1x32xf32> to vector<2048x32xf32>
    %17 = arith.addf %14, %16 : vector<2048x32xf32>
    %cst_12 = arith.constant 0.000000e+00 : f32
    %18 = vector.broadcast %cst_12 : f32 to vector<2048x32xf32>
    %19 = arith.cmpf ogt, %17, %18 : vector<2048x32xf32>
    %cst_13 = arith.constant 0.00999999977 : f32
    %20 = vector.broadcast %cst_13 : f32 to vector<2048x32xf32>
    %21 = arith.mulf %20, %17 : vector<2048x32xf32>
    %22 = arith.select %19, %17, %21 : vector<2048x32xi1>, vector<2048x32xf32>
    %c0_14 = arith.constant 0 : index
    %c0_15 = arith.constant 0 : index
    %23 = vector.load %arg6[%c0_14, %c0_15] : memref<1x32xf32, #tpu.memory_space<vmem>>, vector<1x32xf32>
    %cst_16 = arith.constant dense<0.000000e+00> : vector<1x2048xf32>
    %24 = tpu.matmul %23, %22, %cst_16 {dimension_numbers = #tpu.dot_dimension_numbers<[1], [1], [0], [0], [0, 0, 1, 0], [], []>} : vector<1x32xf32>, vector<2048x32xf32>, vector<1x2048xf32> -> vector<1x2048xf32>
    %c0_17 = arith.constant 0 : index
    %c0_18 = arith.constant 0 : index
    %25 = vector.load %arg7[%c0_17, %c0_18] : memref<1x1xf32, #tpu.memory_space<vmem>>, vector<1x1xf32>
    %26 = vector.broadcast %25 : vector<1x1xf32> to vector<1x2048xf32>
    %27 = arith.addf %24, %26 : vector<1x2048xf32>
    %c0_19 = arith.constant 0 : index
    %c0_20 = arith.constant 0 : index
    %28 = vector.load %arg8[%c0_19, %c0_20] : memref<1x2048xf32, #tpu.memory_space<vmem>>, vector<1x2048xf32>
    tpu.vector_store %arg8[%c0_19, %c0_20], %27 {strides = array<i32>} : memref<1x2048xf32, #tpu.memory_space<vmem>>, vector<1x2048xf32>,
    return
  }
  func.func @transform_0(%arg0: i32) -> (i32, i32) {
    %c0_i32 = arith.constant 0 : i32
    %c0_i32_0 = arith.constant 0 : i32
    return %arg0, %c0_i32 : i32, i32
  }
  func.func @transform_1(%arg0: i32) -> (i32, i32) {
    %c0_i32 = arith.constant 0 : i32
    %c0_i32_0 = arith.constant 0 : i32
    %c0_i32_1 = arith.constant 0 : i32
    return %c0_i32, %c0_i32_0 : i32, i32
  }
  func.func @transform_2(%arg0: i32) -> (i32, i32) {
    %c0_i32 = arith.constant 0 : i32
    %c0_i32_0 = arith.constant 0 : i32
    %c0_i32_1 = arith.constant 0 : i32
    return %c0_i32, %c0_i32_0 : i32, i32
  }
  func.func @transform_3(%arg0: i32) -> (i32, i32) {
    %c0_i32 = arith.constant 0 : i32
    %c0_i32_0 = arith.constant 0 : i32
    %c0_i32_1 = arith.constant 0 : i32
    return %c0_i32, %c0_i32_0 : i32, i32
  }
  func.func @transform_4(%arg0: i32) -> (i32, i32) {
    %c0_i32 = arith.constant 0 : i32
    %c0_i32_0 = arith.constant 0 : i32
    %c0_i32_1 = arith.constant 0 : i32
    return %c0_i32, %c0_i32_0 : i32, i32
  }
  func.func @transform_5(%arg0: i32) -> (i32, i32) {
    %c0_i32 = arith.constant 0 : i32
    %c0_i32_0 = arith.constant 0 : i32
    %c0_i32_1 = arith.constant 0 : i32
    return %c0_i32, %c0_i32_0 : i32, i32
  }
  func.func @transform_6(%arg0: i32) -> (i32, i32) {
    %c0_i32 = arith.constant 0 : i32
    %c0_i32_0 = arith.constant 0 : i32
    %c0_i32_1 = arith.constant 0 : i32
    return %c0_i32, %c0_i32_0 : i32, i32
  }
  func.func @transform_7(%arg0: i32) -> (i32, i32) {
    %c0_i32 = arith.constant 0 : i32
    %c0_i32_0 = arith.constant 0 : i32
    return %c0_i32, %arg0 : i32, i32
  }
}

</mosaic_0001>

<bundles_post_ra>
// kernel: local_estimator_forward.1
= control target key start
LH: loop header
LB: loop body
LE: loop exit
PB: predicated region body
PF: predicated region fallthrough
CT: control target
= control target key end

     0   :  { %s9251_s0 = inlined_call_operand.vmem [shape: f32[2048,32], index: 0, kind: input, shape index: {}]   ;;  %s9252_s1 = inlined_call_operand.vmem [shape: f32[32,64], index: 1, kind: input, shape index: {}]   ;;  %s9253_s2 = inlined_call_operand.vmem [shape: f32[1,64], index: 2, kind: input, shape index: {}]   ;;  %s9254_s3 = inlined_call_operand.vmem [shape: f32[64,32], index: 3, kind: input, shape index: {}]   ;;  %s9255_s4 = inlined_call_operand.vmem [shape: f32[1,32], index: 4, kind: input, shape index: {}]   ;;  %s9256_s5 = inlined_call_operand.vmem [shape: f32[1,32], index: 5, kind: input, shape index: {}]   ;;  %s9257_s6 = inlined_call_operand.<no memory space> [shape: f32[1,1], index: 6, kind: input, shape index: {}]   ;;  %s9258_s7 = inlined_call_operand.hbm [shape: f32[1,2048], index: 7, kind: output, shape index: {}]  }
   0x1   :  { %v12_v0 = vstv %s9257_s6 }
   0x2   :  { %13 = vst [vmem:[#allocation2] sm:$0x1] %v12_v0 }
   0x3   :  { %v288_v1 = vld [vmem:[%s9252_s1 + $0x10] sm:$0xff]  ;;  %v289_v2 = vld [vmem:[%s9252_s1 + $0x18] sm:$0xff]  ;;  %v286_v3 = vld [vmem:[%s9252_s1] sm:$0xff] }
   0x4   :  { %v419_v4 = vpack.c.bf16 %v289_v2, %v288_v1  ;;  %v287_v5 = vld [vmem:[%s9252_s1 + $0x8] sm:$0xff]  ;;  %v30_v6 = vld [vmem:[%s9251_s0] sm:$0xff]  ;;  %v188_v9 = vld [vmem:[%s9251_s0 + $0x4f0] sm:$0xff] }
   0x5   :  { %v418_v7 = vpack.c.bf16 %v287_v5, %v286_v3  ;;  %v31_v8 = vld [vmem:[%s9251_s0 + $0x8] sm:$0xff]  ;;  %v189_v10 = vld [vmem:[%s9251_s0 + $0x4f8] sm:$0xff] }
   0x6   :  { %815 = vmatpush.bf16.msra.mxu0 %v419_v4  ;;  %6386 = vmatpush.bf16.msra.mxu3 %v419_v4 }
   0x7   :  { %14 = vsyncpa [#allocation4], 0  ;;  %v290_v11 = vpack.c.bf16 %v31_v8, %v30_v6  ;;  %v369_v12 = vpack.c.bf16 %v189_v10, %v188_v9  ;;  %vm424_vm0 = vcmask 261120   ;;  %v32_v13 = vld [vmem:[%s9251_s0 + $0x10] sm:$0xff]  ;;  %v33_v14 = vld [vmem:[%s9251_s0 + $0x18] sm:$0xff]  ;;  %vm2238_vm2 = vcmask 523264  }
   0x8   :  { %v190_v15 = vld [vmem:[%s9251_s0 + $0x500] sm:$0xff]  ;;  %v191_v16 = vld [vmem:[%s9251_s0 + $0x508] sm:$0xff]  ;;  %v291_v17 = vpack.c.bf16 %v33_v14, %v32_v13  ;;  %v192_v21 = vld [vmem:[%s9251_s0 + $0x510] sm:$0xff]  ;;  %s5721_s23 = sshll.u32 %s9258_s7, 4  ;;  %s5722_s23 = int_to_ptr.hbm [resolvable:$true] %s5721_s23 }
   0x9   :  { %v370_v18 = vpack.c.bf16 %v191_v16, %v190_v15  ;;  %v34_v19 = vld [vmem:[%s9251_s0 + $0x20] sm:$0xff]  ;;  %v35_v20 = vld [vmem:[%s9251_s0 + $0x28] sm:$0xff]  ;;  %v193_v22 = vld [vmem:[%s9251_s0 + $0x518] sm:$0xff] }
   0xa   :  { %816 = vmatpush.bf16.msra.mxu0 %v418_v7  ;;  %6387 = vmatpush.bf16.msra.mxu3 %v418_v7  ;;  %v292_v23 = vpack.c.bf16 %v35_v20, %v34_v19  ;;  %v371_v24 = vpack.c.bf16 %v193_v22, %v192_v21  ;;  %v36_v25 = vld [vmem:[%s9251_s0 + $0x30] sm:$0xff]  ;;  %v37_v26 = vld [vmem:[%s9251_s0 + $0x38] sm:$0xff]  ;;  %v194_v27 = vld [vmem:[%s9251_s0 + $0x520] sm:$0xff] }
   0xb   :  { %v195_v28 = vld [vmem:[%s9251_s0 + $0x528] sm:$0xff]  ;;  %v293_v29 = vpack.c.bf16 %v37_v26, %v36_v25  ;;  %v38_v31 = vld [vmem:[%s9251_s0 + $0x40] sm:$0xff]  ;;  %v196_v33 = vld [vmem:[%s9251_s0 + $0x530] sm:$0xff] }
   0xc   :  { %v372_v30 = vpack.c.bf16 %v195_v28, %v194_v27  ;;  %v39_v32 = vld [vmem:[%s9251_s0 + $0x48] sm:$0xff]  ;;  %v197_v34 = vld [vmem:[%s9251_s0 + $0x538] sm:$0xff]  ;;  %v40_v37 = vld [vmem:[%s9251_s0 + $0x50] sm:$0xff] }
   0xd   :  { %5730 = vmatmul.msk.bf16.vlgmr.msra.gmra.mxu0 %vm424_vm0, %v290_v11  ;;  %5809 = vmatmul.msk.bf16.vlgmr.msra.gmra.mxu3 %vm424_vm0, %v369_v12  ;;  %v294_v35 = vpack.c.bf16 %v39_v32, %v38_v31  ;;  %v373_v36 = vpack.c.bf16 %v197_v34, %v196_v33  ;;  %v41_v38 = vld [vmem:[%s9251_s0 + $0x58] sm:$0xff]  ;;  %v198_v39 = vld [vmem:[%s9251_s0 + $0x540] sm:$0xff]  ;;  %v199_v40 = vld [vmem:[%s9251_s0 + $0x548] sm:$0xff] }
   0xe   :  { %v295_v41 = vpack.c.bf16 %v41_v38, %v40_v37  ;;  %v374_v42 = vpack.c.bf16 %v199_v40, %v198_v39  ;;  %v2233_v43 = vld [vmem:[%s9254_s3 + $0x38] sm:$0xff]  ;;  %v2232_v44 = vld [vmem:[%s9254_s3 + $0x30] sm:$0xff]  ;;  %v2231_v45 = vld [vmem:[%s9254_s3 + $0x28] sm:$0xff] }
   0xf   :  { %3015 = vmatpush.msra.mxu1 %v2233_v43  ;;  %6388 = vmatpush.msra.mxu2 %v2233_v43  ;;  %v2230_v46 = vld [vmem:[%s9254_s3 + $0x20] sm:$0xff]  ;;  %v2229_v47 = vld [vmem:[%s9254_s3 + $0x18] sm:$0xff]  ;;  %v43_v49 = vld [vmem:[%s9251_s0 + $0x68] sm:$0xff] }
  0x10   :  { %v42_v48 = vld [vmem:[%s9251_s0 + $0x60] sm:$0xff]  ;;  %v200_v50 = vld [vmem:[%s9251_s0 + $0x550] sm:$0xff]  ;;  %v201_v51 = vld [vmem:[%s9251_s0 + $0x558] sm:$0xff] }
  0x11   :  { %3016 = vmatpush.msra.mxu1 %v2232_v44  ;;  %6389 = vmatpush.msra.mxu2 %v2232_v44  ;;  %v296_v52 = vpack.c.bf16 %v43_v49, %v42_v48  ;;  %v375_v53 = vpack.c.bf16 %v201_v51, %v200_v50  ;;  %v2228_v54 = vld [vmem:[%s9254_s3 + $0x10] sm:$0xff]  ;;  %v2227_v55 = vld [vmem:[%s9254_s3 + $0x8] sm:$0xff]  ;;  %v2226_v56 = vld [vmem:[%s9254_s3] sm:$0xff] }
  0x12   :  { %v44_v57 = vld [vmem:[%s9251_s0 + $0x70] sm:$0xff]  ;;  %v45_v58 = vld [vmem:[%s9251_s0 + $0x78] sm:$0xff]  ;;  %v202_v59 = vld [vmem:[%s9251_s0 + $0x560] sm:$0xff] }
  0x13   :  { %3017 = vmatpush.msra.mxu1 %v2231_v45  ;;  %6390 = vmatpush.msra.mxu2 %v2231_v45  ;;  %v203_v60 = vld [vmem:[%s9251_s0 + $0x568] sm:$0xff]  ;;  %v297_v61 = vpack.c.bf16 %v45_v58, %v44_v57  ;;  %v46_v63 = vld [vmem:[%s9251_s0 + $0x80] sm:$0xff]  ;;  %v204_v1 = vld [vmem:[%s9251_s0 + $0x570] sm:$0xff] }
  0x14   :  { %v376_v62 = vpack.c.bf16 %v203_v60, %v202_v59  ;;  %v47_v0 = vld [vmem:[%s9251_s0 + $0x88] sm:$0xff]  ;;  %v205_v2 = vld [vmem:[%s9251_s0 + $0x578] sm:$0xff]  ;;  %v6647_v3 = vld [vmem:[%s9253_s2] ss:$0 sm:$0xff] }
  0x15   :  { %3018 = vmatpush.msra.mxu1 %v2230_v46  ;;  %6391 = vmatpush.msra.mxu2 %v2230_v46  ;;  %v298_v4 = vpack.c.bf16 %v47_v0, %v46_v63  ;;  %v377_v5 = vpack.c.bf16 %v205_v2, %v204_v1  ;;  %v206_v19 = vld [vmem:[%s9251_s0 + $0x580] sm:$0xff]  ;;  %v207_v20 = vld [vmem:[%s9251_s0 + $0x588] sm:$0xff] }
  0x16   :  { %v378_v25 = vpack.c.bf16 %v207_v20, %v206_v19  ;;  %v50_v39 = vld [vmem:[%s9251_s0 + $0xa0] sm:$0xff]  ;;  %v51_v40 = vld [vmem:[%s9251_s0 + $0xa8] sm:$0xff] }
  0x17   :  { %3019 = vmatpush.msra.mxu1 %v2229_v47  ;;  %6392 = vmatpush.msra.mxu2 %v2229_v47  ;;  %v300_v46 = vpack.c.bf16 %v51_v40, %v50_v39  ;;  %v210_v63 = vld [vmem:[%s9251_s0 + $0x5a0] sm:$0xff]  ;;  %v211_v0 = vld [vmem:[%s9251_s0 + $0x5a8] sm:$0xff] }
  0x18   :  { %v54_v20 = vld [vmem:[%s9251_s0 + $0xc0] sm:$0xff] }
  0x19   :  { %3020 = vmatpush.msra.mxu1 %v2228_v54  ;;  %6393 = vmatpush.msra.mxu2 %v2228_v54 }
  0x1b   :  { %3021 = vmatpush.msra.mxu1 %v2227_v55  ;;  %6394 = vmatpush.msra.mxu2 %v2227_v55 }
  0x1d   :  { %5731 = vmatmul.msk.bf16.gmra.mxu0 %vm424_vm0, %v291_v17  ;;  %5810 = vmatmul.msk.bf16.gmra.mxu3 %vm424_vm0, %v370_v18  ;;  %v48_v17 = vld [vmem:[%s9251_s0 + $0x90] sm:$0xff]  ;;  %v49_v18 = vld [vmem:[%s9251_s0 + $0x98] sm:$0xff] }
  0x1e   :  { %3022 = vmatpush.msra.mxu1 %v2226_v56  ;;  %6395 = vmatpush.msra.mxu2 %v2226_v56 }
  0x2d   :  { %5732 = vmatmul.msk.bf16.gmra.mxu0 %vm424_vm0, %v292_v23  ;;  %5811 = vmatmul.msk.bf16.gmra.mxu3 %vm424_vm0, %v371_v24  ;;  %v299_v24 = vpack.c.bf16 %v49_v18, %v48_v17 }
  0x3d   :  { %5733 = vmatmul.msk.bf16.gmra.mxu0 %vm424_vm0, %v293_v29  ;;  %5812 = vmatmul.msk.bf16.gmra.mxu3 %vm424_vm0, %v372_v30 }
  0x4d   :  { %5734 = vmatmul.msk.bf16.gmra.mxu0 %vm424_vm0, %v294_v35  ;;  %5813 = vmatmul.msk.bf16.gmra.mxu3 %vm424_vm0, %v373_v36 }
  0x5d   :  { %5735 = vmatmul.msk.bf16.gmra.mxu0 %vm424_vm0, %v295_v41  ;;  %5814 = vmatmul.msk.bf16.gmra.mxu3 %vm424_vm0, %v374_v42  ;;  %v208_v41 = vld [vmem:[%s9251_s0 + $0x590] sm:$0xff]  ;;  %v209_v42 = vld [vmem:[%s9251_s0 + $0x598] sm:$0xff] }
  0x5e   :  { %v379_v47 = vpack.c.bf16 %v209_v42, %v208_v41  ;;  %v56_v42 = vld [vmem:[%s9251_s0 + $0xd0] sm:$0xff] }
  0x6d   :  { %5736 = vmatmul.msk.bf16.gmra.mxu0 %vm424_vm0, %v296_v52  ;;  %5815 = vmatmul.msk.bf16.gmra.mxu3 %vm424_vm0, %v375_v53 }
  0x7d   :  { %5737 = vmatmul.msk.bf16.gmra.mxu0 %vm424_vm0, %v297_v61  ;;  %5816 = vmatmul.msk.bf16.gmra.mxu3 %vm424_vm0, %v376_v62  ;;  %v52_v61 = vld [vmem:[%s9251_s0 + $0xb0] sm:$0xff]  ;;  %v53_v62 = vld [vmem:[%s9251_s0 + $0xb8] sm:$0xff] }
  0x8a   :  { %v818_v6 = vpop.f32.mrf.mxu0 }
  0x8b   :  { %v819_v7 = vadd.f32 %v6647_v3, %v818_v6  ;;  %v380_v6 = vpack.c.bf16 %v211_v0, %v210_v63  ;;  %v58_v0 = vld [vmem:[%s9251_s0 + $0xe0] sm:$0xff] }
  0x8d   :  { %v1714_v8 = vmul.f32 0.01, %v819_v7  ;;  %5738 = vmatmul.msk.bf16.gmra.mxu0 %vm424_vm0, %v298_v4  ;;  %5817 = vmatmul.msk.bf16.gmra.mxu3 %vm424_vm0, %v377_v5  ;;  %vm1458_vm1 = vcmp.gt.f32.partialorder %v819_v7, 0.0  ;;  %v301_v5 = vpack.c.bf16 %v53_v62, %v52_v61 }
  0x8f   :  { %v1970_v9 = vsel %vm1458_vm1, %v819_v7, %v1714_v8 }
  0x90   :  { %v1213_v10 = vpop.f32.mrf.mxu3  ;;  %5858 = vmatmul.msk.f32.vlgmr.msra.gmra.mxu1 %vm2238_vm2, %v1970_v9 }
  0x91   :  { %v1214_v11 = vadd.f32 %v6647_v3, %v1213_v10 }
  0x92   :  { %v820_v12 = vpop.f32.mrf.mxu0 }
  0x93   :  { %v1872_v13 = vmul.f32 0.01, %v1214_v11  ;;  %v821_v14 = vadd.f32 %v6647_v3, %v820_v12  ;;  %vm1616_vm3 = vcmp.gt.f32.partialorder %v1214_v11, 0.0 }
  0x95   :  { %v2128_v15 = vsel %vm1616_vm3, %v1214_v11, %v1872_v13  ;;  %vm1459_vm4 = vcmp.gt.f32.partialorder %v821_v14, 0.0  ;;  %v1715_v16 = vmul.f32 0.01, %v821_v14 }
  0x96   :  { %6016 = vmatmul.msk.f32.vlgmr.msra.gmra.mxu2 %vm2238_vm2, %v2128_v15 }
  0x97   :  { %v1971_v21 = vsel %vm1459_vm4, %v821_v14, %v1715_v16 }
  0x98   :  { %v1215_v22 = vpop.f32.mrf.mxu3  ;;  %5859 = vmatmul.msk.f32.gmra.mxu1 %vm2238_vm2, %v1971_v21  ;;  %v55_v21 = vld [vmem:[%s9251_s0 + $0xc8] sm:$0xff] }
  0x99   :  { %v1216_v23 = vadd.f32 %v6647_v3, %v1215_v22  ;;  %v212_v22 = vld [vmem:[%s9251_s0 + $0x5b0] sm:$0xff] }
  0x9a   :  { %v823_v26 = vpop.f32.mrf.mxu0 }
  0x9b   :  { %v824_v27 = vadd.f32 %v6647_v3, %v823_v26  ;;  %vm1617_vm5 = vcmp.gt.f32.partialorder %v1216_v23, 0.0  ;;  %v1873_v28 = vmul.f32 0.01, %v1216_v23 }
  0x9d   :  { %v1716_v29 = vmul.f32 0.01, %v824_v27  ;;  %5739 = vmatmul.msk.bf16.gmra.mxu0 %vm424_vm0, %v299_v24  ;;  %5818 = vmatmul.msk.bf16.gmra.mxu3 %vm424_vm0, %v378_v25  ;;  %v2129_v30 = vsel %vm1617_vm5, %v1216_v23, %v1873_v28  ;;  %vm1460_vm6 = vcmp.gt.f32.partialorder %v824_v27, 0.0  ;;  %v213_v23 = vld [vmem:[%s9251_s0 + $0x5b8] sm:$0xff] }
  0x9e   :  { %6017 = vmatmul.msk.f32.gmra.mxu2 %vm2238_vm2, %v2129_v30  ;;  %v381_v28 = vpack.c.bf16 %v213_v23, %v212_v22  ;;  %v60_v23 = vld [vmem:[%s9251_s0 + $0xf0] sm:$0xff] }
  0x9f   :  { %v1972_v31 = vsel %vm1460_vm6, %v824_v27, %v1716_v29  ;;  %v302_v27 = vpack.c.bf16 %v55_v21, %v54_v20 }
  0xa0   :  { %v1218_v32 = vpop.f32.mrf.mxu3  ;;  %5860 = vmatmul.msk.f32.gmra.mxu1 %vm2238_vm2, %v1972_v31 }
  0xa1   :  { %v1219_v33 = vadd.f32 %v6647_v3, %v1218_v32 }
  0xa2   :  { %v825_v34 = vpop.f32.mrf.mxu0 }
  0xa3   :  { %v1874_v35 = vmul.f32 0.01, %v1219_v33  ;;  %v826_v36 = vadd.f32 %v6647_v3, %v825_v34  ;;  %vm1618_vm7 = vcmp.gt.f32.partialorder %v1219_v33, 0.0 }
  0xa5   :  { %v2130_v37 = vsel %vm1618_vm7, %v1219_v33, %v1874_v35  ;;  %vm1461_vm8 = vcmp.gt.f32.partialorder %v826_v36, 0.0  ;;  %v1717_v38 = vmul.f32 0.01, %v826_v36 }
  0xa6   :  { %6018 = vmatmul.msk.f32.gmra.mxu2 %vm2238_vm2, %v2130_v37 }
  0xa7   :  { %v1973_v43 = vsel %vm1461_vm8, %v826_v36, %v1717_v38 }
  0xa8   :  { %v1220_v44 = vpop.f32.mrf.mxu3  ;;  %5861 = vmatmul.msk.f32.gmra.mxu1 %vm2238_vm2, %v1973_v43  ;;  %v57_v43 = vld [vmem:[%s9251_s0 + $0xd8] sm:$0xff] }
  0xa9   :  { %v1221_v45 = vadd.f32 %v6647_v3, %v1220_v44  ;;  %v214_v44 = vld [vmem:[%s9251_s0 + $0x5c0] sm:$0xff] }
  0xaa   :  { %v828_v48 = vpop.f32.mrf.mxu0 }
  0xab   :  { %v829_v49 = vadd.f32 %v6647_v3, %v828_v48  ;;  %vm1619_vm9 = vcmp.gt.f32.partialorder %v1221_v45, 0.0  ;;  %v1875_v50 = vmul.f32 0.01, %v1221_v45 }
  0xad   :  { %v1718_v51 = vmul.f32 0.01, %v829_v49  ;;  %5740 = vmatmul.msk.bf16.gmra.mxu0 %vm424_vm0, %v300_v46  ;;  %5819 = vmatmul.msk.bf16.gmra.mxu3 %vm424_vm0, %v379_v47  ;;  %v2131_v52 = vsel %vm1619_vm9, %v1221_v45, %v1875_v50  ;;  %vm1462_vm10 = vcmp.gt.f32.partialorder %v829_v49, 0.0  ;;  %v215_v45 = vld [vmem:[%s9251_s0 + $0x5c8] sm:$0xff] }
  0xae   :  { %6019 = vmatmul.msk.f32.gmra.mxu2 %vm2238_vm2, %v2131_v52  ;;  %v382_v50 = vpack.c.bf16 %v215_v45, %v214_v44  ;;  %v62_v45 = vld [vmem:[%s9251_s0 + $0x100] sm:$0xff] }
  0xaf   :  { %v1974_v53 = vsel %vm1462_vm10, %v829_v49, %v1718_v51  ;;  %v303_v49 = vpack.c.bf16 %v57_v43, %v56_v42 }
  0xb0   :  { %v1223_v54 = vpop.f32.mrf.mxu3  ;;  %5862 = vmatmul.msk.f32.gmra.mxu1 %vm2238_vm2, %v1974_v53 }
  0xb1   :  { %v1224_v55 = vadd.f32 %v6647_v3, %v1223_v54 }
  0xb2   :  { %v830_v56 = vpop.f32.mrf.mxu0 }
  0xb3   :  { %v1876_v57 = vmul.f32 0.01, %v1224_v55  ;;  %v831_v58 = vadd.f32 %v6647_v3, %v830_v56  ;;  %vm1620_vm11 = vcmp.gt.f32.partialorder %v1224_v55, 0.0 }
  0xb5   :  { %v2132_v59 = vsel %vm1620_vm11, %v1224_v55, %v1876_v57  ;;  %vm1463_vm12 = vcmp.gt.f32.partialorder %v831_v58, 0.0  ;;  %v1719_v60 = vmul.f32 0.01, %v831_v58 }
  0xb6   :  { %6020 = vmatmul.msk.f32.gmra.mxu2 %vm2238_vm2, %v2132_v59 }
  0xb7   :  { %v1975_v1 = vsel %vm1463_vm12, %v831_v58, %v1719_v60 }
  0xb8   :  { %v1225_v2 = vpop.f32.mrf.mxu3  ;;  %5863 = vmatmul.msk.f32.gmra.mxu1 %vm2238_vm2, %v1975_v1  ;;  %v59_v1 = vld [vmem:[%s9251_s0 + $0xe8] sm:$0xff] }
  0xb9   :  { %v1226_v4 = vadd.f32 %v6647_v3, %v1225_v2  ;;  %v216_v2 = vld [vmem:[%s9251_s0 + $0x5d0] sm:$0xff] }
  0xba   :  { %v833_v7 = vpop.f32.mrf.mxu0 }
  0xbb   :  { %v834_v8 = vadd.f32 %v6647_v3, %v833_v7  ;;  %vm1621_vm13 = vcmp.gt.f32.partialorder %v1226_v4, 0.0  ;;  %v1877_v9 = vmul.f32 0.01, %v1226_v4 }
  0xbd   :  { %v1720_v10 = vmul.f32 0.01, %v834_v8  ;;  %5741 = vmatmul.msk.bf16.gmra.mxu0 %vm424_vm0, %v301_v5  ;;  %5820 = vmatmul.msk.bf16.gmra.mxu3 %vm424_vm0, %v380_v6  ;;  %v2133_v11 = vsel %vm1621_vm13, %v1226_v4, %v1877_v9  ;;  %vm1464_vm14 = vcmp.gt.f32.partialorder %v834_v8, 0.0  ;;  %v217_v4 = vld [vmem:[%s9251_s0 + $0x5d8] sm:$0xff] }
  0xbe   :  { %6021 = vmatmul.msk.f32.gmra.mxu2 %vm2238_vm2, %v2133_v11  ;;  %v383_v9 = vpack.c.bf16 %v217_v4, %v216_v2 }
  0xbf   :  { %v1976_v12 = vsel %vm1464_vm14, %v834_v8, %v1720_v10  ;;  %v304_v8 = vpack.c.bf16 %v59_v1, %v58_v0 }
  0xc0   :  { %v1228_v13 = vpop.f32.mrf.mxu3  ;;  %5864 = vmatmul.msk.f32.gmra.mxu1 %vm2238_vm2, %v1976_v12 }
  0xc1   :  { %v1229_v14 = vadd.f32 %v6647_v3, %v1228_v13 }
  0xc2   :  { %v835_v15 = vpop.f32.mrf.mxu0 }
  0xc3   :  { %v1878_v16 = vmul.f32 0.01, %v1229_v14  ;;  %v836_v17 = vadd.f32 %v6647_v3, %v835_v15  ;;  %vm1622_vm15 = vcmp.gt.f32.partialorder %v1229_v14, 0.0 }
  0xc5   :  { %v2134_v18 = vsel %vm1622_vm15, %v1229_v14, %v1878_v16  ;;  %vm1465_vm1 = vcmp.gt.f32.partialorder %v836_v17, 0.0  ;;  %v1721_v19 = vmul.f32 0.01, %v836_v17 }
  0xc6   :  { %6022 = vmatmul.msk.f32.gmra.mxu2 %vm2238_vm2, %v2134_v18 }
  0xc7   :  { %v1977_v24 = vsel %vm1465_vm1, %v836_v17, %v1721_v19 }
  0xc8   :  { %v1230_v25 = vpop.f32.mrf.mxu3  ;;  %5865 = vmatmul.msk.f32.gmra.mxu1 %vm2238_vm2, %v1977_v24  ;;  %v61_v24 = vld [vmem:[%s9251_s0 + $0xf8] sm:$0xff] }
  0xc9   :  { %v1231_v26 = vadd.f32 %v6647_v3, %v1230_v25  ;;  %v218_v25 = vld [vmem:[%s9251_s0 + $0x5e0] sm:$0xff] }
  0xca   :  { %v838_v29 = vpop.f32.mrf.mxu0 }
  0xcb   :  { %v839_v30 = vadd.f32 %v6647_v3, %v838_v29  ;;  %vm1623_vm3 = vcmp.gt.f32.partialorder %v1231_v26, 0.0  ;;  %v1879_v31 = vmul.f32 0.01, %v1231_v26 }
  0xcd   :  { %v1722_v32 = vmul.f32 0.01, %v839_v30  ;;  %5742 = vmatmul.msk.bf16.gmra.mxu0 %vm424_vm0, %v302_v27  ;;  %5821 = vmatmul.msk.bf16.gmra.mxu3 %vm424_vm0, %v381_v28  ;;  %v2135_v33 = vsel %vm1623_vm3, %v1231_v26, %v1879_v31  ;;  %vm1466_vm4 = vcmp.gt.f32.partialorder %v839_v30, 0.0  ;;  %v219_v26 = vld [vmem:[%s9251_s0 + $0x5e8] sm:$0xff] }
  0xce   :  { %6023 = vmatmul.msk.f32.gmra.mxu2 %vm2238_vm2, %v2135_v33  ;;  %v384_v31 = vpack.c.bf16 %v219_v26, %v218_v25 }
  0xcf   :  { %v1978_v34 = vsel %vm1466_vm4, %v839_v30, %v1722_v32  ;;  %v305_v30 = vpack.c.bf16 %v61_v24, %v60_v23 }
  0xd0   :  { %v1233_v35 = vpop.f32.mrf.mxu3  ;;  %5866 = vmatmul.msk.f32.gmra.mxu1 %vm2238_vm2, %v1978_v34 }
  0xd1   :  { %v1234_v36 = vadd.f32 %v6647_v3, %v1233_v35 }
  0xd2   :  { %v840_v37 = vpop.f32.mrf.mxu0 }
  0xd3   :  { %v1880_v38 = vmul.f32 0.01, %v1234_v36  ;;  %v841_v39 = vadd.f32 %v6647_v3, %v840_v37  ;;  %vm1624_vm5 = vcmp.gt.f32.partialorder %v1234_v36, 0.0 }
  0xd5   :  { %v2136_v40 = vsel %vm1624_vm5, %v1234_v36, %v1880_v38  ;;  %vm1467_vm6 = vcmp.gt.f32.partialorder %v841_v39, 0.0  ;;  %v1723_v41 = vmul.f32 0.01, %v841_v39 }
  0xd6   :  { %6024 = vmatmul.msk.f32.gmra.mxu2 %vm2238_vm2, %v2136_v40 }
  0xd7   :  { %v1979_v46 = vsel %vm1467_vm6, %v841_v39, %v1723_v41 }
  0xd8   :  { %v1235_v47 = vpop.f32.mrf.mxu3  ;;  %5867 = vmatmul.msk.f32.gmra.mxu1 %vm2238_vm2, %v1979_v46  ;;  %v63_v46 = vld [vmem:[%s9251_s0 + $0x108] sm:$0xff] }
  0xd9   :  { %v1236_v48 = vadd.f32 %v6647_v3, %v1235_v47  ;;  %v220_v47 = vld [vmem:[%s9251_s0 + $0x5f0] sm:$0xff] }
  0xda   :  { %v843_v51 = vpop.f32.mrf.mxu0 }
  0xdb   :  { %v844_v52 = vadd.f32 %v6647_v3, %v843_v51  ;;  %vm1625_vm7 = vcmp.gt.f32.partialorder %v1236_v48, 0.0  ;;  %v1881_v53 = vmul.f32 0.01, %v1236_v48 }
  0xdd   :  { %v1724_v54 = vmul.f32 0.01, %v844_v52  ;;  %5743 = vmatmul.msk.bf16.gmra.mxu0 %vm424_vm0, %v303_v49  ;;  %5822 = vmatmul.msk.bf16.gmra.mxu3 %vm424_vm0, %v382_v50  ;;  %v2137_v55 = vsel %vm1625_vm7, %v1236_v48, %v1881_v53  ;;  %vm1468_vm8 = vcmp.gt.f32.partialorder %v844_v52, 0.0  ;;  %v221_v48 = vld [vmem:[%s9251_s0 + $0x5f8] sm:$0xff] }
  0xde   :  { %6025 = vmatmul.msk.f32.gmra.mxu2 %vm2238_vm2, %v2137_v55  ;;  %v385_v53 = vpack.c.bf16 %v221_v48, %v220_v47 }
  0xdf   :  { %v1980_v56 = vsel %vm1468_vm8, %v844_v52, %v1724_v54  ;;  %v306_v52 = vpack.c.bf16 %v63_v46, %v62_v45 }
  0xe0   :  { %v1238_v57 = vpop.f32.mrf.mxu3  ;;  %5868 = vmatmul.msk.f32.gmra.mxu1 %vm2238_vm2, %v1980_v56 }
  0xe1   :  { %v1239_v58 = vadd.f32 %v6647_v3, %v1238_v57 }
  0xe2   :  { %v845_v59 = vpop.f32.mrf.mxu0 }
  0xe3   :  { %v1882_v60 = vmul.f32 0.01, %v1239_v58  ;;  %v846_v61 = vadd.f32 %v6647_v3, %v845_v59  ;;  %vm1626_vm9 = vcmp.gt.f32.partialorder %v1239_v58, 0.0 }
  0xe5   :  { %v2138_v62 = vsel %vm1626_vm9, %v1239_v58, %v1882_v60  ;;  %vm1469_vm10 = vcmp.gt.f32.partialorder %v846_v61, 0.0  ;;  %v1725_v63 = vmul.f32 0.01, %v846_v61 }
  0xe6   :  { %6026 = vmatmul.msk.f32.gmra.mxu2 %vm2238_vm2, %v2138_v62 }
  0xe7   :  { %v1981_v5 = vsel %vm1469_vm10, %v846_v61, %v1725_v63 }
  0xe8   :  { %v1240_v6 = vpop.f32.mrf.mxu3  ;;  %5869 = vmatmul.msk.f32.gmra.mxu1 %vm2238_vm2, %v1981_v5 }
  0xe9   :  { %v1241_v7 = vadd.f32 %v6647_v3, %v1240_v6  ;;  %v64_v6 = vld [vmem:[%s9251_s0 + $0x110] sm:$0xff] }
  0xea   :  { %v848_v10 = vpop.f32.mrf.mxu0 }
  0xeb   :  { %v849_v11 = vadd.f32 %v6647_v3, %v848_v10  ;;  %vm1627_vm11 = vcmp.gt.f32.partialorder %v1241_v7, 0.0  ;;  %v1883_v12 = vmul.f32 0.01, %v1241_v7 }
  0xed   :  { %v1726_v13 = vmul.f32 0.01, %v849_v11  ;;  %5744 = vmatmul.msk.bf16.gmra.mxu0 %vm424_vm0, %v304_v8  ;;  %5823 = vmatmul.msk.bf16.gmra.mxu3 %vm424_vm0, %v383_v9  ;;  %v2139_v14 = vsel %vm1627_vm11, %v1241_v7, %v1883_v12  ;;  %vm1470_vm12 = vcmp.gt.f32.partialorder %v849_v11, 0.0  ;;  %v65_v7 = vld [vmem:[%s9251_s0 + $0x118] sm:$0xff]  ;;  %v222_v8 = vld [vmem:[%s9251_s0 + $0x600] sm:$0xff]  ;;  %v223_v9 = vld [vmem:[%s9251_s0 + $0x608] sm:$0xff] }
  0xee   :  { %6027 = vmatmul.msk.f32.gmra.mxu2 %vm2238_vm2, %v2139_v14  ;;  %v386_v14 = vpack.c.bf16 %v223_v9, %v222_v8 }
  0xef   :  { %v1982_v15 = vsel %vm1470_vm12, %v849_v11, %v1726_v13  ;;  %v307_v13 = vpack.c.bf16 %v65_v7, %v64_v6 }
  0xf0   :  { %v1243_v16 = vpop.f32.mrf.mxu3  ;;  %5870 = vmatmul.msk.f32.gmra.mxu1 %vm2238_vm2, %v1982_v15 }
  0xf1   :  { %v1244_v17 = vadd.f32 %v6647_v3, %v1243_v16 }
  0xf2   :  { %v850_v18 = vpop.f32.mrf.mxu0 }
  0xf3   :  { %v1884_v19 = vmul.f32 0.01, %v1244_v17  ;;  %v851_v20 = vadd.f32 %v6647_v3, %v850_v18  ;;  %vm1628_vm13 = vcmp.gt.f32.partialorder %v1244_v17, 0.0 }
  0xf5   :  { %v2140_v21 = vsel %vm1628_vm13, %v1244_v17, %v1884_v19  ;;  %vm1471_vm14 = vcmp.gt.f32.partialorder %v851_v20, 0.0  ;;  %v1727_v22 = vmul.f32 0.01, %v851_v20 }
  0xf6   :  { %6028 = vmatmul.msk.f32.gmra.mxu2 %vm2238_vm2, %v2140_v21 }
  0xf7   :  { %v1983_v27 = vsel %vm1471_vm14, %v851_v20, %v1727_v22 }
  0xf8   :  { %v1245_v28 = vpop.f32.mrf.mxu3  ;;  %5871 = vmatmul.msk.f32.gmra.mxu1 %vm2238_vm2, %v1983_v27 }
  0xf9   :  { %v1246_v29 = vadd.f32 %v6647_v3, %v1245_v28 }
  0xfa   :  { %v853_v32 = vpop.f32.mrf.mxu0 }
  0xfb   :  { %v854_v33 = vadd.f32 %v6647_v3, %v853_v32  ;;  %vm1629_vm15 = vcmp.gt.f32.partialorder %v1246_v29, 0.0  ;;  %v1885_v34 = vmul.f32 0.01, %v1246_v29  ;;  %v224_v32 = vld [vmem:[%s9251_s0 + $0x610] sm:$0xff] }
  0xfd   :  { %v1728_v35 = vmul.f32 0.01, %v854_v33  ;;  %5745 = vmatmul.msk.bf16.gmra.mxu0 %vm424_vm0, %v305_v30  ;;  %5824 = vmatmul.msk.bf16.gmra.mxu3 %vm424_vm0, %v384_v31  ;;  %v2141_v36 = vsel %vm1629_vm15, %v1246_v29, %v1885_v34  ;;  %vm1472_vm1 = vcmp.gt.f32.partialorder %v854_v33, 0.0  ;;  %v66_v30 = vld [vmem:[%s9251_s0 + $0x120] sm:$0xff]  ;;  %v67_v31 = vld [vmem:[%s9251_s0 + $0x128] sm:$0xff] }
  0xfe   :  { %6029 = vmatmul.msk.f32.gmra.mxu2 %vm2238_vm2, %v2141_v36 }
  0xff   :  { %v1984_v37 = vsel %vm1472_vm1, %v854_v33, %v1728_v35  ;;  %v225_v33 = vld [vmem:[%s9251_s0 + $0x618] sm:$0xff] }
 0x100   :  { %v1248_v38 = vpop.f32.mrf.mxu3  ;;  %5872 = vmatmul.msk.f32.gmra.mxu1 %vm2238_vm2, %v1984_v37  ;;  %v308_v37 = vpack.c.bf16 %v67_v31, %v66_v30 }
 0x101   :  { %v1249_v39 = vadd.f32 %v6647_v3, %v1248_v38  ;;  %v387_v38 = vpack.c.bf16 %v225_v33, %v224_v32 }
 0x102   :  { %v855_v40 = vpop.f32.mrf.mxu0 }
 0x103   :  { %v1886_v41 = vmul.f32 0.01, %v1249_v39  ;;  %v856_v42 = vadd.f32 %v6647_v3, %v855_v40  ;;  %vm1630_vm3 = vcmp.gt.f32.partialorder %v1249_v39, 0.0 }
 0x105   :  { %v2142_v43 = vsel %vm1630_vm3, %v1249_v39, %v1886_v41  ;;  %vm1473_vm4 = vcmp.gt.f32.partialorder %v856_v42, 0.0  ;;  %v1729_v44 = vmul.f32 0.01, %v856_v42 }
 0x106   :  { %6030 = vmatmul.msk.f32.gmra.mxu2 %vm2238_vm2, %v2142_v43 }
 0x107   :  { %v1985_v49 = vsel %vm1473_vm4, %v856_v42, %v1729_v44 }
 0x108   :  { %v1250_v50 = vpop.f32.mrf.mxu3  ;;  %5873 = vmatmul.msk.f32.gmra.mxu1 %vm2238_vm2, %v1985_v49 }
 0x109   :  { %v1251_v51 = vadd.f32 %v6647_v3, %v1250_v50 }
 0x10a   :  { %v858_v54 = vpop.f32.mrf.mxu0 }
 0x10b   :  { %v859_v55 = vadd.f32 %v6647_v3, %v858_v54  ;;  %vm1631_vm5 = vcmp.gt.f32.partialorder %v1251_v51, 0.0  ;;  %v1887_v56 = vmul.f32 0.01, %v1251_v51  ;;  %v68_v54 = vld [vmem:[%s9251_s0 + $0x130] sm:$0xff] }
 0x10d   :  { %v1730_v57 = vmul.f32 0.01, %v859_v55  ;;  %5746 = vmatmul.msk.bf16.gmra.mxu0 %vm424_vm0, %v306_v52  ;;  %5825 = vmatmul.msk.bf16.gmra.mxu3 %vm424_vm0, %v385_v53  ;;  %v6827_v58 = vpop.f32.mrf.mxu1  ;;  %v2143_v59 = vsel %vm1631_vm5, %v1251_v51, %v1887_v56  ;;  %vm1474_vm6 = vcmp.gt.f32.partialorder %v859_v55, 0.0  ;;  %v226_v56 = vld [vmem:[%s9251_s0 + $0x620] sm:$0xff] }
 0x10e   :  { %6031 = vmatmul.msk.f32.gmra.mxu2 %vm2238_vm2, %v2143_v59 }
 0x10f   :  { %v1986_v60 = vsel %vm1474_vm6, %v859_v55, %v1730_v57  ;;  %v69_v55 = vld [vmem:[%s9251_s0 + $0x138] sm:$0xff]  ;;  %v227_v57 = vld [vmem:[%s9251_s0 + $0x628] sm:$0xff] }
 0x110   :  { %v1253_v61 = vpop.f32.mrf.mxu3  ;;  %5874 = vmatmul.msk.f32.gmra.mxu1 %vm2238_vm2, %v1986_v60 }
 0x111   :  { %v1254_v62 = vadd.f32 %v6647_v3, %v1253_v61 }
 0x112   :  { %v860_v63 = vpop.f32.mrf.mxu0 }
 0x113   :  { %v1888_v0 = vmul.f32 0.01, %v1254_v62  ;;  %v861_v1 = vadd.f32 %v6647_v3, %v860_v63  ;;  %vm1632_vm7 = vcmp.gt.f32.partialorder %v1254_v62, 0.0  ;;  %v309_v63 = vpack.c.bf16 %v69_v55, %v68_v54 }
 0x115   :  { %v6833_v2 = vpop.f32.mrf.mxu1  ;;  %v2144_v4 = vsel %vm1632_vm7, %v1254_v62, %v1888_v0  ;;  %vm1475_vm8 = vcmp.gt.f32.partialorder %v861_v1, 0.0  ;;  %v1731_v5 = vmul.f32 0.01, %v861_v1  ;;  %v388_v0 = vpack.c.bf16 %v227_v57, %v226_v56 }
 0x116   :  { %6032 = vmatmul.msk.f32.gmra.mxu2 %vm2238_vm2, %v2144_v4 }
 0x117   :  { %v1987_v10 = vsel %vm1475_vm8, %v861_v1, %v1731_v5 }
 0x118   :  { %v1255_v11 = vpop.f32.mrf.mxu3  ;;  %5875 = vmatmul.msk.f32.gmra.mxu1 %vm2238_vm2, %v1987_v10 }
 0x119   :  { %v1256_v12 = vadd.f32 %v6647_v3, %v1255_v11  ;;  %v6900_v59 = vpop.f32.mrf.mxu2 }
 0x11a   :  { %v863_v15 = vpop.f32.mrf.mxu0 }
 0x11b   :  { %v864_v16 = vadd.f32 %v6647_v3, %v863_v15  ;;  %vm1633_vm9 = vcmp.gt.f32.partialorder %v1256_v12, 0.0  ;;  %v1889_v17 = vmul.f32 0.01, %v1256_v12 }
 0x11d   :  { %v1732_v18 = vmul.f32 0.01, %v864_v16  ;;  %5747 = vmatmul.msk.bf16.gmra.mxu0 %vm424_vm0, %v307_v13  ;;  %5826 = vmatmul.msk.bf16.gmra.mxu3 %vm424_vm0, %v386_v14  ;;  %v6853_v19 = vpop.f32.mrf.mxu1  ;;  %v2145_v20 = vsel %vm1633_vm9, %v1256_v12, %v1889_v17  ;;  %vm1476_vm10 = vcmp.gt.f32.partialorder %v864_v16, 0.0 }
 0x11e   :  { %6033 = vmatmul.msk.f32.gmra.mxu2 %vm2238_vm2, %v2145_v20  ;;  %v70_v20 = vld [vmem:[%s9251_s0 + $0x140] sm:$0xff] }
 0x11f   :  { %v1988_v21 = vsel %vm1476_vm10, %v864_v16, %v1732_v18 }
 0x120   :  { %v1258_v22 = vpop.f32.mrf.mxu3  ;;  %5876 = vmatmul.msk.f32.gmra.mxu1 %vm2238_vm2, %v1988_v21  ;;  %v71_v21 = vld [vmem:[%s9251_s0 + $0x148] sm:$0xff] }
 0x121   :  { %v1259_v23 = vadd.f32 %v6647_v3, %v1258_v22  ;;  %v6910_v9 = vpop.f32.mrf.mxu2  ;;  %v228_v22 = vld [vmem:[%s9251_s0 + $0x630] sm:$0xff] }
 0x122   :  { %v865_v24 = vpop.f32.mrf.mxu0 }
 0x123   :  { %v1890_v25 = vmul.f32 0.01, %v1259_v23  ;;  %v866_v26 = vadd.f32 %v6647_v3, %v865_v24  ;;  %vm1634_vm11 = vcmp.gt.f32.partialorder %v1259_v23, 0.0 }
 0x125   :  { %v6859_v27 = vpop.f32.mrf.mxu1  ;;  %v2146_v28 = vsel %vm1634_vm11, %v1259_v23, %v1890_v25  ;;  %vm1477_vm12 = vcmp.gt.f32.partialorder %v866_v26, 0.0  ;;  %v1733_v29 = vmul.f32 0.01, %v866_v26  ;;  %v229_v23 = vld [vmem:[%s9251_s0 + $0x638] sm:$0xff] }
 0x126   :  { %6034 = vmatmul.msk.f32.gmra.mxu2 %vm2238_vm2, %v2146_v28  ;;  %v389_v30 = vpack.c.bf16 %v229_v23, %v228_v22  ;;  %v233_v22 = vld [vmem:[%s9251_s0 + $0x658] sm:$0xff] }
 0x127   :  { %v1989_v34 = vsel %vm1477_vm12, %v866_v26, %v1733_v29  ;;  %v310_v29 = vpack.c.bf16 %v71_v21, %v70_v20  ;;  %v75_v20 = vld [vmem:[%s9251_s0 + $0x168] sm:$0xff]  ;;  %v232_v21 = vld [vmem:[%s9251_s0 + $0x650] sm:$0xff] }
 0x128   :  { %v1260_v35 = vpop.f32.mrf.mxu3  ;;  %5877 = vmatmul.msk.f32.gmra.mxu1 %vm2238_vm2, %v1989_v34 }
 0x129   :  { %v1261_v36 = vadd.f32 %v6647_v3, %v1260_v35  ;;  %v6930_v24 = vpop.f32.mrf.mxu2 }
 0x12a   :  { %v868_v39 = vpop.f32.mrf.mxu0 }
 0x12b   :  { %v869_v40 = vadd.f32 %v6647_v3, %v868_v39  ;;  %vm1635_vm13 = vcmp.gt.f32.partialorder %v1261_v36, 0.0  ;;  %v1891_v41 = vmul.f32 0.01, %v1261_v36 }
 0x12d   :  { %v1734_v42 = vmul.f32 0.01, %v869_v40  ;;  %5748 = vmatmul.msk.bf16.gmra.mxu0 %vm424_vm0, %v308_v37  ;;  %5827 = vmatmul.msk.bf16.gmra.mxu3 %vm424_vm0, %v387_v38  ;;  %v6879_v43 = vpop.f32.mrf.mxu1  ;;  %v2147_v44 = vsel %vm1635_vm13, %v1261_v36, %v1891_v41  ;;  %vm1478_vm14 = vcmp.gt.f32.partialorder %v869_v40, 0.0 }
 0x12e   :  { %6035 = vmatmul.msk.f32.gmra.mxu2 %vm2238_vm2, %v2147_v44 }
 0x12f   :  { %v1990_v45 = vsel %vm1478_vm14, %v869_v40, %v1734_v42 }
 0x130   :  { %v1263_v46 = vpop.f32.mrf.mxu3  ;;  %5878 = vmatmul.msk.f32.gmra.mxu1 %vm2238_vm2, %v1990_v45 }
 0x131   :  { %v1264_v47 = vadd.f32 %v6647_v3, %v1263_v46  ;;  %v6940_v37 = vpop.f32.mrf.mxu2 }
 0x132   :  { %v870_v48 = vpop.f32.mrf.mxu0 }
 0x133   :  { %v1892_v49 = vmul.f32 0.01, %v1264_v47  ;;  %v871_v50 = vadd.f32 %v6647_v3, %v870_v48  ;;  %vm1636_vm15 = vcmp.gt.f32.partialorder %v1264_v47, 0.0  ;;  %v72_v48 = vld [vmem:[%s9251_s0 + $0x150] sm:$0xff] }
 0x135   :  { %v6885_v51 = vpop.f32.mrf.mxu1  ;;  %v2148_v52 = vsel %vm1636_vm15, %v1264_v47, %v1892_v49  ;;  %vm1479_vm1 = vcmp.gt.f32.partialorder %v871_v50, 0.0  ;;  %v1735_v53 = vmul.f32 0.01, %v871_v50  ;;  %v73_v49 = vld [vmem:[%s9251_s0 + $0x158] sm:$0xff] }
 0x136   :  { %6036 = vmatmul.msk.f32.gmra.mxu2 %vm2238_vm2, %v2148_v52  ;;  %v231_v52 = vld [vmem:[%s9251_s0 + $0x648] sm:$0xff]  ;;  %v311_v57 = vpack.c.bf16 %v73_v49, %v72_v48 }
 0x137   :  { %v1991_v60 = vsel %vm1479_vm1, %v871_v50, %v1735_v53  ;;  %v230_v50 = vld [vmem:[%s9251_s0 + $0x640] sm:$0xff] }
 0x138   :  { %v1265_v61 = vpop.f32.mrf.mxu3  ;;  %5879 = vmatmul.msk.f32.gmra.mxu1 %vm2238_vm2, %v1991_v60  ;;  %v390_v60 = vpack.c.bf16 %v231_v52, %v230_v50  ;;  %v76_v52 = vld [vmem:[%s9251_s0 + $0x170] sm:$0xff] }
 0x139   :  { %v1266_v62 = vadd.f32 %v6647_v3, %v1265_v61  ;;  %v6960_v53 = vpop.f32.mrf.mxu2 }
 0x13a   :  { %v873_v1 = vpop.f32.mrf.mxu0 }
 0x13b   :  { %v874_v4 = vadd.f32 %v6647_v3, %v873_v1  ;;  %vm1637_vm3 = vcmp.gt.f32.partialorder %v1266_v62, 0.0  ;;  %v1893_v5 = vmul.f32 0.01, %v1266_v62 }
 0x13d   :  { %v1736_v6 = vmul.f32 0.01, %v874_v4  ;;  %5749 = vmatmul.msk.bf16.gmra.mxu0 %vm424_vm0, %v309_v63  ;;  %5828 = vmatmul.msk.bf16.gmra.mxu3 %vm424_vm0, %v388_v0  ;;  %v6907_v7 = vpop.f32.mrf.mxu1  ;;  %v2149_v8 = vsel %vm1637_vm3, %v1266_v62, %v1893_v5  ;;  %vm1480_vm4 = vcmp.gt.f32.partialorder %v874_v4, 0.0 }
 0x13e   :  { %6037 = vmatmul.msk.f32.gmra.mxu2 %vm2238_vm2, %v2149_v8 }
 0x13f   :  { %v1992_v10 = vsel %vm1480_vm4, %v874_v4, %v1736_v6 }
 0x140   :  { %v1268_v11 = vpop.f32.mrf.mxu3  ;;  %5880 = vmatmul.msk.f32.gmra.mxu1 %vm2238_vm2, %v1992_v10 }
 0x141   :  { %v1269_v12 = vadd.f32 %v6647_v3, %v1268_v11  ;;  %v6970_v5 = vpop.f32.mrf.mxu2 }
 0x142   :  { %v875_v13 = vpop.f32.mrf.mxu0 }
 0x143   :  { %v1894_v14 = vmul.f32 0.01, %v1269_v12  ;;  %v876_v15 = vadd.f32 %v6647_v3, %v875_v13  ;;  %vm1638_vm5 = vcmp.gt.f32.partialorder %v1269_v12, 0.0 }
 0x145   :  { %v6915_v16 = vpop.f32.mrf.mxu1  ;;  %v2150_v17 = vsel %vm1638_vm5, %v1269_v12, %v1894_v14  ;;  %vm1481_vm6 = vcmp.gt.f32.partialorder %v876_v15, 0.0  ;;  %v1737_v18 = vmul.f32 0.01, %v876_v15 }
 0x146   :  { %6038 = vmatmul.msk.f32.gmra.mxu2 %vm2238_vm2, %v2150_v17 }
 0x147   :  { %v1993_v25 = vsel %vm1481_vm6, %v876_v15, %v1737_v18  ;;  %v74_v18 = vld [vmem:[%s9251_s0 + $0x160] sm:$0xff] }
 0x148   :  { %v1270_v26 = vpop.f32.mrf.mxu3  ;;  %5881 = vmatmul.msk.f32.gmra.mxu1 %vm2238_vm2, %v1993_v25 }
 0x149   :  { %v1271_v28 = vadd.f32 %v6647_v3, %v1270_v26  ;;  %v6990_v23 = vpop.f32.mrf.mxu2 }
 0x14a   :  { %v878_v31 = vpop.f32.mrf.mxu0 }
 0x14b   :  { %v879_v32 = vadd.f32 %v6647_v3, %v878_v31  ;;  %vm1639_vm7 = vcmp.gt.f32.partialorder %v1271_v28, 0.0  ;;  %v1895_v33 = vmul.f32 0.01, %v1271_v28 }
 0x14d   :  { %vm1482_vm8 = vcmp.gt.f32.partialorder %v879_v32, 0.0  ;;  %v1738_v34 = vmul.f32 0.01, %v879_v32  ;;  %5750 = vmatmul.msk.bf16.gmra.mxu0 %vm424_vm0, %v310_v29  ;;  %5829 = vmatmul.msk.bf16.gmra.mxu3 %vm424_vm0, %v389_v30  ;;  %v6937_v35 = vpop.f32.mrf.mxu1  ;;  %v2151_v36 = vsel %vm1639_vm7, %v1271_v28, %v1895_v33  ;;  %v312_v29 = vpack.c.bf16 %v75_v20, %v74_v18 }
 0x14e   :  { %6039 = vmatmul.msk.f32.gmra.mxu2 %vm2238_vm2, %v2151_v36  ;;  %v391_v30 = vpack.c.bf16 %v233_v22, %v232_v21 }
 0x14f   :  { %v1994_v38 = vsel %vm1482_vm8, %v879_v32, %v1738_v34 }
 0x150   :  { %v1273_v39 = vpop.f32.mrf.mxu3  ;;  %5882 = vmatmul.msk.f32.gmra.mxu1 %vm2238_vm2, %v1994_v38 }
 0x151   :  { %v1274_v40 = vadd.f32 %v6647_v3, %v1273_v39  ;;  %v7000_v39 = vpop.f32.mrf.mxu2 }
 0x152   :  { %v880_v41 = vpop.f32.mrf.mxu0 }
 0x153   :  { %vm1640_vm9 = vcmp.gt.f32.partialorder %v1274_v40, 0.0  ;;  %v1896_v42 = vmul.f32 0.01, %v1274_v40  ;;  %v881_v44 = vadd.f32 %v6647_v3, %v880_v41 }
 0x155   :  { %v1739_v45 = vmul.f32 0.01, %v881_v44  ;;  %v6945_v46 = vpop.f32.mrf.mxu1  ;;  %v2152_v47 = vsel %vm1640_vm9, %v1274_v40, %v1896_v42  ;;  %vm1483_vm10 = vcmp.gt.f32.partialorder %v881_v44, 0.0 }
 0x156   :  { %6040 = vmatmul.msk.f32.gmra.mxu2 %vm2238_vm2, %v2152_v47 }
 0x157   :  { %v1995_v54 = vsel %vm1483_vm10, %v881_v44, %v1739_v45 }
 0x158   :  { %v1275_v55 = vpop.f32.mrf.mxu3  ;;  %5883 = vmatmul.msk.f32.gmra.mxu1 %vm2238_vm2, %v1995_v54  ;;  %v77_v54 = vld [vmem:[%s9251_s0 + $0x178] sm:$0xff] }
 0x159   :  { %v1276_v56 = vadd.f32 %v6647_v3, %v1275_v55  ;;  %v234_v55 = vld [vmem:[%s9251_s0 + $0x660] sm:$0xff] }
 0x15a   :  { %v883_v61 = vpop.f32.mrf.mxu0 }
 0x15b   :  { %v1897_v62 = vmul.f32 0.01, %v1276_v56  ;;  %v884_v63 = vadd.f32 %v6647_v3, %v883_v61  ;;  %vm1641_vm11 = vcmp.gt.f32.partialorder %v1276_v56, 0.0 }
 0x15d   :  { %vm1484_vm12 = vcmp.gt.f32.partialorder %v884_v63, 0.0  ;;  %v1740_v0 = vmul.f32 0.01, %v884_v63  ;;  %5751 = vmatmul.msk.bf16.gmra.mxu0 %vm424_vm0, %v311_v57  ;;  %5830 = vmatmul.msk.bf16.gmra.mxu3 %vm424_vm0, %v390_v60  ;;  %v6967_v1 = vpop.f32.mrf.mxu1  ;;  %v2153_v4 = vsel %vm1641_vm11, %v1276_v56, %v1897_v62  ;;  %v235_v56 = vld [vmem:[%s9251_s0 + $0x668] sm:$0xff]  ;;  %v7018_v57 = vpop.f32.mrf.mxu2 }
 0x15e   :  { %6041 = vmatmul.msk.f32.gmra.mxu2 %vm2238_vm2, %v2153_v4 }
 0x15f   :  { %v1996_v6 = vsel %vm1484_vm12, %v884_v63, %v1740_v0  ;;  %v313_v63 = vpack.c.bf16 %v77_v54, %v76_v52  ;;  %v392_v0 = vpack.c.bf16 %v235_v56, %v234_v55 }
 0x160   :  { %v1278_v8 = vpop.f32.mrf.mxu3  ;;  %5884 = vmatmul.msk.f32.gmra.mxu1 %vm2238_vm2, %v1996_v6 }
 0x161   :  { %v1279_v10 = vadd.f32 %v6647_v3, %v1278_v8 }
 0x162   :  { %v885_v11 = vpop.f32.mrf.mxu0 }
 0x163   :  { %vm1642_vm13 = vcmp.gt.f32.partialorder %v1279_v10, 0.0  ;;  %v1898_v12 = vmul.f32 0.01, %v1279_v10  ;;  %v886_v13 = vadd.f32 %v6647_v3, %v885_v11 }
 0x165   :  { %v1741_v14 = vmul.f32 0.01, %v886_v13  ;;  %v6975_v15 = vpop.f32.mrf.mxu1  ;;  %v2154_v17 = vsel %vm1642_vm13, %v1279_v10, %v1898_v12  ;;  %vm1485_vm14 = vcmp.gt.f32.partialorder %v886_v13, 0.0 }
 0x166   :  { %6042 = vmatmul.msk.f32.gmra.mxu2 %vm2238_vm2, %v2154_v17 }
 0x167   :  { %v1997_v25 = vsel %vm1485_vm14, %v886_v13, %v1741_v14  ;;  %v7026_v13 = vpop.f32.mrf.mxu2 }
 0x168   :  { %v1280_v26 = vpop.f32.mrf.mxu3  ;;  %5885 = vmatmul.msk.f32.gmra.mxu1 %vm2238_vm2, %v1997_v25  ;;  %v7039_v25 = vld [vmem:[%s9255_s4] ss:$0 sm:$0xff] }
 0x169   :  { %v1281_v28 = vadd.f32 %v6647_v3, %v1280_v26 }
 0x16a   :  { %v888_v31 = vpop.f32.mrf.mxu0 }
 0x16b   :  { %v1899_v32 = vmul.f32 0.01, %v1281_v28  ;;  %v889_v33 = vadd.f32 %v6647_v3, %v888_v31  ;;  %vm1643_vm15 = vcmp.gt.f32.partialorder %v1281_v28, 0.0 }
 0x16d   :  { %vm1486_vm1 = vcmp.gt.f32.partialorder %v889_v33, 0.0  ;;  %v1742_v34 = vmul.f32 0.01, %v889_v33  ;;  %5752 = vmatmul.msk.bf16.gmra.mxu0 %vm424_vm0, %v312_v29  ;;  %5831 = vmatmul.msk.bf16.gmra.mxu3 %vm424_vm0, %v391_v30  ;;  %v6997_v36 = vpop.f32.mrf.mxu1  ;;  %v2155_v38 = vsel %vm1643_vm15, %v1281_v28, %v1899_v32  ;;  %v78_v30 = vld [vmem:[%s9251_s0 + $0x180] sm:$0xff] }
 0x16e   :  { %6043 = vmatmul.msk.f32.gmra.mxu2 %vm2238_vm2, %v2155_v38  ;;  %v237_v38 = vld [vmem:[%s9251_s0 + $0x678] sm:$0xff] }
 0x16f   :  { %v1998_v40 = vsel %vm1486_vm1, %v889_v33, %v1742_v34  ;;  %v79_v33 = vld [vmem:[%s9251_s0 + $0x188] sm:$0xff]  ;;  %v236_v34 = vld [vmem:[%s9251_s0 + $0x670] sm:$0xff] }
 0x170   :  { %v1283_v41 = vpop.f32.mrf.mxu3  ;;  %5886 = vmatmul.msk.f32.gmra.mxu1 %vm2238_vm2, %v1998_v40  ;;  %v7056_v40 = vpop.f32.mrf.mxu2 }
 0x171   :  { %v1284_v42 = vadd.f32 %v6647_v3, %v1283_v41 }
 0x172   :  { %v890_v44 = vpop.f32.mrf.mxu0 }
 0x173   :  { %vm1644_vm3 = vcmp.gt.f32.partialorder %v1284_v42, 0.0  ;;  %v1900_v45 = vmul.f32 0.01, %v1284_v42  ;;  %v891_v47 = vadd.f32 %v6647_v3, %v890_v44 }
 0x175   :  { %v1743_v48 = vmul.f32 0.01, %v891_v47  ;;  %v3063_v49 = vpop.f32.mrf.mxu1  ;;  %v2156_v50 = vsel %vm1644_vm3, %v1284_v42, %v1900_v45  ;;  %vm1487_vm4 = vcmp.gt.f32.partialorder %v891_v47, 0.0 }
 0x176   :  { %6044 = vmatmul.msk.f32.gmra.mxu2 %vm2238_vm2, %v2156_v50  ;;  %v3064_v50 = vadd.f32 %v7039_v25, %v3063_v49  ;;  %v3061_v49 = vadd.f32 %v7039_v25, %v6997_v36 }
 0x177   :  { %v1999_v60 = vsel %vm1487_vm4, %v891_v47, %v1743_v48  ;;  %v314_v47 = vpack.c.bf16 %v79_v33, %v78_v30  ;;  %v393_v48 = vpack.c.bf16 %v237_v38, %v236_v34  ;;  %v239_v33 = vld [vmem:[%s9251_s0 + $0x688] sm:$0xff] }
 0x178   :  { %v1285_v61 = vpop.f32.mrf.mxu3  ;;  %5887 = vmatmul.msk.f32.gmra.mxu1 %vm2238_vm2, %v1999_v60  ;;  %vm3805_vm13 = vcmp.gt.f32.partialorder %v3064_v50, 0.0  ;;  %vm3804_vm15 = vcmp.gt.f32.partialorder %v3061_v49, 0.0 }
 0x179   :  { %v1286_v62 = vadd.f32 %v6647_v3, %v1285_v61 }
 0x17a   :  { %v893_v4 = vpop.f32.mrf.mxu0 }
 0x17b   :  { %v1901_v6 = vmul.f32 0.01, %v1286_v62  ;;  %v894_v8 = vadd.f32 %v6647_v3, %v893_v4  ;;  %vm1645_vm5 = vcmp.gt.f32.partialorder %v1286_v62, 0.0  ;;  %v7032_v3 = vld [vmem:[%s9253_s2] ss:$0 sm:$0xff] }
 0x17c   :  { %v4061_v4 = vmul.f32 0.01, %v3064_v50 }
 0x17d   :  { %vm1488_vm6 = vcmp.gt.f32.partialorder %v894_v8, 0.0  ;;  %v1744_v10 = vmul.f32 0.01, %v894_v8  ;;  %5753 = vmatmul.msk.bf16.gmra.mxu0 %vm424_vm0, %v313_v63  ;;  %5832 = vmatmul.msk.bf16.gmra.mxu3 %vm424_vm0, %v392_v0  ;;  %v3066_v11 = vpop.f32.mrf.mxu1  ;;  %v2157_v12 = vsel %vm1645_vm5, %v1286_v62, %v1901_v6  ;;  %v7070_v6 = vpop.f32.mrf.mxu2 }
 0x17e   :  { %6045 = vmatmul.msk.f32.gmra.mxu2 %vm2238_vm2, %v2157_v12  ;;  %v3067_v31 = vadd.f32 %v7039_v25, %v3066_v11  ;;  %v3058_v12 = vadd.f32 %v7039_v25, %v6975_v15  ;;  %v4317_v36 = vsel %vm3805_vm13, %v3064_v50, %v4061_v4  ;;  %v3055_v15 = vadd.f32 %v7039_v25, %v6967_v1 }
 0x17f   :  { %v2000_v14 = vsel %vm1488_vm6, %v894_v8, %v1744_v10 }
 0x180   :  { %v1288_v17 = vpop.f32.mrf.mxu3  ;;  %5888 = vmatmul.msk.f32.gmra.mxu1 %vm2238_vm2, %v2000_v14  ;;  %v4062_v55 = vmul.f32 0.01, %v3067_v31  ;;  %vm3806_vm11 = vcmp.gt.f32.partialorder %v3067_v31, 0.0  ;;  %v4059_v30 = vmul.f32 0.01, %v3058_v12  ;;  %vm3803_vm3 = vcmp.gt.f32.partialorder %v3058_v12, 0.0 }
 0x181   :  { %v1289_v18 = vadd.f32 %v7032_v3, %v1288_v17  ;;  %v4060_v17 = vmul.f32 0.01, %v3061_v49  ;;  %v4058_v50 = vmul.f32 0.01, %v3055_v15  ;;  %vm3802_vm5 = vcmp.gt.f32.partialorder %v3055_v15, 0.0 }
 0x182   :  { %v895_v20 = vpop.f32.mrf.mxu0  ;;  %v4318_v0 = vsel %vm3806_vm11, %v3067_v31, %v4062_v55  ;;  %v81_v31 = vld [vmem:[%s9251_s0 + $0x198] sm:$0xff] }
 0x183   :  { %vm1646_vm7 = vcmp.gt.f32.partialorder %v1289_v18, 0.0  ;;  %v1902_v21 = vmul.f32 0.01, %v1289_v18  ;;  %v896_v22 = vadd.f32 %v7032_v3, %v895_v20 }
 0x185   :  { %v1745_v26 = vmul.f32 0.01, %v896_v22  ;;  %v3069_v28 = vpop.f32.mrf.mxu1  ;;  %v2158_v29 = vsel %vm1646_vm7, %v1289_v18, %v1902_v21  ;;  %vm1489_vm8 = vcmp.gt.f32.partialorder %v896_v22, 0.0  ;;  %v7096_v34 = vpop.f32.mrf.mxu2 }
 0x186   :  { %v3070_v32 = vadd.f32 %v7039_v25, %v3069_v28  ;;  %6046 = vmatmul.msk.f32.gmra.mxu2 %vm2238_vm2, %v2158_v29  ;;  %v80_v28 = vld [vmem:[%s9251_s0 + $0x190] sm:$0xff]  ;;  %v4316_v29 = vsel %vm3804_vm15, %v3061_v49, %v4060_v17 }
 0x187   :  { %v2001_v41 = vsel %vm1489_vm8, %v896_v22, %v1745_v26 }
 0x188   :  { %v1290_v42 = vpop.f32.mrf.mxu3  ;;  %5889 = vmatmul.msk.f32.gmra.mxu1 %vm2238_vm2, %v2001_v41  ;;  %vm3807_vm9 = vcmp.gt.f32.partialorder %v3070_v32, 0.0  ;;  %v4063_v44 = vmul.f32 0.01, %v3070_v32 }
 0x189   :  { %v1291_v45 = vadd.f32 %v7032_v3, %v1290_v42  ;;  %v315_v42 = vpack.c.bf16 %v81_v31, %v80_v28 }
 0x18a   :  { %v898_v52 = vpop.f32.mrf.mxu0  ;;  %v4319_v54 = vsel %vm3807_vm9, %v3070_v32, %v4063_v44  ;;  %v238_v32 = vld [vmem:[%s9251_s0 + $0x680] sm:$0xff] }
 0x18b   :  { %v1903_v56 = vmul.f32 0.01, %v1291_v45  ;;  %v899_v60 = vadd.f32 %v7032_v3, %v898_v52  ;;  %6114 = vmatpush.xpose.msk.msrb.mxu2 %vm424_vm0, %v4319_v54  ;;  %vm1647_vm10 = vcmp.gt.f32.partialorder %v1291_v45, 0.0  ;;  %v394_v44 = vpack.c.bf16 %v239_v33, %v238_v32 }
 0x18d   :  { %vm1490_vm12 = vcmp.gt.f32.partialorder %v899_v60, 0.0  ;;  %v1746_v61 = vmul.f32 0.01, %v899_v60  ;;  %5754 = vmatmul.msk.bf16.gmra.mxu0 %vm424_vm0, %v314_v47  ;;  %5833 = vmatmul.msk.bf16.gmra.mxu3 %vm424_vm0, %v393_v48  ;;  %v7065_v62 = vpop.f32.mrf.mxu1  ;;  %v2159_v63 = vsel %vm1647_vm10, %v1291_v45, %v1903_v56  ;;  %v3052_v45 = vadd.f32 %v7039_v25, %v6945_v46  ;;  %v7112_v49 = vpop.f32.mrf.mxu2 }
 0x18e   :  { %6047 = vmatmul.msk.f32.gmra.mxu2 %vm2238_vm2, %v2159_v63  ;;  %v4315_v48 = vsel %vm3803_vm3, %v3058_v12, %v4059_v30  ;;  %v3049_v46 = vadd.f32 %v7039_v25, %v6937_v35  ;;  %v241_v30 = vld [vmem:[%s9251_s0 + $0x698] sm:$0xff] }
 0x18f   :  { %6115 = vmatpush.xpose.msk.msrb.mxu2 %vm424_vm0, %v4318_v0  ;;  %v2002_v8 = vsel %vm1490_vm12, %v899_v60, %v1746_v61  ;;  %v4314_v61 = vsel %vm3802_vm5, %v3055_v15, %v4058_v50  ;;  %v4057_v63 = vmul.f32 0.01, %v3052_v45  ;;  %vm3801_vm7 = vcmp.gt.f32.partialorder %v3052_v45, 0.0  ;;  %v83_v15 = vld [vmem:[%s9251_s0 + $0x1a8] sm:$0xff] }
 0x190   :  { %v1293_v10 = vpop.f32.mrf.mxu3  ;;  %5890 = vmatmul.msk.f32.gmra.mxu1 %vm2238_vm2, %v2002_v8  ;;  %v4056_v12 = vmul.f32 0.01, %v3049_v46  ;;  %vm3800_vm9 = vcmp.gt.f32.partialorder %v3049_v46, 0.0 }
 0x191   :  { %v1294_v11 = vadd.f32 %v7032_v3, %v1293_v10  ;;  %v3046_v10 = vadd.f32 %v7039_v25, %v6915_v16  ;;  %v4313_v35 = vsel %vm3801_vm7, %v3052_v45, %v4057_v63  ;;  %v3043_v16 = vadd.f32 %v7039_v25, %v6907_v7 }
 0x192   :  { %v900_v14 = vpop.f32.mrf.mxu0 }
 0x193   :  { %vm1648_vm14 = vcmp.gt.f32.partialorder %v1294_v11, 0.0  ;;  %v1904_v18 = vmul.f32 0.01, %v1294_v11  ;;  %v901_v20 = vadd.f32 %v7032_v3, %v900_v14  ;;  %6116 = vmatpush.xpose.msk.msrb.mxu2 %vm424_vm0, %v4317_v36  ;;  %v4055_v28 = vmul.f32 0.01, %v3046_v10 }
 0x194   :  { %vm3799_vm11 = vcmp.gt.f32.partialorder %v3046_v10, 0.0  ;;  %v4054_v45 = vmul.f32 0.01, %v3043_v16  ;;  %vm3798_vm13 = vcmp.gt.f32.partialorder %v3043_v16, 0.0 }
 0x195   :  { %v1747_v21 = vmul.f32 0.01, %v901_v20  ;;  %v7079_v22 = vpop.f32.mrf.mxu1  ;;  %v2160_v26 = vsel %vm1648_vm14, %v1294_v11, %v1904_v18  ;;  %vm1491_vm1 = vcmp.gt.f32.partialorder %v901_v20, 0.0  ;;  %v7138_v31 = vpop.f32.mrf.mxu2 }
 0x196   :  { %6048 = vmatmul.msk.f32.gmra.mxu2 %vm2238_vm2, %v2160_v26  ;;  %v4312_v26 = vsel %vm3800_vm9, %v3049_v46, %v4056_v12 }
 0x197   :  { %6117 = vmatpush.xpose.msk.msrb.mxu2 %vm424_vm0, %v4316_v29  ;;  %v2003_v1 = vsel %vm1491_vm1, %v901_v20, %v1747_v21  ;;  %v82_v21 = vld [vmem:[%s9251_s0 + $0x1a0] sm:$0xff]  ;;  %v240_v29 = vld [vmem:[%s9251_s0 + $0x690] sm:$0xff] }
 0x198   :  { %v1295_v38 = vpop.f32.mrf.mxu3  ;;  %5891 = vmatmul.msk.f32.gmra.mxu1 %vm2238_vm2, %v2003_v1  ;;  %v316_v1 = vpack.c.bf16 %v83_v15, %v82_v21 }
 0x199   :  { %v1296_v41 = vadd.f32 %v7032_v3, %v1295_v38  ;;  %v395_v38 = vpack.c.bf16 %v241_v30, %v240_v29 }
 0x19a   :  { %v903_v47 = vpop.f32.mrf.mxu0 }
 0x19b   :  { %v1905_v52 = vmul.f32 0.01, %v1296_v41  ;;  %v904_v54 = vadd.f32 %v7032_v3, %v903_v47  ;;  %6118 = vmatpush.xpose.msk.msrb.mxu2 %vm424_vm0, %v4315_v48  ;;  %vm1649_vm4 = vcmp.gt.f32.partialorder %v1296_v41, 0.0 }
 0x19d   :  { %vm1492_vm6 = vcmp.gt.f32.partialorder %v904_v54, 0.0  ;;  %v1748_v55 = vmul.f32 0.01, %v904_v54  ;;  %5755 = vmatmul.msk.bf16.gmra.mxu0 %vm424_vm0, %v315_v42  ;;  %5834 = vmatmul.msk.bf16.gmra.mxu3 %vm424_vm0, %v394_v44  ;;  %v7107_v56 = vpop.f32.mrf.mxu1  ;;  %v2161_v60 = vsel %vm1649_vm4, %v1296_v41, %v1905_v52  ;;  %v3040_v41 = vadd.f32 %v7039_v25, %v6885_v51  ;;  %v7154_v46 = vpop.f32.mrf.mxu2 }
 0x19e   :  { %6049 = vmatmul.msk.f32.gmra.mxu2 %vm2238_vm2, %v2161_v60  ;;  %v4311_v44 = vsel %vm3799_vm11, %v3046_v10, %v4055_v28  ;;  %v3037_v51 = vadd.f32 %v7039_v25, %v6879_v43  ;;  %v243_v28 = vld [vmem:[%s9251_s0 + $0x6a8] sm:$0xff] }
 0x19f   :  { %6119 = vmatpush.xpose.msk.msrb.mxu2 %vm424_vm0, %v4314_v61  ;;  %v2004_v0 = vsel %vm1492_vm6, %v904_v54, %v1748_v55  ;;  %v4310_v55 = vsel %vm3798_vm13, %v3043_v16, %v4054_v45  ;;  %v4053_v60 = vmul.f32 0.01, %v3040_v41  ;;  %vm3797_vm15 = vcmp.gt.f32.partialorder %v3040_v41, 0.0  ;;  %v85_v16 = vld [vmem:[%s9251_s0 + $0x1b8] sm:$0xff] }
 0x1a0   :  { %v1298_v4 = vpop.f32.mrf.mxu3  ;;  %5892 = vmatmul.msk.f32.gmra.mxu1 %vm2238_vm2, %v2004_v0  ;;  %v4052_v10 = vmul.f32 0.01, %v3037_v51  ;;  %vm3796_vm3 = vcmp.gt.f32.partialorder %v3037_v51, 0.0 }
 0x1a1   :  { %v1299_v8 = vadd.f32 %v7032_v3, %v1298_v4  ;;  %v3034_v4 = vadd.f32 %v7039_v25, %v6859_v27  ;;  %v4309_v43 = vsel %vm3797_vm15, %v3040_v41, %v4053_v60  ;;  %v3031_v27 = vadd.f32 %v7039_v25, %v6853_v19 }
 0x1a2   :  { %v905_v11 = vpop.f32.mrf.mxu0 }
 0x1a3   :  { %vm1650_vm8 = vcmp.gt.f32.partialorder %v1299_v8, 0.0  ;;  %v1906_v14 = vmul.f32 0.01, %v1299_v8  ;;  %v906_v36 = vadd.f32 %v7032_v3, %v905_v11  ;;  %6120 = vmatpush.xpose.msk.msrb.mxu2 %vm424_vm0, %v4313_v35  ;;  %v4051_v21 = vmul.f32 0.01, %v3034_v4 }
 0x1a4   :  { %vm3795_vm5 = vcmp.gt.f32.partialorder %v3034_v4, 0.0  ;;  %v4050_v41 = vmul.f32 0.01, %v3031_v27  ;;  %vm3794_vm7 = vcmp.gt.f32.partialorder %v3031_v27, 0.0 }
 0x1a5   :  { %v1749_v17 = vmul.f32 0.01, %v906_v36  ;;  %v7121_v18 = vpop.f32.mrf.mxu1  ;;  %v2162_v20 = vsel %vm1650_vm8, %v1299_v8, %v1906_v14  ;;  %vm1493_vm10 = vcmp.gt.f32.partialorder %v906_v36, 0.0  ;;  %v7180_v15 = vpop.f32.mrf.mxu2 }
 0x1a6   :  { %6050 = vmatmul.msk.f32.gmra.mxu2 %vm2238_vm2, %v2162_v20  ;;  %v4308_v20 = vsel %vm3796_vm3, %v3037_v51, %v4052_v10 }
 0x1a7   :  { %6121 = vmatpush.xpose.msk.msrb.mxu2 %vm424_vm0, %v4312_v26  ;;  %v2005_v7 = vsel %vm1493_vm10, %v906_v36, %v1749_v17  ;;  %v84_v17 = vld [vmem:[%s9251_s0 + $0x1b0] sm:$0xff]  ;;  %v242_v26 = vld [vmem:[%s9251_s0 + $0x6a0] sm:$0xff] }
 0x1a8   :  { %v1300_v32 = vpop.f32.mrf.mxu3  ;;  %5893 = vmatmul.msk.f32.gmra.mxu1 %vm2238_vm2, %v2005_v7  ;;  %v317_v7 = vpack.c.bf16 %v85_v16, %v84_v17  ;;  %v244_v17 = vld [vmem:[%s9251_s0 + $0x6b0] sm:$0xff] }
 0x1a9   :  { %v1301_v33 = vadd.f32 %v7032_v3, %v1300_v32  ;;  %v396_v32 = vpack.c.bf16 %v243_v28, %v242_v26 }
 0x1aa   :  { %v908_v42 = vpop.f32.mrf.mxu0 }
 0x1ab   :  { %v1907_v47 = vmul.f32 0.01, %v1301_v33  ;;  %v909_v48 = vadd.f32 %v7032_v3, %v908_v42  ;;  %6122 = vmatpush.xpose.msk.msrb.mxu2 %vm424_vm0, %v4311_v44  ;;  %vm1651_vm12 = vcmp.gt.f32.partialorder %v1301_v33, 0.0 }
 0x1ad   :  { %vm1494_vm14 = vcmp.gt.f32.partialorder %v909_v48, 0.0  ;;  %v1750_v50 = vmul.f32 0.01, %v909_v48  ;;  %5756 = vmatmul.msk.bf16.gmra.mxu0 %vm424_vm0, %v316_v1  ;;  %5835 = vmatmul.msk.bf16.gmra.mxu3 %vm424_vm0, %v395_v38  ;;  %v7149_v52 = vpop.f32.mrf.mxu1  ;;  %v2163_v54 = vsel %vm1651_vm12, %v1301_v33, %v1907_v47  ;;  %v3028_v33 = vadd.f32 %v7039_v25, %v6833_v2  ;;  %v7196_v51 = vpop.f32.mrf.mxu2 }
 0x1ae   :  { %6051 = vmatmul.msk.f32.gmra.mxu2 %vm2238_vm2, %v2163_v54  ;;  %v4307_v38 = vsel %vm3795_vm5, %v3034_v4, %v4051_v21  ;;  %v3025_v2 = vadd.f32 %v7039_v25, %v6827_v58 }
 0x1af   :  { %6123 = vmatpush.xpose.msk.msrb.mxu2 %vm424_vm0, %v4310_v55  ;;  %v2006_v61 = vsel %vm1494_vm14, %v909_v48, %v1750_v50  ;;  %v4306_v50 = vsel %vm3794_vm7, %v3031_v27, %v4050_v41  ;;  %v4049_v54 = vmul.f32 0.01, %v3028_v33  ;;  %vm3793_vm9 = vcmp.gt.f32.partialorder %v3028_v33, 0.0  ;;  %v245_v27 = vld [vmem:[%s9251_s0 + $0x6b8] sm:$0xff] }
 0x1b0   :  { %v1303_v63 = vpop.f32.mrf.mxu3  ;;  %5894 = vmatmul.msk.f32.gmra.mxu1 %vm2238_vm2, %v2006_v61  ;;  %v4048_v4 = vmul.f32 0.01, %v3025_v2  ;;  %vm3792_vm11 = vcmp.gt.f32.partialorder %v3025_v2, 0.0 }
 0x1b1   :  { %v1304_v0 = vadd.f32 %v7032_v3, %v1303_v63 }
 0x1b2   :  { %v910_v8 = vpop.f32.mrf.mxu0 }
 0x1b3   :  { %vm1652_vm1 = vcmp.gt.f32.partialorder %v1304_v0, 0.0  ;;  %v1908_v11 = vmul.f32 0.01, %v1304_v0  ;;  %v911_v35 = vadd.f32 %v7032_v3, %v910_v8  ;;  %6124 = vmatpush.xpose.msk.msrb.mxu2 %vm424_vm0, %v4309_v43 }
 0x1b5   :  { %v1751_v12 = vmul.f32 0.01, %v911_v35  ;;  %v7163_v14 = vpop.f32.mrf.mxu1  ;;  %v2164_v36 = vsel %vm1652_vm1, %v1304_v0, %v1908_v11  ;;  %vm1495_vm4 = vcmp.gt.f32.partialorder %v911_v35, 0.0  ;;  %v4305_v0 = vsel %vm3793_vm9, %v3028_v33, %v4049_v54 }
 0x1b6   :  { %6052 = vmatmul.msk.f32.gmra.mxu2 %vm2238_vm2, %v2164_v36  ;;  %v87_v36 = vld [vmem:[%s9251_s0 + $0x1c8] sm:$0xff] }
 0x1b7   :  { %6125 = vmatpush.xpose.msk.msrb.mxu2 %vm424_vm0, %v4308_v20  ;;  %v2007_v19 = vsel %vm1495_vm4, %v911_v35, %v1751_v12  ;;  %v86_v35 = vld [vmem:[%s9251_s0 + $0x1c0] sm:$0xff]  ;;  %v4304_v12 = vsel %vm3792_vm11, %v3025_v2, %v4048_v4  ;;  %v7218_v20 = vpop.f32.mrf.mxu2 }
 0x1b8   :  { %v1305_v29 = vpop.f32.mrf.mxu3  ;;  %5895 = vmatmul.msk.f32.gmra.mxu1 %vm2238_vm2, %v2007_v19  ;;  %9259 = vst [vmem:[#allocation6_spill] sm:$0xff] %v7218_v20  ;;  %v318_v28 = vpack.c.bf16 %v87_v36, %v86_v35  ;;  %v397_v19 = vpack.c.bf16 %v245_v27, %v244_v17 }
 0x1b9   :  { %v1306_v30 = vadd.f32 %v7032_v3, %v1305_v29 }
 0x1ba   :  { %v913_v1 = vpop.f32.mrf.mxu0 }
 0x1bb   :  { %v1909_v42 = vmul.f32 0.01, %v1306_v30  ;;  %v914_v44 = vadd.f32 %v7032_v3, %v913_v1  ;;  %6126 = vmatpush.xpose.msk.msrb.mxu2 %vm424_vm0, %v4307_v38  ;;  %vm1653_vm6 = vcmp.gt.f32.partialorder %v1306_v30, 0.0 }
 0x1bd   :  { %vm1496_vm8 = vcmp.gt.f32.partialorder %v914_v44, 0.0  ;;  %v1752_v45 = vmul.f32 0.01, %v914_v44  ;;  %5757 = vmatmul.msk.bf16.gmra.mxu0 %vm424_vm0, %v317_v7  ;;  %5836 = vmatmul.msk.bf16.gmra.mxu3 %vm424_vm0, %v396_v32  ;;  %v7191_v47 = vpop.f32.mrf.mxu1  ;;  %v2165_v48 = vsel %vm1653_vm6, %v1306_v30, %v1909_v42 }
 0x1be   :  { %6053 = vmatmul.msk.f32.gmra.mxu2 %vm2238_vm2, %v2165_v48 }
 0x1bf   :  { %6127 = vmatpush.xpose.msk.msrb.mxu2 %vm424_vm0, %v4306_v50  ;;  %v2008_v55 = vsel %vm1496_vm8, %v914_v44, %v1752_v45  ;;  %v7229_v38 = vpop.f32.mrf.mxu2 }
 0x1c0   :  { %v1308_v60 = vpop.f32.mrf.mxu3  ;;  %5896 = vmatmul.msk.f32.gmra.mxu1 %vm2238_vm2, %v2008_v55  ;;  %9260 = vst [vmem:[#allocation7_spill] sm:$0xff] %v7229_v38 }
 0x1c1   :  { %v1309_v61 = vadd.f32 %v7032_v3, %v1308_v60  ;;  %v88_v60 = vld [vmem:[%s9251_s0 + $0x1d0] sm:$0xff] }
 0x1c2   :  { %v915_v63 = vpop.f32.mrf.mxu0 }
 0x1c3   :  { %vm1654_vm10 = vcmp.gt.f32.partialorder %v1309_v61, 0.0  ;;  %v1910_v58 = vmul.f32 0.01, %v1309_v61  ;;  %v916_v8 = vadd.f32 %v7032_v3, %v915_v63  ;;  %6128 = vmatpush.xpose.msk.msrb.mxu2 %vm424_vm0, %v4305_v0  ;;  %v246_v63 = vld [vmem:[%s9251_s0 + $0x6c0] sm:$0xff]  ;;  %v247_v0 = vld [vmem:[%s9251_s0 + $0x6c8] sm:$0xff] }
 0x1c4   :  { %v398_v35 = vpack.c.bf16 %v247_v0, %v246_v63 }
 0x1c5   :  { %v1753_v43 = vmul.f32 0.01, %v916_v8  ;;  %v7203_v10 = vpop.f32.mrf.mxu1  ;;  %v2166_v11 = vsel %vm1654_vm10, %v1309_v61, %v1910_v58  ;;  %vm1497_vm12 = vcmp.gt.f32.partialorder %v916_v8, 0.0  ;;  %v89_v61 = vld [vmem:[%s9251_s0 + $0x1d8] sm:$0xff] }
 0x1c6   :  { %6054 = vmatmul.msk.f32.gmra.mxu2 %vm2238_vm2, %v2166_v11  ;;  %v319_v11 = vpack.c.bf16 %v89_v61, %v88_v60 }
 0x1c7   :  { %6129 = vmatpush.xpose.msk.msrb.mxu2 %vm424_vm0, %v4304_v12  ;;  %v2009_v21 = vsel %vm1497_vm12, %v916_v8, %v1753_v43  ;;  %v7249_v4 = vpop.f32.mrf.mxu2 }
 0x1c8   :  { %v1310_v16 = vpop.f32.mrf.mxu3  ;;  %5897 = vmatmul.msk.f32.gmra.mxu1 %vm2238_vm2, %v2009_v21  ;;  %9261 = vst [vmem:[#allocation8_spill] sm:$0xff] %v7249_v4 }
 0x1c9   :  { %v1311_v26 = vadd.f32 %v7032_v3, %v1310_v16 }
 0x1ca   :  { %v918_v29 = vpop.f32.mrf.mxu0 }
 0x1cb   :  { %v1911_v30 = vmul.f32 0.01, %v1311_v26  ;;  %v919_v7 = vadd.f32 %v7032_v3, %v918_v29  ;;  %vm1655_vm13 = vcmp.gt.f32.partialorder %v1311_v26, 0.0 }
 0x1cd   :  { %vm1498_vm14 = vcmp.gt.f32.partialorder %v919_v7, 0.0  ;;  %v1754_v32 = vmul.f32 0.01, %v919_v7  ;;  %5758 = vmatmul.msk.bf16.gmra.mxu0 %vm424_vm0, %v318_v28  ;;  %5837 = vmatmul.msk.bf16.gmra.mxu3 %vm424_vm0, %v397_v19  ;;  %v7226_v33 = vpop.f32.mrf.mxu1  ;;  %v2167_v1 = vsel %vm1655_vm13, %v1311_v26, %v1911_v30 }
 0x1ce   :  { %6055 = vmatmul.msk.f32.gmra.mxu2 %vm2238_vm2, %v2167_v1 }
 0x1cf   :  { %v2010_v41 = vsel %vm1498_vm14, %v919_v7, %v1754_v32  ;;  %v7259_v26 = vpop.f32.mrf.mxu2 }
 0x1d0   :  { %v1313_v42 = vpop.f32.mrf.mxu3  ;;  %5898 = vmatmul.msk.f32.gmra.mxu1 %vm2238_vm2, %v2010_v41  ;;  %9262 = vst [vmem:[#allocation9_spill] sm:$0xff] %v7259_v26 }
 0x1d1   :  { %v1314_v44 = vadd.f32 %v7032_v3, %v1313_v42 }
 0x1d2   :  { %v920_v45 = vpop.f32.mrf.mxu0 }
 0x1d3   :  { %vm1656_vm15 = vcmp.gt.f32.partialorder %v1314_v44, 0.0  ;;  %v1912_v48 = vmul.f32 0.01, %v1314_v44  ;;  %v921_v2 = vadd.f32 %v7032_v3, %v920_v45  ;;  %v91_v45 = vld [vmem:[%s9251_s0 + $0x1e8] sm:$0xff] }
 0x1d5   :  { %v1755_v50 = vmul.f32 0.01, %v921_v2  ;;  %v7234_v54 = vpop.f32.mrf.mxu1  ;;  %v2168_v55 = vsel %vm1656_vm15, %v1314_v44, %v1912_v48  ;;  %vm1499_vm1 = vcmp.gt.f32.partialorder %v921_v2, 0.0  ;;  %v90_v44 = vld [vmem:[%s9251_s0 + $0x1e0] sm:$0xff]  ;;  %v248_v48 = vld [vmem:[%s9251_s0 + $0x6d0] sm:$0xff] }
 0x1d6   :  { %6056 = vmatmul.msk.f32.gmra.mxu2 %vm2238_vm2, %v2168_v55  ;;  %v320_v63 = vpack.c.bf16 %v91_v45, %v90_v44  ;;  %v250_v44 = vld [vmem:[%s9251_s0 + $0x6e0] sm:$0xff]  ;;  %v251_v45 = vld [vmem:[%s9251_s0 + $0x6e8] sm:$0xff] }
 0x1d7   :  { %v2011_v58 = vsel %vm1499_vm1, %v921_v2, %v1755_v50  ;;  %v249_v2 = vld [vmem:[%s9251_s0 + $0x6d8] sm:$0xff]  ;;  %v7279_v50 = vpop.f32.mrf.mxu2 }
 0x1d8   :  { %v1315_v8 = vpop.f32.mrf.mxu3  ;;  %5899 = vmatmul.msk.f32.gmra.mxu1 %vm2238_vm2, %v2011_v58  ;;  %9263 = vst [vmem:[#allocation10_spill] sm:$0xff] %v7279_v50  ;;  %v399_v0 = vpack.c.bf16 %v249_v2, %v248_v48 }
 0x1d9   :  { %v1316_v43 = vadd.f32 %v7032_v3, %v1315_v8 }
 0x1da   :  { %v923_v12 = vpop.f32.mrf.mxu0 }
 0x1db   :  { %v1913_v36 = vmul.f32 0.01, %v1316_v43  ;;  %v924_v17 = vadd.f32 %v7032_v3, %v923_v12  ;;  %vm1657_vm3 = vcmp.gt.f32.partialorder %v1316_v43, 0.0 }
 0x1dd   :  { %vm1500_vm4 = vcmp.gt.f32.partialorder %v924_v17, 0.0  ;;  %v1756_v27 = vmul.f32 0.01, %v924_v17  ;;  %5759 = vmatmul.msk.bf16.gmra.mxu0 %vm424_vm0, %v319_v11  ;;  %5838 = vmatmul.msk.bf16.gmra.mxu3 %vm424_vm0, %v398_v35  ;;  %v7256_v21 = vpop.f32.mrf.mxu1  ;;  %v2169_v16 = vsel %vm1657_vm3, %v1316_v43, %v1913_v36 }
 0x1de   :  { %6057 = vmatmul.msk.f32.gmra.mxu2 %vm2238_vm2, %v2169_v16 }
 0x1df   :  { %v2012_v28 = vsel %vm1500_vm4, %v924_v17, %v1756_v27  ;;  %v7289_v36 = vpop.f32.mrf.mxu2 }
 0x1e0   :  { %v1318_v19 = vpop.f32.mrf.mxu3  ;;  %5900 = vmatmul.msk.f32.gmra.mxu1 %vm2238_vm2, %v2012_v28  ;;  %9264 = vst [vmem:[#allocation11_spill] sm:$0xff] %v7289_v36 }
 0x1e1   :  { %v1319_v29 = vadd.f32 %v7032_v3, %v1318_v19 }
 0x1e2   :  { %v925_v30 = vpop.f32.mrf.mxu0 }
 0x1e3   :  { %vm1658_vm5 = vcmp.gt.f32.partialorder %v1319_v29, 0.0  ;;  %v1914_v7 = vmul.f32 0.01, %v1319_v29  ;;  %v926_v32 = vadd.f32 %v7032_v3, %v925_v30 }
 0x1e5   :  { %v1757_v1 = vmul.f32 0.01, %v926_v32  ;;  %v7264_v41 = vpop.f32.mrf.mxu1  ;;  %v2170_v42 = vsel %vm1658_vm5, %v1319_v29, %v1914_v7  ;;  %vm1501_vm6 = vcmp.gt.f32.partialorder %v926_v32, 0.0 }
 0x1e6   :  { %6058 = vmatmul.msk.f32.gmra.mxu2 %vm2238_vm2, %v2170_v42  ;;  %v93_v42 = vld [vmem:[%s9251_s0 + $0x1f8] sm:$0xff] }
 0x1e7   :  { %v2013_v55 = vsel %vm1501_vm6, %v926_v32, %v1757_v1  ;;  %v92_v1 = vld [vmem:[%s9251_s0 + $0x1f0] sm:$0xff]  ;;  %v7307_v48 = vpop.f32.mrf.mxu2 }
 0x1e8   :  { %v1320_v60 = vpop.f32.mrf.mxu3  ;;  %5901 = vmatmul.msk.f32.gmra.mxu1 %vm2238_vm2, %v2013_v55  ;;  %9265 = vst [vmem:[#allocation12_spill] sm:$0xff] %v7307_v48 }
 0x1e9   :  { %v1321_v61 = vadd.f32 %v7032_v3, %v1320_v60 }
 0x1ea   :  { %v928_v58 = vpop.f32.mrf.mxu0 }
 0x1eb   :  { %v1915_v8 = vmul.f32 0.01, %v1321_v61  ;;  %v929_v43 = vadd.f32 %v7032_v3, %v928_v58  ;;  %vm1659_vm7 = vcmp.gt.f32.partialorder %v1321_v61, 0.0 }
 0x1ed   :  { %vm1502_vm8 = vcmp.gt.f32.partialorder %v929_v43, 0.0  ;;  %v1758_v11 = vmul.f32 0.01, %v929_v43  ;;  %5760 = vmatmul.msk.bf16.gmra.mxu0 %vm424_vm0, %v320_v63  ;;  %5839 = vmatmul.msk.bf16.gmra.mxu3 %vm424_vm0, %v399_v0  ;;  %v7286_v35 = vpop.f32.mrf.mxu1  ;;  %v2171_v12 = vsel %vm1659_vm7, %v1321_v61, %v1915_v8  ;;  %v321_v61 = vpack.c.bf16 %v93_v42, %v92_v1 }
 0x1ee   :  { %6059 = vmatmul.msk.f32.gmra.mxu2 %vm2238_vm2, %v2171_v12  ;;  %v400_v63 = vpack.c.bf16 %v251_v45, %v250_v44  ;;  %v94_v44 = vld [vmem:[%s9251_s0 + $0x200] sm:$0xff] }
 0x1ef   :  { %v2014_v17 = vsel %vm1502_vm8, %v929_v43, %v1758_v11 }
 0x1f0   :  { %v1323_v27 = vpop.f32.mrf.mxu3  ;;  %5902 = vmatmul.msk.f32.gmra.mxu1 %vm2238_vm2, %v2014_v17  ;;  %v7315_v17 = vpop.f32.mrf.mxu2 }
 0x1f1   :  { %v1324_v16 = vadd.f32 %v7032_v3, %v1323_v27  ;;  %9266 = vst [vmem:[#allocation13_spill] sm:$0xff] %v7315_v17 }
 0x1f2   :  { %v930_v28 = vpop.f32.mrf.mxu0 }
 0x1f3   :  { %vm1660_vm9 = vcmp.gt.f32.partialorder %v1324_v16, 0.0  ;;  %v1916_v19 = vmul.f32 0.01, %v1324_v16  ;;  %v931_v29 = vadd.f32 %v7032_v3, %v930_v28 }
 0x1f5   :  { %v1759_v30 = vmul.f32 0.01, %v931_v29  ;;  %v3111_v7 = vpop.f32.mrf.mxu1  ;;  %v2172_v32 = vsel %vm1660_vm9, %v1324_v16, %v1916_v19  ;;  %vm1503_vm10 = vcmp.gt.f32.partialorder %v931_v29, 0.0 }
 0x1f6   :  { %6060 = vmatmul.msk.f32.gmra.mxu2 %vm2238_vm2, %v2172_v32 }
 0x1f7   :  { %v2015_v2 = vsel %vm1503_vm10, %v931_v29, %v1759_v30 }
 0x1f8   :  { %v1325_v55 = vpop.f32.mrf.mxu3  ;;  %5903 = vmatmul.msk.f32.gmra.mxu1 %vm2238_vm2, %v2015_v2 }
 0x1f9   :  { %v1326_v60 = vadd.f32 %v7032_v3, %v1325_v55  ;;  %v95_v55 = vld [vmem:[%s9251_s0 + $0x208] sm:$0xff] }
 0x1fa   :  { %v933_v0 = vpop.f32.mrf.mxu0 }
 0x1fb   :  { %v1917_v58 = vmul.f32 0.01, %v1326_v60  ;;  %v934_v8 = vadd.f32 %v7032_v3, %v933_v0  ;;  %vm1661_vm11 = vcmp.gt.f32.partialorder %v1326_v60, 0.0 }
 0x1fd   :  { %vm1504_vm12 = vcmp.gt.f32.partialorder %v934_v8, 0.0  ;;  %v1760_v43 = vmul.f32 0.01, %v934_v8  ;;  %5761 = vmatmul.msk.bf16.gmra.mxu0 %vm424_vm0, %v321_v61  ;;  %5840 = vmatmul.msk.bf16.gmra.mxu3 %vm424_vm0, %v400_v63  ;;  %v3114_v11 = vpop.f32.mrf.mxu1  ;;  %v2173_v12 = vsel %vm1661_vm11, %v1326_v60, %v1917_v58  ;;  %v252_v60 = vld [vmem:[%s9251_s0 + $0x6f0] sm:$0xff]  ;;  %v253_v61 = vld [vmem:[%s9251_s0 + $0x6f8] sm:$0xff]  ;;  %v7335_v63 = vpop.f32.mrf.mxu2 }
 0x1fe   :  { %6061 = vmatmul.msk.f32.gmra.mxu2 %vm2238_vm2, %v2173_v12  ;;  %v3115_v45 = vadd.f32 %v7039_v25, %v3114_v11  ;;  %9267 = vst [vmem:[#allocation14_spill] sm:$0xff] %v7335_v63  ;;  %v322_v11 = vpack.c.bf16 %v95_v55, %v94_v44  ;;  %v401_v12 = vpack.c.bf16 %v253_v61, %v252_v60 }
 0x1ff   :  { %v2016_v27 = vsel %vm1504_vm12, %v934_v8, %v1760_v43 }
 0x200   :  { %v1328_v16 = vpop.f32.mrf.mxu3  ;;  %5904 = vmatmul.msk.f32.gmra.mxu1 %vm2238_vm2, %v2016_v27  ;;  %v3112_v27 = vadd.f32 %v7039_v25, %v3111_v7  ;;  %vm3822_vm3 = vcmp.gt.f32.partialorder %v3115_v45, 0.0  ;;  %v3109_v7 = vadd.f32 %v7039_v25, %v7286_v35 }
 0x201   :  { %v1329_v28 = vadd.f32 %v7032_v3, %v1328_v16 }
 0x202   :  { %v935_v19 = vpop.f32.mrf.mxu0  ;;  %vm3821_vm5 = vcmp.gt.f32.partialorder %v3112_v27, 0.0  ;;  %vm3820_vm7 = vcmp.gt.f32.partialorder %v3109_v7, 0.0 }
 0x203   :  { %vm1662_vm13 = vcmp.gt.f32.partialorder %v1329_v28, 0.0  ;;  %v1918_v29 = vmul.f32 0.01, %v1329_v28  ;;  %v936_v30 = vadd.f32 %v7032_v3, %v935_v19  ;;  %v4078_v19 = vmul.f32 0.01, %v3115_v45 }
 0x205   :  { %v1761_v32 = vmul.f32 0.01, %v936_v30  ;;  %v3117_v1 = vpop.f32.mrf.mxu1  ;;  %v2174_v42 = vsel %vm1662_vm13, %v1329_v28, %v1918_v29  ;;  %vm1505_vm14 = vcmp.gt.f32.partialorder %v936_v30, 0.0  ;;  %v4334_v44 = vsel %vm3822_vm3, %v3115_v45, %v4078_v19  ;;  %v7349_v55 = vpop.f32.mrf.mxu2  ;;  %v96_v19 = vld [vmem:[%s9251_s0 + $0x210] sm:$0xff] }
 0x206   :  { %v3118_v2 = vadd.f32 %v7039_v25, %v3117_v1  ;;  %6062 = vmatmul.msk.f32.gmra.mxu2 %vm2238_vm2, %v2174_v42  ;;  %9268 = vst [vmem:[#allocation15_spill] sm:$0xff] %v7349_v55 }
 0x207   :  { %v2017_v0 = vsel %vm1505_vm14, %v936_v30, %v1761_v32 }
 0x208   :  { %v1330_v58 = vpop.f32.mrf.mxu3  ;;  %5905 = vmatmul.msk.f32.gmra.mxu1 %vm2238_vm2, %v2017_v0  ;;  %vm3823_vm15 = vcmp.gt.f32.partialorder %v3118_v2, 0.0  ;;  %v4079_v8 = vmul.f32 0.01, %v3118_v2 }
 0x209   :  { %v1331_v43 = vadd.f32 %v7032_v3, %v1330_v58  ;;  %v3106_v58 = vadd.f32 %v7039_v25, %v7264_v41  ;;  %v3103_v41 = vadd.f32 %v7039_v25, %v7256_v21 }
 0x20a   :  { %v938_v16 = vpop.f32.mrf.mxu0  ;;  %v4335_v28 = vsel %vm3823_vm15, %v3118_v2, %v4079_v8  ;;  %v4077_v2 = vmul.f32 0.01, %v3112_v27 }
 0x20b   :  { %v1919_v29 = vmul.f32 0.01, %v1331_v43  ;;  %v939_v1 = vadd.f32 %v7032_v3, %v938_v16  ;;  %6131 = vmatpush.xpose.msk.msrb.mxu3 %vm424_vm0, %v4335_v28  ;;  %vm1663_vm1 = vcmp.gt.f32.partialorder %v1331_v43, 0.0  ;;  %vm3819_vm9 = vcmp.gt.f32.partialorder %v3106_v58, 0.0 }
 0x20c   :  { %v4333_v35 = vsel %vm3821_vm5, %v3112_v27, %v4077_v2  ;;  %vm3818_vm11 = vcmp.gt.f32.partialorder %v3103_v41, 0.0 }
 0x20d   :  { %vm1506_vm4 = vcmp.gt.f32.partialorder %v939_v1, 0.0  ;;  %v1762_v30 = vmul.f32 0.01, %v939_v1  ;;  %5762 = vmatmul.msk.bf16.gmra.mxu0 %vm424_vm0, %v322_v11  ;;  %5841 = vmatmul.msk.bf16.gmra.mxu3 %vm424_vm0, %v401_v12  ;;  %v7344_v32 = vpop.f32.mrf.mxu1  ;;  %v2175_v42 = vsel %vm1663_vm1, %v1331_v43, %v1919_v29  ;;  %v4076_v43 = vmul.f32 0.01, %v3109_v7 }
 0x20e   :  { %6063 = vmatmul.msk.f32.gmra.mxu2 %vm2238_vm2, %v2175_v42  ;;  %v4075_v29 = vmul.f32 0.01, %v3106_v58  ;;  %v255_v42 = vld [vmem:[%s9251_s0 + $0x708] sm:$0xff] }
 0x20f   :  { %6132 = vmatpush.xpose.msk.msrb.mxu3 %vm424_vm0, %v4334_v44  ;;  %v2018_v60 = vsel %vm1506_vm4, %v939_v1, %v1762_v30  ;;  %v4332_v27 = vsel %vm3820_vm7, %v3109_v7, %v4076_v43  ;;  %v97_v1 = vld [vmem:[%s9251_s0 + $0x218] sm:$0xff]  ;;  %v254_v30 = vld [vmem:[%s9251_s0 + $0x700] sm:$0xff]  ;;  %v7375_v44 = vpop.f32.mrf.mxu2  ;;  %v4074_v43 = vmul.f32 0.01, %v3103_v41 }
 0x210   :  { %v1333_v61 = vpop.f32.mrf.mxu3  ;;  %5906 = vmatmul.msk.f32.gmra.mxu1 %vm2238_vm2, %v2018_v60  ;;  %9269 = vst [vmem:[#allocation16_spill] sm:$0xff] %v7375_v44  ;;  %v323_v60 = vpack.c.bf16 %v97_v1, %v96_v19 }
 0x211   :  { %v1334_v0 = vadd.f32 %v7032_v3, %v1333_v61  ;;  %v402_v61 = vpack.c.bf16 %v255_v42, %v254_v30 }
 0x212   :  { %v940_v8 = vpop.f32.mrf.mxu0 }
 0x213   :  { %vm1664_vm6 = vcmp.gt.f32.partialorder %v1334_v0, 0.0  ;;  %v1920_v45 = vmul.f32 0.01, %v1334_v0  ;;  %v941_v11 = vadd.f32 %v7032_v3, %v940_v8  ;;  %6133 = vmatpush.xpose.msk.msrb.mxu3 %vm424_vm0, %v4333_v35  ;;  %v4331_v35 = vsel %vm3819_vm9, %v3106_v58, %v4075_v29 }
 0x214   :  { %v4330_v58 = vsel %vm3818_vm11, %v3103_v41, %v4074_v43  ;;  %v98_v43 = vld [vmem:[%s9251_s0 + $0x220] sm:$0xff] }
 0x215   :  { %v1763_v12 = vmul.f32 0.01, %v941_v11  ;;  %v7358_v16 = vpop.f32.mrf.mxu1  ;;  %v2176_v28 = vsel %vm1664_vm6, %v1334_v0, %v1920_v45  ;;  %vm1507_vm8 = vcmp.gt.f32.partialorder %v941_v11, 0.0  ;;  %v3100_v0 = vadd.f32 %v7039_v25, %v7234_v54 }
 0x216   :  { %6064 = vmatmul.msk.f32.gmra.mxu2 %vm2238_vm2, %v2176_v28  ;;  %v3097_v54 = vadd.f32 %v7039_v25, %v7226_v33 }
 0x217   :  { %6134 = vmatpush.xpose.msk.msrb.mxu3 %vm424_vm0, %v4332_v27  ;;  %v2019_v21 = vsel %vm1507_vm8, %v941_v11, %v1763_v12  ;;  %v4073_v27 = vmul.f32 0.01, %v3100_v0  ;;  %v7391_v29 = vpop.f32.mrf.mxu2  ;;  %vm3817_vm13 = vcmp.gt.f32.partialorder %v3100_v0, 0.0 }
 0x218   :  { %v1335_v7 = vpop.f32.mrf.mxu3  ;;  %5907 = vmatmul.msk.f32.gmra.mxu1 %vm2238_vm2, %v2019_v21  ;;  %9270 = vst [vmem:[#allocation17_spill] sm:$0xff] %v7391_v29  ;;  %v3094_v21 = vadd.f32 %v7039_v25, %v7203_v10  ;;  %vm3816_vm15 = vcmp.gt.f32.partialorder %v3097_v54, 0.0  ;;  %v3091_v10 = vadd.f32 %v7039_v25, %v7191_v47 }
 0x219   :  { %v1336_v2 = vadd.f32 %v7032_v3, %v1335_v7  ;;  %v4329_v33 = vsel %vm3817_vm13, %v3100_v0, %v4073_v27 }
 0x21a   :  { %v943_v8 = vpop.f32.mrf.mxu0  ;;  %vm3815_vm3 = vcmp.gt.f32.partialorder %v3094_v21, 0.0  ;;  %vm3814_vm5 = vcmp.gt.f32.partialorder %v3091_v10, 0.0 }
 0x21b   :  { %v1921_v45 = vmul.f32 0.01, %v1336_v2  ;;  %v944_v28 = vadd.f32 %v7032_v3, %v943_v8  ;;  %6135 = vmatpush.xpose.msk.msrb.mxu3 %vm424_vm0, %v4331_v35  ;;  %vm1665_vm10 = vcmp.gt.f32.partialorder %v1336_v2, 0.0 }
 0x21d   :  { %vm1508_vm12 = vcmp.gt.f32.partialorder %v944_v28, 0.0  ;;  %v1764_v11 = vmul.f32 0.01, %v944_v28  ;;  %5763 = vmatmul.msk.bf16.gmra.mxu0 %vm424_vm0, %v323_v60  ;;  %5842 = vmatmul.msk.bf16.gmra.mxu3 %vm424_vm0, %v402_v61  ;;  %v7386_v12 = vpop.f32.mrf.mxu1  ;;  %v2177_v19 = vsel %vm1665_vm10, %v1336_v2, %v1921_v45  ;;  %v4072_v2 = vmul.f32 0.01, %v3097_v54 }
 0x21e   :  { %6065 = vmatmul.msk.f32.gmra.mxu2 %vm2238_vm2, %v2177_v19  ;;  %v4071_v45 = vmul.f32 0.01, %v3094_v21  ;;  %v257_v19 = vld [vmem:[%s9251_s0 + $0x718] sm:$0xff] }
 0x21f   :  { %6136 = vmatpush.xpose.msk.msrb.mxu3 %vm424_vm0, %v4330_v58  ;;  %v2020_v1 = vsel %vm1508_vm12, %v944_v28, %v1764_v11  ;;  %v4328_v0 = vsel %vm3816_vm15, %v3097_v54, %v4072_v2  ;;  %v99_v28 = vld [vmem:[%s9251_s0 + $0x228] sm:$0xff]  ;;  %v256_v11 = vld [vmem:[%s9251_s0 + $0x710] sm:$0xff]  ;;  %v7417_v58 = vpop.f32.mrf.mxu2  ;;  %v4070_v2 = vmul.f32 0.01, %v3091_v10 }
 0x220   :  { %v1338_v30 = vpop.f32.mrf.mxu3  ;;  %5908 = vmatmul.msk.f32.gmra.mxu1 %vm2238_vm2, %v2020_v1  ;;  %9271 = vst [vmem:[#allocation18_spill] sm:$0xff] %v7417_v58  ;;  %v324_v1 = vpack.c.bf16 %v99_v28, %v98_v43 }
 0x221   :  { %v1339_v42 = vadd.f32 %v7032_v3, %v1338_v30  ;;  %v403_v30 = vpack.c.bf16 %v257_v19, %v256_v11  ;;  %v7445_v11 = vld [vmem:[%s9253_s2] ss:$0 sm:$0xff] }
 0x222   :  { %v945_v7 = vpop.f32.mrf.mxu0 }
 0x223   :  { %vm1666_vm14 = vcmp.gt.f32.partialorder %v1339_v42, 0.0  ;;  %v1922_v41 = vmul.f32 0.01, %v1339_v42  ;;  %v946_v60 = vadd.f32 %v7032_v3, %v945_v7  ;;  %6137 = vmatpush.xpose.msk.msrb.mxu3 %vm424_vm0, %v4329_v33  ;;  %v4327_v33 = vsel %vm3815_vm3, %v3094_v21, %v4071_v45 }
 0x225   :  { %v1765_v61 = vmul.f32 0.01, %v946_v60  ;;  %v7400_v8 = vpop.f32.mrf.mxu1  ;;  %v2178_v35 = vsel %vm1666_vm14, %v1339_v42, %v1922_v41  ;;  %vm1509_vm1 = vcmp.gt.f32.partialorder %v946_v60, 0.0  ;;  %v3088_v42 = vadd.f32 %v7039_v25, %v7163_v14  ;;  %v7433_v25 = vld [vmem:[%s9255_s4] ss:$0 sm:$0xff] }
 0x226   :  { %6066 = vmatmul.msk.f32.gmra.mxu2 %vm2238_vm2, %v2178_v35  ;;  %v4326_v14 = vsel %vm3814_vm5, %v3091_v10, %v4070_v2  ;;  %v3082_v10 = vadd.f32 %v7433_v25, %v7121_v18  ;;  %v100_v2 = vld [vmem:[%s9251_s0 + $0x230] sm:$0xff]  ;;  %v3079_v18 = vadd.f32 %v7433_v25, %v7107_v56 }
 0x227   :  { %6138 = vmatpush.xpose.msk.msrb.mxu3 %vm424_vm0, %v4328_v0  ;;  %v2021_v47 = vsel %vm1509_vm1, %v946_v60, %v1765_v61  ;;  %v4069_v21 = vmul.f32 0.01, %v3088_v42  ;;  %v7438_v0 = vpop.f32.mrf.mxu2  ;;  %vm3813_vm7 = vcmp.gt.f32.partialorder %v3088_v42, 0.0 }
 0x228   :  { %v1340_v54 = vpop.f32.mrf.mxu3  ;;  %5909 = vmatmul.msk.f32.gmra.mxu1 %vm2238_vm2, %v2021_v47  ;;  %9272 = vst [vmem:[#allocation19_spill] sm:$0xff] %v7438_v0  ;;  %vm3811_vm11 = vcmp.gt.f32.partialorder %v3082_v10, 0.0  ;;  %vm3810_vm13 = vcmp.gt.f32.partialorder %v3079_v18, 0.0 }
 0x229   :  { %v1341_v27 = vadd.f32 %v7032_v3, %v1340_v54  ;;  %v4325_v47 = vsel %vm3813_vm7, %v3088_v42, %v4069_v21 }
 0x22a   :  { %v948_v7 = vpop.f32.mrf.mxu0 }
 0x22b   :  { %v1923_v41 = vmul.f32 0.01, %v1341_v27  ;;  %v949_v35 = vadd.f32 %v7032_v3, %v948_v7  ;;  %6139 = vmatpush.xpose.msk.msrb.mxu3 %vm424_vm0, %v4327_v33  ;;  %vm1667_vm4 = vcmp.gt.f32.partialorder %v1341_v27, 0.0  ;;  %v3085_v3 = vadd.f32 %v7433_v25, %v7149_v52 }
 0x22d   :  { %vm1510_vm6 = vcmp.gt.f32.partialorder %v949_v35, 0.0  ;;  %v1766_v60 = vmul.f32 0.01, %v949_v35  ;;  %5764 = vmatmul.msk.bf16.gmra.mxu0 %vm424_vm0, %v324_v1  ;;  %5843 = vmatmul.msk.bf16.gmra.mxu3 %vm424_vm0, %v403_v30  ;;  %v7428_v61 = vpop.f32.mrf.mxu1  ;;  %v2179_v43 = vsel %vm1667_vm4, %v1341_v27, %v1923_v41  ;;  %v4068_v54 = vmul.f32 0.01, %v3085_v3 }
 0x22e   :  { %6067 = vmatmul.msk.f32.gmra.mxu2 %vm2238_vm2, %v2179_v43  ;;  %vm3812_vm9 = vcmp.gt.f32.partialorder %v3085_v3, 0.0  ;;  %v4067_v41 = vmul.f32 0.01, %v3082_v10  ;;  %v259_v43 = vld [vmem:[%s9251_s0 + $0x728] sm:$0xff] }
 0x22f   :  { %6140 = vmatpush.xpose.msk.msrb.mxu3 %vm424_vm0, %v4326_v14  ;;  %v2022_v45 = vsel %vm1510_vm6, %v949_v35, %v1766_v60  ;;  %v4324_v42 = vsel %vm3812_vm9, %v3085_v3, %v4068_v54  ;;  %v101_v35 = vld [vmem:[%s9251_s0 + $0x238] sm:$0xff]  ;;  %v258_v60 = vld [vmem:[%s9251_s0 + $0x720] sm:$0xff]  ;;  %v7469_v14 = vpop.f32.mrf.mxu2  ;;  %v4066_v54 = vmul.f32 0.01, %v3079_v18 }
 0x230   :  { %v1343_v28 = vpop.f32.mrf.mxu3  ;;  %5910 = vmatmul.msk.f32.gmra.mxu1 %vm2238_vm2, %v2022_v45  ;;  %9273 = vst [vmem:[#allocation20_spill] sm:$0xff] %v7469_v14  ;;  %v325_v45 = vpack.c.bf16 %v101_v35, %v100_v2 }
 0x231   :  { %v1344_v52 = vadd.f32 %v7445_v11, %v1343_v28  ;;  %v404_v28 = vpack.c.bf16 %v259_v43, %v258_v60 }
 0x232   :  { %v950_v19 = vpop.f32.mrf.mxu0 }
 0x233   :  { %vm1668_vm8 = vcmp.gt.f32.partialorder %v1344_v52, 0.0  ;;  %v1924_v27 = vmul.f32 0.01, %v1344_v52  ;;  %v951_v1 = vadd.f32 %v7445_v11, %v950_v19  ;;  %6141 = vmatpush.xpose.msk.msrb.mxu3 %vm424_vm0, %v4325_v47  ;;  %v4323_v47 = vsel %vm3811_vm11, %v3082_v10, %v4067_v41 }
 0x234   :  { %v4322_v10 = vsel %vm3810_vm13, %v3079_v18, %v4066_v54  ;;  %v103_v54 = vld [vmem:[%s9251_s0 + $0x248] sm:$0xff] }
 0x235   :  { %v1767_v30 = vmul.f32 0.01, %v951_v1  ;;  %v7452_v7 = vpop.f32.mrf.mxu1  ;;  %v2180_v33 = vsel %vm1668_vm8, %v1344_v52, %v1924_v27  ;;  %vm1511_vm10 = vcmp.gt.f32.partialorder %v951_v1, 0.0  ;;  %v3076_v52 = vadd.f32 %v7433_v25, %v7079_v22 }
 0x236   :  { %6068 = vmatmul.msk.f32.gmra.mxu2 %vm2238_vm2, %v2180_v33  ;;  %v3073_v22 = vadd.f32 %v7433_v25, %v7065_v62 }
 0x237   :  { %6142 = vmatpush.xpose.msk.msrb.mxu3 %vm424_vm0, %v4324_v42  ;;  %v2023_v56 = vsel %vm1511_vm10, %v951_v1, %v1767_v30  ;;  %v4065_v42 = vmul.f32 0.01, %v3076_v52  ;;  %v7485_v41 = vpop.f32.mrf.mxu2  ;;  %vm3809_vm15 = vcmp.gt.f32.partialorder %v3076_v52, 0.0 }
 0x238   :  { %v1345_v3 = vpop.f32.mrf.mxu3  ;;  %5911 = vmatmul.msk.f32.gmra.mxu1 %vm2238_vm2, %v2023_v56  ;;  %9274 = vst [vmem:[#allocation21_spill] sm:$0xff] %v7485_v41  ;;  %vm3808_vm3 = vcmp.gt.f32.partialorder %v3073_v22, 0.0 }
 0x239   :  { %v1346_v21 = vadd.f32 %v7445_v11, %v1345_v3  ;;  %v4321_v3 = vsel %vm3809_vm15, %v3076_v52, %v4065_v42 }
 0x23a   :  { %v953_v19 = vpop.f32.mrf.mxu0 }
 0x23b   :  { %v1925_v27 = vmul.f32 0.01, %v1346_v21  ;;  %v954_v33 = vadd.f32 %v7445_v11, %v953_v19  ;;  %6143 = vmatpush.xpose.msk.msrb.mxu3 %vm424_vm0, %v4323_v47  ;;  %vm1669_vm12 = vcmp.gt.f32.partialorder %v1346_v21, 0.0  ;;  %v102_v47 = vld [vmem:[%s9251_s0 + $0x240] sm:$0xff] }
 0x23c   :  { %v326_v42 = vpack.c.bf16 %v103_v54, %v102_v47 }
 0x23d   :  { %vm1512_vm14 = vcmp.gt.f32.partialorder %v954_v33, 0.0  ;;  %v1768_v1 = vmul.f32 0.01, %v954_v33  ;;  %5765 = vmatmul.msk.bf16.gmra.mxu0 %vm424_vm0, %v325_v45  ;;  %5844 = vmatmul.msk.bf16.gmra.mxu3 %vm424_vm0, %v404_v28  ;;  %v7480_v30 = vpop.f32.mrf.mxu1  ;;  %v2181_v2 = vsel %vm1669_vm12, %v1346_v21, %v1925_v27  ;;  %v4064_v21 = vmul.f32 0.01, %v3073_v22  ;;  %v260_v27 = vld [vmem:[%s9251_s0 + $0x730] sm:$0xff] }
 0x23e   :  { %6069 = vmatmul.msk.f32.gmra.mxu2 %vm2238_vm2, %v2181_v2 }
 0x23f   :  { %6144 = vmatpush.xpose.msk.msrb.mxu3 %vm424_vm0, %v4322_v10  ;;  %v2024_v35 = vsel %vm1512_vm14, %v954_v33, %v1768_v1  ;;  %v4320_v52 = vsel %vm3808_vm3, %v3073_v22, %v4064_v21  ;;  %v261_v33 = vld [vmem:[%s9251_s0 + $0x738] sm:$0xff]  ;;  %v7507_v1 = vpop.f32.mrf.mxu2 }
 0x240   :  { %v1348_v60 = vpop.f32.mrf.mxu3  ;;  %5912 = vmatmul.msk.f32.gmra.mxu1 %vm2238_vm2, %v2024_v35  ;;  %9275 = vst [vmem:[#allocation22_spill] sm:$0xff] %v7507_v1  ;;  %v405_v35 = vpack.c.bf16 %v261_v33, %v260_v27 }
 0x241   :  { %v1349_v43 = vadd.f32 %v7445_v11, %v1348_v60 }
 0x242   :  { %v955_v56 = vpop.f32.mrf.mxu0 }
 0x243   :  { %vm1670_vm1 = vcmp.gt.f32.partialorder %v1349_v43, 0.0  ;;  %v1926_v62 = vmul.f32 0.01, %v1349_v43  ;;  %v956_v45 = vadd.f32 %v7445_v11, %v955_v56  ;;  %6145 = vmatpush.xpose.msk.msrb.mxu3 %vm424_vm0, %v4321_v3 }
 0x245   :  { %v1769_v18 = vmul.f32 0.01, %v956_v45  ;;  %v7492_v28 = vpop.f32.mrf.mxu1  ;;  %v2182_v19 = vsel %vm1670_vm1, %v1349_v43, %v1926_v62  ;;  %vm1513_vm4 = vcmp.gt.f32.partialorder %v956_v45, 0.0 }
 0x246   :  { %6070 = vmatmul.msk.f32.gmra.mxu2 %vm2238_vm2, %v2182_v19 }
 0x247   :  { %6146 = vmatpush.xpose.msk.msrb.mxu3 %vm424_vm0, %v4320_v52  ;;  %v2025_v2 = vsel %vm1513_vm4, %v956_v45, %v1769_v18  ;;  %v7518_v45 = vpop.f32.mrf.mxu2 }
 0x248   :  { %v1350_v10 = vpop.f32.mrf.mxu3  ;;  %5913 = vmatmul.msk.f32.gmra.mxu1 %vm2238_vm2, %v2025_v2  ;;  %9276 = vst [vmem:[#allocation23_spill] sm:$0xff] %v7518_v45 }
 0x249   :  { %v1351_v22 = vadd.f32 %v7445_v11, %v1350_v10 }
 0x24a   :  { %v958_v60 = vpop.f32.mrf.mxu0 }
 0x24b   :  { %v1927_v43 = vmul.f32 0.01, %v1351_v22  ;;  %v959_v56 = vadd.f32 %v7445_v11, %v958_v60  ;;  %vm1671_vm5 = vcmp.gt.f32.partialorder %v1351_v22, 0.0  ;;  %v263_v60 = vld [vmem:[%s9251_s0 + $0x748] sm:$0xff] }
 0x24d   :  { %vm1514_vm6 = vcmp.gt.f32.partialorder %v959_v56, 0.0  ;;  %v1770_v3 = vmul.f32 0.01, %v959_v56  ;;  %5766 = vmatmul.msk.bf16.gmra.mxu0 %vm424_vm0, %v326_v42  ;;  %5845 = vmatmul.msk.bf16.gmra.mxu3 %vm424_vm0, %v405_v35  ;;  %v7515_v21 = vpop.f32.mrf.mxu1  ;;  %v2183_v62 = vsel %vm1671_vm5, %v1351_v22, %v1927_v43  ;;  %v104_v22 = vld [vmem:[%s9251_s0 + $0x250] sm:$0xff]  ;;  %v105_v42 = vld [vmem:[%s9251_s0 + $0x258] sm:$0xff]  ;;  %v262_v35 = vld [vmem:[%s9251_s0 + $0x740] sm:$0xff] }
 0x24e   :  { %6071 = vmatmul.msk.f32.gmra.mxu2 %vm2238_vm2, %v2183_v62 }
 0x24f   :  { %v2026_v18 = vsel %vm1514_vm6, %v959_v56, %v1770_v3  ;;  %v7538_v43 = vpop.f32.mrf.mxu2 }
 0x250   :  { %v1353_v19 = vpop.f32.mrf.mxu3  ;;  %5914 = vmatmul.msk.f32.gmra.mxu1 %vm2238_vm2, %v2026_v18  ;;  %9277 = vst [vmem:[#allocation24_spill] sm:$0xff] %v7538_v43  ;;  %v327_v18 = vpack.c.bf16 %v105_v42, %v104_v22 }
 0x251   :  { %v1354_v47 = vadd.f32 %v7445_v11, %v1353_v19  ;;  %v406_v19 = vpack.c.bf16 %v263_v60, %v262_v35 }
 0x252   :  { %v960_v52 = vpop.f32.mrf.mxu0 }
 0x253   :  { %vm1672_vm7 = vcmp.gt.f32.partialorder %v1354_v47, 0.0  ;;  %v1928_v54 = vmul.f32 0.01, %v1354_v47  ;;  %v961_v27 = vadd.f32 %v7445_v11, %v960_v52 }
 0x255   :  { %v1771_v33 = vmul.f32 0.01, %v961_v27  ;;  %v7523_v2 = vpop.f32.mrf.mxu1  ;;  %v2184_v10 = vsel %vm1672_vm7, %v1354_v47, %v1928_v54  ;;  %vm1515_vm8 = vcmp.gt.f32.partialorder %v961_v27, 0.0 }
 0x256   :  { %6072 = vmatmul.msk.f32.gmra.mxu2 %vm2238_vm2, %v2184_v10 }
 0x257   :  { %v2027_v56 = vsel %vm1515_vm8, %v961_v27, %v1771_v33  ;;  %v7548_v33 = vpop.f32.mrf.mxu2 }
 0x258   :  { %v1355_v3 = vpop.f32.mrf.mxu3  ;;  %5915 = vmatmul.msk.f32.gmra.mxu1 %vm2238_vm2, %v2027_v56  ;;  %9278 = vst [vmem:[#allocation25_spill] sm:$0xff] %v7548_v33 }
 0x259   :  { %v1356_v62 = vadd.f32 %v7445_v11, %v1355_v3 }
 0x25a   :  { %v963_v47 = vpop.f32.mrf.mxu0 }
 0x25b   :  { %v1929_v52 = vmul.f32 0.01, %v1356_v62  ;;  %v964_v54 = vadd.f32 %v7445_v11, %v963_v47  ;;  %vm1673_vm9 = vcmp.gt.f32.partialorder %v1356_v62, 0.0 }
 0x25d   :  { %vm1516_vm10 = vcmp.gt.f32.partialorder %v964_v54, 0.0  ;;  %v1772_v10 = vmul.f32 0.01, %v964_v54  ;;  %5767 = vmatmul.msk.bf16.gmra.mxu0 %vm424_vm0, %v327_v18  ;;  %5846 = vmatmul.msk.bf16.gmra.mxu3 %vm424_vm0, %v406_v19  ;;  %v7545_v20 = vpop.f32.mrf.mxu1  ;;  %v2185_v27 = vsel %vm1673_vm9, %v1356_v62, %v1929_v52  ;;  %v106_v62 = vld [vmem:[%s9251_s0 + $0x260] sm:$0xff]  ;;  %v107_v52 = vld [vmem:[%s9251_s0 + $0x268] sm:$0xff] }
 0x25e   :  { %6073 = vmatmul.msk.f32.gmra.mxu2 %vm2238_vm2, %v2185_v27 }
 0x25f   :  { %v2028_v22 = vsel %vm1516_vm10, %v964_v54, %v1772_v10  ;;  %v264_v54 = vld [vmem:[%s9251_s0 + $0x750] sm:$0xff]  ;;  %v265_v10 = vld [vmem:[%s9251_s0 + $0x758] sm:$0xff]  ;;  %v7568_v27 = vpop.f32.mrf.mxu2 }
 0x260   :  { %v1358_v42 = vpop.f32.mrf.mxu3  ;;  %5916 = vmatmul.msk.f32.gmra.mxu1 %vm2238_vm2, %v2028_v22  ;;  %9279 = vst [vmem:[#allocation26_spill] sm:$0xff] %v7568_v27 }
 0x261   :  { %v1359_v35 = vadd.f32 %v7445_v11, %v1358_v42 }
 0x262   :  { %v965_v60 = vpop.f32.mrf.mxu0 }
 0x263   :  { %vm1674_vm11 = vcmp.gt.f32.partialorder %v1359_v35, 0.0  ;;  %v1930_v56 = vmul.f32 0.01, %v1359_v35  ;;  %v966_v3 = vadd.f32 %v7445_v11, %v965_v60  ;;  %v328_v60 = vpack.c.bf16 %v107_v52, %v106_v62 }
 0x265   :  { %v1773_v18 = vmul.f32 0.01, %v966_v3  ;;  %v7553_v19 = vpop.f32.mrf.mxu1  ;;  %v2186_v47 = vsel %vm1674_vm11, %v1359_v35, %v1930_v56  ;;  %vm1517_vm12 = vcmp.gt.f32.partialorder %v966_v3, 0.0  ;;  %v407_v56 = vpack.c.bf16 %v265_v10, %v264_v54 }
 0x266   :  { %6074 = vmatmul.msk.f32.gmra.mxu2 %vm2238_vm2, %v2186_v47 }
 0x267   :  { %v2029_v22 = vsel %vm1517_vm12, %v966_v3, %v1773_v18  ;;  %v7578_v18 = vpop.f32.mrf.mxu2 }
 0x268   :  { %v1360_v42 = vpop.f32.mrf.mxu3  ;;  %5917 = vmatmul.msk.f32.gmra.mxu1 %vm2238_vm2, %v2029_v22  ;;  %9280 = vst [vmem:[#allocation27_spill] sm:$0xff] %v7578_v18 }
 0x269   :  { %v1361_v35 = vadd.f32 %v7445_v11, %v1360_v42 }
 0x26a   :  { %v968_v47 = vpop.f32.mrf.mxu0 }
 0x26b   :  { %v1931_v38 = vmul.f32 0.01, %v1361_v35  ;;  %v969_v4 = vadd.f32 %v7445_v11, %v968_v47  ;;  %vm1675_vm13 = vcmp.gt.f32.partialorder %v1361_v35, 0.0 }
 0x26d   :  { %vm1518_vm14 = vcmp.gt.f32.partialorder %v969_v4, 0.0  ;;  %v1774_v26 = vmul.f32 0.01, %v969_v4  ;;  %5768 = vmatmul.msk.bf16.gmra.mxu0 %vm424_vm0, %v328_v60  ;;  %5847 = vmatmul.msk.bf16.gmra.mxu3 %vm424_vm0, %v407_v56  ;;  %v7575_v50 = vpop.f32.mrf.mxu1  ;;  %v2187_v3 = vsel %vm1675_vm13, %v1361_v35, %v1931_v38  ;;  %v108_v38 = vld [vmem:[%s9251_s0 + $0x270] sm:$0xff]  ;;  %v267_v35 = vld [vmem:[%s9251_s0 + $0x768] sm:$0xff] }
 0x26e   :  { %6075 = vmatmul.msk.f32.gmra.mxu2 %vm2238_vm2, %v2187_v3 }
 0x26f   :  { %v2030_v62 = vsel %vm1518_vm14, %v969_v4, %v1774_v26  ;;  %v109_v4 = vld [vmem:[%s9251_s0 + $0x278] sm:$0xff]  ;;  %v266_v26 = vld [vmem:[%s9251_s0 + $0x760] sm:$0xff]  ;;  %v7596_v3 = vpop.f32.mrf.mxu2 }
 0x270   :  { %v1363_v52 = vpop.f32.mrf.mxu3  ;;  %5918 = vmatmul.msk.f32.gmra.mxu1 %vm2238_vm2, %v2030_v62  ;;  %9281 = vst [vmem:[#allocation28_spill] sm:$0xff] %v7596_v3 }
 0x271   :  { %v1364_v54 = vadd.f32 %v7445_v11, %v1363_v52 }
 0x272   :  { %v970_v10 = vpop.f32.mrf.mxu0 }
 0x273   :  { %vm1676_vm15 = vcmp.gt.f32.partialorder %v1364_v54, 0.0  ;;  %v1932_v22 = vmul.f32 0.01, %v1364_v54  ;;  %v971_v42 = vadd.f32 %v7445_v11, %v970_v10  ;;  %v329_v10 = vpack.c.bf16 %v109_v4, %v108_v38 }
 0x275   :  { %v1775_v60 = vmul.f32 0.01, %v971_v42  ;;  %v3159_v56 = vpop.f32.mrf.mxu1  ;;  %v2188_v47 = vsel %vm1676_vm15, %v1364_v54, %v1932_v22  ;;  %vm1519_vm1 = vcmp.gt.f32.partialorder %v971_v42, 0.0  ;;  %v408_v22 = vpack.c.bf16 %v267_v35, %v266_v26 }
 0x276   :  { %6076 = vmatmul.msk.f32.gmra.mxu2 %vm2238_vm2, %v2188_v47  ;;  %v3160_v55 = vadd.f32 %v7433_v25, %v3159_v56  ;;  %v3157_v56 = vadd.f32 %v7433_v25, %v7575_v50 }
 0x277   :  { %v2031_v62 = vsel %vm1519_vm1, %v971_v42, %v1775_v60  ;;  %v7604_v60 = vpop.f32.mrf.mxu2 }
 0x278   :  { %v1365_v52 = vpop.f32.mrf.mxu3  ;;  %5919 = vmatmul.msk.f32.gmra.mxu1 %vm2238_vm2, %v2031_v62  ;;  %vm3837_vm11 = vcmp.gt.f32.partialorder %v3160_v55, 0.0  ;;  %vm3836_vm13 = vcmp.gt.f32.partialorder %v3157_v56, 0.0 }
 0x279   :  { %v1366_v54 = vadd.f32 %v7445_v11, %v1365_v52 }
 0x27a   :  { %v973_v47 = vpop.f32.mrf.mxu0 }
 0x27b   :  { %v1933_v36 = vmul.f32 0.01, %v1366_v54  ;;  %v974_v48 = vadd.f32 %v7445_v11, %v973_v47  ;;  %vm1677_vm3 = vcmp.gt.f32.partialorder %v1366_v54, 0.0 }
 0x27d   :  { %vm1520_vm4 = vcmp.gt.f32.partialorder %v974_v48, 0.0  ;;  %v1776_v17 = vmul.f32 0.01, %v974_v48  ;;  %5769 = vmatmul.msk.bf16.gmra.mxu0 %vm424_vm0, %v329_v10  ;;  %5848 = vmatmul.msk.bf16.gmra.mxu3 %vm424_vm0, %v408_v22  ;;  %v3162_v63 = vpop.f32.mrf.mxu1  ;;  %v2189_v42 = vsel %vm1677_vm3, %v1366_v54, %v1933_v36  ;;  %v110_v36 = vld [vmem:[%s9251_s0 + $0x280] sm:$0xff]  ;;  %v111_v54 = vld [vmem:[%s9251_s0 + $0x288] sm:$0xff] }
 0x27e   :  { %6077 = vmatmul.msk.f32.gmra.mxu2 %vm2238_vm2, %v2189_v42  ;;  %v268_v42 = vld [vmem:[%s9251_s0 + $0x770] sm:$0xff] }
 0x27f   :  { %v2032_v62 = vsel %vm1520_vm4, %v974_v48, %v1776_v17  ;;  %v3163_v48 = vadd.f32 %v7433_v25, %v3162_v63 }
 0x280   :  { %v1368_v38 = vpop.f32.mrf.mxu3  ;;  %5920 = vmatmul.msk.f32.gmra.mxu1 %vm2238_vm2, %v2032_v62  ;;  %v269_v62 = vld [vmem:[%s9251_s0 + $0x778] sm:$0xff] }
 0x281   :  { %v1369_v4 = vadd.f32 %v7445_v11, %v1368_v38  ;;  %v7624_v38 = vpop.f32.mrf.mxu2  ;;  %v4094_v44 = vmul.f32 0.01, %v3163_v48  ;;  %vm3838_vm9 = vcmp.gt.f32.partialorder %v3163_v48, 0.0 }
 0x282   :  { %v975_v26 = vpop.f32.mrf.mxu0 }
 0x283   :  { %vm1678_vm5 = vcmp.gt.f32.partialorder %v1369_v4, 0.0  ;;  %v1934_v35 = vmul.f32 0.01, %v1369_v4  ;;  %v976_v52 = vadd.f32 %v7445_v11, %v975_v26 }
 0x285   :  { %v1777_v10 = vmul.f32 0.01, %v976_v52  ;;  %v3165_v47 = vpop.f32.mrf.mxu1  ;;  %v2190_v22 = vsel %vm1678_vm5, %v1369_v4, %v1934_v35  ;;  %vm1521_vm6 = vcmp.gt.f32.partialorder %v976_v52, 0.0 }
 0x286   :  { %v3166_v17 = vadd.f32 %v7433_v25, %v3165_v47  ;;  %6078 = vmatmul.msk.f32.gmra.mxu2 %vm2238_vm2, %v2190_v22  ;;  %v330_v47 = vpack.c.bf16 %v111_v54, %v110_v36  ;;  %v409_v22 = vpack.c.bf16 %v269_v62, %v268_v42 }
 0x287   :  { %v2033_v4 = vsel %vm1521_vm6, %v976_v52, %v1777_v10 }
 0x288   :  { %vm3839_vm7 = vcmp.gt.f32.partialorder %v3166_v17, 0.0  ;;  %v4095_v63 = vmul.f32 0.01, %v3166_v17  ;;  %v1370_v26 = vpop.f32.mrf.mxu3  ;;  %5921 = vmatmul.msk.f32.gmra.mxu1 %vm2238_vm2, %v2033_v4  ;;  %v4092_v4 = vmul.f32 0.01, %v3157_v56 }
 0x289   :  { %v1371_v35 = vadd.f32 %v7445_v11, %v1370_v26  ;;  %v7638_v54 = vpop.f32.mrf.mxu2 }
 0x28a   :  { %v978_v1 = vpop.f32.mrf.mxu0  ;;  %v4351_v29 = vsel %vm3839_vm7, %v3166_v17, %v4095_v63  ;;  %v4093_v17 = vmul.f32 0.01, %v3160_v55 }
 0x28b   :  { %v1935_v45 = vmul.f32 0.01, %v1371_v35  ;;  %v979_v58 = vadd.f32 %v7445_v11, %v978_v1  ;;  %6148 = vmatpush.xpose.msk.msra.mxu2 %vm424_vm0, %v4351_v29  ;;  %vm1679_vm8 = vcmp.gt.f32.partialorder %v1371_v35, 0.0  ;;  %v4350_v1 = vsel %vm3838_vm9, %v3163_v48, %v4094_v44 }
 0x28c   :  { %v4349_v63 = vsel %vm3837_vm11, %v3160_v55, %v4093_v17  ;;  %v271_v17 = vld [vmem:[%s9251_s0 + $0x788] sm:$0xff] }
 0x28d   :  { %vm1522_vm10 = vcmp.gt.f32.partialorder %v979_v58, 0.0  ;;  %v1778_v52 = vmul.f32 0.01, %v979_v58  ;;  %5770 = vmatmul.msk.bf16.gmra.mxu0 %vm424_vm0, %v330_v47  ;;  %5849 = vmatmul.msk.bf16.gmra.mxu3 %vm424_vm0, %v409_v22  ;;  %v7633_v10 = vpop.f32.mrf.mxu1  ;;  %v2191_v36 = vsel %vm1679_vm8, %v1371_v35, %v1935_v45  ;;  %v3154_v45 = vadd.f32 %v7433_v25, %v7553_v19  ;;  %v112_v47 = vld [vmem:[%s9251_s0 + $0x290] sm:$0xff] }
 0x28e   :  { %6079 = vmatmul.msk.f32.gmra.mxu2 %vm2238_vm2, %v2191_v36  ;;  %v3151_v19 = vadd.f32 %v7433_v25, %v7545_v20  ;;  %v4348_v22 = vsel %vm3836_vm13, %v3157_v56, %v4092_v4  ;;  %v270_v36 = vld [vmem:[%s9251_s0 + $0x780] sm:$0xff]  ;;  %v3148_v4 = vadd.f32 %v7433_v25, %v7523_v2  ;;  %v3145_v2 = vadd.f32 %v7433_v25, %v7515_v21 }
 0x28f   :  { %6149 = vmatpush.xpose.msk.msra.mxu2 %vm424_vm0, %v4350_v1  ;;  %v2034_v29 = vsel %vm1522_vm10, %v979_v58, %v1778_v52  ;;  %v4091_v55 = vmul.f32 0.01, %v3154_v45  ;;  %v113_v52 = vld [vmem:[%s9251_s0 + $0x298] sm:$0xff]  ;;  %vm3835_vm15 = vcmp.gt.f32.partialorder %v3154_v45, 0.0 }
 0x290   :  { %v1373_v42 = vpop.f32.mrf.mxu3  ;;  %5922 = vmatmul.msk.f32.gmra.mxu1 %vm2238_vm2, %v2034_v29  ;;  %vm3834_vm3 = vcmp.gt.f32.partialorder %v3151_v19, 0.0  ;;  %vm3833_vm5 = vcmp.gt.f32.partialorder %v3148_v4, 0.0  ;;  %vm3832_vm7 = vcmp.gt.f32.partialorder %v3145_v2, 0.0 }
 0x291   :  { %v1374_v62 = vadd.f32 %v7445_v11, %v1373_v42  ;;  %v7664_v1 = vpop.f32.mrf.mxu2  ;;  %v331_v42 = vpack.c.bf16 %v113_v52, %v112_v47 }
 0x292   :  { %v980_v50 = vpop.f32.mrf.mxu0 }
 0x293   :  { %vm1680_vm12 = vcmp.gt.f32.partialorder %v1374_v62, 0.0  ;;  %v1936_v26 = vmul.f32 0.01, %v1374_v62  ;;  %v981_v44 = vadd.f32 %v7445_v11, %v980_v50  ;;  %6150 = vmatpush.xpose.msk.msra.mxu2 %vm424_vm0, %v4349_v63  ;;  %v4090_v50 = vmul.f32 0.01, %v3151_v19 }
 0x295   :  { %v1779_v58 = vmul.f32 0.01, %v981_v44  ;;  %v7647_v48 = vpop.f32.mrf.mxu1  ;;  %v2192_v35 = vsel %vm1680_vm12, %v1374_v62, %v1936_v26  ;;  %vm1523_vm14 = vcmp.gt.f32.partialorder %v981_v44, 0.0  ;;  %v410_v62 = vpack.c.bf16 %v271_v17, %v270_v36 }
 0x296   :  { %6080 = vmatmul.msk.f32.gmra.mxu2 %vm2238_vm2, %v2192_v35  ;;  %v4347_v26 = vsel %vm3835_vm15, %v3154_v45, %v4091_v55  ;;  %v4089_v45 = vmul.f32 0.01, %v3148_v4  ;;  %v4346_v55 = vsel %vm3834_vm3, %v3151_v19, %v4090_v50 }
 0x297   :  { %6151 = vmatpush.xpose.msk.msra.mxu2 %vm424_vm0, %v4348_v22  ;;  %v2035_v20 = vsel %vm1523_vm14, %v981_v44, %v1779_v58 }
 0x298   :  { %v1375_v29 = vpop.f32.mrf.mxu3  ;;  %5923 = vmatmul.msk.f32.gmra.mxu1 %vm2238_vm2, %v2035_v20  ;;  %v3142_v20 = vadd.f32 %v7433_v25, %v7492_v28  ;;  %v3139_v28 = vadd.f32 %v7433_v25, %v7480_v30 }
 0x299   :  { %v1376_v56 = vadd.f32 %v7445_v11, %v1375_v29  ;;  %v7680_v22 = vpop.f32.mrf.mxu2  ;;  %v4088_v29 = vmul.f32 0.01, %v3145_v2 }
 0x29a   :  { %v983_v63 = vpop.f32.mrf.mxu0  ;;  %vm3831_vm9 = vcmp.gt.f32.partialorder %v3142_v20, 0.0  ;;  %vm3830_vm11 = vcmp.gt.f32.partialorder %v3139_v28, 0.0 }
 0x29b   :  { %v1937_v35 = vmul.f32 0.01, %v1376_v56  ;;  %v984_v43 = vadd.f32 %v7445_v11, %v983_v63  ;;  %6152 = vmatpush.xpose.msk.msra.mxu2 %vm424_vm0, %v4347_v26  ;;  %vm1681_vm1 = vcmp.gt.f32.partialorder %v1376_v56, 0.0  ;;  %v114_v63 = vld [vmem:[%s9251_s0 + $0x2a0] sm:$0xff]  ;;  %v4344_v26 = vsel %vm3832_vm7, %v3145_v2, %v4088_v29 }
 0x29c   :  { %v4086_v29 = vmul.f32 0.01, %v3139_v28 }
 0x29d   :  { %vm1524_vm4 = vcmp.gt.f32.partialorder %v984_v43, 0.0  ;;  %v1780_v44 = vmul.f32 0.01, %v984_v43  ;;  %5771 = vmatmul.msk.bf16.gmra.mxu0 %vm424_vm0, %v331_v42  ;;  %5850 = vmatmul.msk.bf16.gmra.mxu3 %vm424_vm0, %v410_v62  ;;  %v7675_v58 = vpop.f32.mrf.mxu1  ;;  %v2193_v47 = vsel %vm1681_vm1, %v1376_v56, %v1937_v35  ;;  %v4345_v56 = vsel %vm3833_vm5, %v3148_v4, %v4089_v45  ;;  %v115_v35 = vld [vmem:[%s9251_s0 + $0x2a8] sm:$0xff] }
 0x29e   :  { %6081 = vmatmul.msk.f32.gmra.mxu2 %vm2238_vm2, %v2193_v47  ;;  %v4087_v4 = vmul.f32 0.01, %v3142_v20  ;;  %v273_v47 = vld [vmem:[%s9251_s0 + $0x798] sm:$0xff] }
 0x29f   :  { %6153 = vmatpush.xpose.msk.msra.mxu2 %vm424_vm0, %v4346_v55  ;;  %v2036_v52 = vsel %vm1524_vm4, %v984_v43, %v1780_v44  ;;  %v272_v44 = vld [vmem:[%s9251_s0 + $0x790] sm:$0xff] }
 0x2a0   :  { %v1378_v36 = vpop.f32.mrf.mxu3  ;;  %5924 = vmatmul.msk.f32.gmra.mxu1 %vm2238_vm2, %v2036_v52  ;;  %v332_v52 = vpack.c.bf16 %v115_v35, %v114_v63 }
 0x2a1   :  { %v1379_v17 = vadd.f32 %v7445_v11, %v1378_v36  ;;  %v7706_v45 = vpop.f32.mrf.mxu2  ;;  %v411_v36 = vpack.c.bf16 %v273_v47, %v272_v44 }
 0x2a2   :  { %v985_v21 = vpop.f32.mrf.mxu0 }
 0x2a3   :  { %vm1682_vm6 = vcmp.gt.f32.partialorder %v1379_v17, 0.0  ;;  %v1938_v42 = vmul.f32 0.01, %v1379_v17  ;;  %v986_v19 = vadd.f32 %v7445_v11, %v985_v21  ;;  %6154 = vmatpush.xpose.msk.msra.mxu2 %vm424_vm0, %v4345_v56  ;;  %v4343_v56 = vsel %vm3831_vm9, %v3142_v20, %v4087_v4 }
 0x2a4   :  { %v4342_v4 = vsel %vm3830_vm11, %v3139_v28, %v4086_v29 }
 0x2a5   :  { %v1781_v43 = vmul.f32 0.01, %v986_v19  ;;  %v7689_v62 = vpop.f32.mrf.mxu1  ;;  %v2194_v50 = vsel %vm1682_vm6, %v1379_v17, %v1938_v42  ;;  %vm1525_vm8 = vcmp.gt.f32.partialorder %v986_v19, 0.0  ;;  %v3136_v17 = vadd.f32 %v7433_v25, %v7452_v7 }
 0x2a6   :  { %6082 = vmatmul.msk.f32.gmra.mxu2 %vm2238_vm2, %v2194_v50  ;;  %v3133_v7 = vadd.f32 %v7433_v25, %v7428_v61 }
 0x2a7   :  { %6155 = vmatpush.xpose.msk.msra.mxu2 %vm424_vm0, %v4344_v26  ;;  %v2037_v30 = vsel %vm1525_vm8, %v986_v19, %v1781_v43  ;;  %v4085_v20 = vmul.f32 0.01, %v3136_v17  ;;  %vm3829_vm13 = vcmp.gt.f32.partialorder %v3136_v17, 0.0 }
 0x2a8   :  { %v1380_v55 = vpop.f32.mrf.mxu3  ;;  %5925 = vmatmul.msk.f32.gmra.mxu1 %vm2238_vm2, %v2037_v30  ;;  %v3130_v30 = vadd.f32 %v7433_v25, %v7400_v8  ;;  %vm3828_vm15 = vcmp.gt.f32.partialorder %v3133_v7, 0.0  ;;  %v3127_v8 = vadd.f32 %v7433_v25, %v7386_v12 }
 0x2a9   :  { %v1381_v2 = vadd.f32 %v7445_v11, %v1380_v55  ;;  %v7722_v26 = vpop.f32.mrf.mxu2  ;;  %v4084_v55 = vmul.f32 0.01, %v3133_v7 }
 0x2aa   :  { %v988_v21 = vpop.f32.mrf.mxu0  ;;  %vm3827_vm3 = vcmp.gt.f32.partialorder %v3130_v30, 0.0  ;;  %vm3826_vm5 = vcmp.gt.f32.partialorder %v3127_v8, 0.0 }
 0x2ab   :  { %v1939_v42 = vmul.f32 0.01, %v1381_v2  ;;  %v989_v50 = vadd.f32 %v7445_v11, %v988_v21  ;;  %6156 = vmatpush.xpose.msk.msra.mxu2 %vm424_vm0, %v4343_v56  ;;  %vm1683_vm10 = vcmp.gt.f32.partialorder %v1381_v2, 0.0  ;;  %v116_v56 = vld [vmem:[%s9251_s0 + $0x2b0] sm:$0xff] }
 0x2ad   :  { %vm1526_vm12 = vcmp.gt.f32.partialorder %v989_v50, 0.0  ;;  %v1782_v19 = vmul.f32 0.01, %v989_v50  ;;  %5772 = vmatmul.msk.bf16.gmra.mxu0 %vm424_vm0, %v332_v52  ;;  %5851 = vmatmul.msk.bf16.gmra.mxu3 %vm424_vm0, %v411_v36  ;;  %v7717_v43 = vpop.f32.mrf.mxu1  ;;  %v2195_v63 = vsel %vm1683_vm10, %v1381_v2, %v1939_v42  ;;  %v4341_v2 = vsel %vm3829_vm13, %v3136_v17, %v4085_v20 }
 0x2ae   :  { %6083 = vmatmul.msk.f32.gmra.mxu2 %vm2238_vm2, %v2195_v63  ;;  %v4083_v17 = vmul.f32 0.01, %v3130_v30  ;;  %v4340_v42 = vsel %vm3828_vm15, %v3133_v7, %v4084_v55  ;;  %v275_v63 = vld [vmem:[%s9251_s0 + $0x7a8] sm:$0xff]  ;;  %v4082_v55 = vmul.f32 0.01, %v3127_v8 }
 0x2af   :  { %6157 = vmatpush.xpose.msk.msra.mxu2 %vm424_vm0, %v4342_v4  ;;  %v2038_v35 = vsel %vm1526_vm12, %v989_v50, %v1782_v19  ;;  %v117_v50 = vld [vmem:[%s9251_s0 + $0x2b8] sm:$0xff]  ;;  %v274_v19 = vld [vmem:[%s9251_s0 + $0x7a0] sm:$0xff] }
 0x2b0   :  { %v1383_v44 = vpop.f32.mrf.mxu3  ;;  %5926 = vmatmul.msk.f32.gmra.mxu1 %vm2238_vm2, %v2038_v35  ;;  %v333_v35 = vpack.c.bf16 %v117_v50, %v116_v56 }
 0x2b1   :  { %v1384_v47 = vadd.f32 %v7445_v11, %v1383_v44  ;;  %v7748_v20 = vpop.f32.mrf.mxu2  ;;  %v412_v44 = vpack.c.bf16 %v275_v63, %v274_v19 }
 0x2b2   :  { %v990_v61 = vpop.f32.mrf.mxu0 }
 0x2b3   :  { %vm1684_vm14 = vcmp.gt.f32.partialorder %v1384_v47, 0.0  ;;  %v1940_v52 = vmul.f32 0.01, %v1384_v47  ;;  %v991_v28 = vadd.f32 %v7445_v11, %v990_v61  ;;  %6158 = vmatpush.xpose.msk.msra.mxu2 %vm424_vm0, %v4341_v2  ;;  %v4339_v2 = vsel %vm3827_vm3, %v3130_v30, %v4083_v17 }
 0x2b4   :  { %v4338_v17 = vsel %vm3826_vm5, %v3127_v8, %v4082_v55  ;;  %v118_v55 = vld [vmem:[%s9251_s0 + $0x2c0] sm:$0xff] }
 0x2b5   :  { %v1783_v36 = vmul.f32 0.01, %v991_v28  ;;  %v7731_v29 = vpop.f32.mrf.mxu1  ;;  %v2196_v21 = vsel %vm1684_vm14, %v1384_v47, %v1940_v52  ;;  %vm1527_vm1 = vcmp.gt.f32.partialorder %v991_v28, 0.0  ;;  %v3124_v47 = vadd.f32 %v7433_v25, %v7358_v16 }
 0x2b6   :  { %6084 = vmatmul.msk.f32.gmra.mxu2 %vm2238_vm2, %v2196_v21  ;;  %v3121_v16 = vadd.f32 %v7433_v25, %v7344_v32 }
 0x2b7   :  { %6159 = vmatpush.xpose.msk.msra.mxu2 %vm424_vm0, %v4340_v42  ;;  %v2039_v12 = vsel %vm1527_vm1, %v991_v28, %v1783_v36  ;;  %v4081_v30 = vmul.f32 0.01, %v3124_v47  ;;  %vm3825_vm7 = vcmp.gt.f32.partialorder %v3124_v47, 0.0 }
 0x2b8   :  { %v1385_v4 = vpop.f32.mrf.mxu3  ;;  %5927 = vmatmul.msk.f32.gmra.mxu1 %vm2238_vm2, %v2039_v12  ;;  %v4080_v12 = vmul.f32 0.01, %v3121_v16  ;;  %vm3824_vm9 = vcmp.gt.f32.partialorder %v3121_v16, 0.0 }
 0x2b9   :  { %v1386_v7 = vadd.f32 %v7445_v11, %v1385_v4  ;;  %v7764_v42 = vpop.f32.mrf.mxu2 }
 0x2ba   :  { %v993_v61 = vpop.f32.mrf.mxu0 }
 0x2bb   :  { %v1941_v52 = vmul.f32 0.01, %v1386_v7  ;;  %v994_v21 = vadd.f32 %v7445_v11, %v993_v61  ;;  %6160 = vmatpush.xpose.msk.msra.mxu2 %vm424_vm0, %v4339_v2  ;;  %vm1685_vm4 = vcmp.gt.f32.partialorder %v1386_v7, 0.0  ;;  %v4336_v61 = vsel %vm3824_vm9, %v3121_v16, %v4080_v12  ;;  %v276_v2 = vld [vmem:[%s9251_s0 + $0x7b0] sm:$0xff] }
 0x2bd   :  { %vm1528_vm6 = vcmp.gt.f32.partialorder %v994_v21, 0.0  ;;  %v1784_v28 = vmul.f32 0.01, %v994_v21  ;;  %5773 = vmatmul.msk.bf16.gmra.mxu0 %vm424_vm0, %v333_v35  ;;  %5852 = vmatmul.msk.bf16.gmra.mxu3 %vm424_vm0, %v412_v44  ;;  %v7759_v36 = vpop.f32.mrf.mxu1  ;;  %v2197_v56 = vsel %vm1685_vm4, %v1386_v7, %v1941_v52  ;;  %v4337_v7 = vsel %vm3825_vm7, %v3124_v47, %v4081_v30  ;;  %v119_v47 = vld [vmem:[%s9251_s0 + $0x2c8] sm:$0xff]  ;;  %v277_v52 = vld [vmem:[%s9251_s0 + $0x7b8] sm:$0xff] }
 0x2be   :  { %6085 = vmatmul.msk.f32.gmra.mxu2 %vm2238_vm2, %v2197_v56  ;;  %v334_v30 = vpack.c.bf16 %v119_v47, %v118_v55 }
 0x2bf   :  { %6161 = vmatpush.xpose.msk.msra.mxu2 %vm424_vm0, %v4338_v17  ;;  %v2040_v50 = vsel %vm1528_vm6, %v994_v21, %v1784_v28  ;;  %v413_v17 = vpack.c.bf16 %v277_v52, %v276_v2 }
 0x2c0   :  { %v1388_v19 = vpop.f32.mrf.mxu3  ;;  %5928 = vmatmul.msk.f32.gmra.mxu1 %vm2238_vm2, %v2040_v50 }
 0x2c1   :  { %v1389_v63 = vadd.f32 %v7445_v11, %v1388_v19  ;;  %v7786_v21 = vpop.f32.mrf.mxu2 }
 0x2c2   :  { %v995_v4 = vpop.f32.mrf.mxu0  ;;  %9282 = vst [vmem:[#allocation29_spill] sm:$0xff] %v7786_v21 }
 0x2c3   :  { %vm1686_vm8 = vcmp.gt.f32.partialorder %v1389_v63, 0.0  ;;  %v1942_v32 = vmul.f32 0.01, %v1389_v63  ;;  %v996_v25 = vadd.f32 %v7445_v11, %v995_v4  ;;  %6162 = vmatpush.xpose.msk.msra.mxu2 %vm424_vm0, %v4337_v7 }
 0x2c5   :  { %v1785_v8 = vmul.f32 0.01, %v996_v25  ;;  %v7771_v35 = vpop.f32.mrf.mxu1  ;;  %v2198_v44 = vsel %vm1686_vm8, %v1389_v63, %v1942_v32  ;;  %vm1529_vm10 = vcmp.gt.f32.partialorder %v996_v25, 0.0 }
 0x2c6   :  { %6086 = vmatmul.msk.f32.gmra.mxu2 %vm2238_vm2, %v2198_v44 }
 0x2c7   :  { %6163 = vmatpush.xpose.msk.msra.mxu2 %vm424_vm0, %v4336_v61  ;;  %v2041_v28 = vsel %vm1529_vm10, %v996_v25, %v1785_v8 }
 0x2c8   :  { %v1390_v56 = vpop.f32.mrf.mxu3  ;;  %5929 = vmatmul.msk.f32.gmra.mxu1 %vm2238_vm2, %v2041_v28 }
 0x2c9   :  { %v1391_v16 = vadd.f32 %v7445_v11, %v1390_v56  ;;  %v7797_v32 = vpop.f32.mrf.mxu2  ;;  %v120_v56 = vld [vmem:[%s9251_s0 + $0x2d0] sm:$0xff] }
 0x2ca   :  { %v998_v50 = vpop.f32.mrf.mxu0  ;;  %9283 = vst [vmem:[#allocation30_spill] sm:$0xff] %v7797_v32 }
 0x2cb   :  { %v1943_v19 = vmul.f32 0.01, %v1391_v16  ;;  %v999_v63 = vadd.f32 %v7445_v11, %v998_v50  ;;  %vm1687_vm11 = vcmp.gt.f32.partialorder %v1391_v16, 0.0 }
 0x2cd   :  { %vm1530_vm12 = vcmp.gt.f32.partialorder %v999_v63, 0.0  ;;  %v1786_v12 = vmul.f32 0.01, %v999_v63  ;;  %5774 = vmatmul.msk.bf16.gmra.mxu0 %vm424_vm0, %v334_v30  ;;  %5853 = vmatmul.msk.bf16.gmra.mxu3 %vm424_vm0, %v413_v17  ;;  %v7794_v4 = vpop.f32.mrf.mxu1  ;;  %v2199_v7 = vsel %vm1687_vm11, %v1391_v16, %v1943_v19  ;;  %v121_v16 = vld [vmem:[%s9251_s0 + $0x2d8] sm:$0xff]  ;;  %v278_v30 = vld [vmem:[%s9251_s0 + $0x7c0] sm:$0xff]  ;;  %v279_v17 = vld [vmem:[%s9251_s0 + $0x7c8] sm:$0xff] }
 0x2ce   :  { %6087 = vmatmul.msk.f32.gmra.mxu2 %vm2238_vm2, %v2199_v7  ;;  %v335_v7 = vpack.c.bf16 %v121_v16, %v120_v56 }
 0x2cf   :  { %v2042_v25 = vsel %vm1530_vm12, %v999_v63, %v1786_v12 }
 0x2d0   :  { %v1393_v8 = vpop.f32.mrf.mxu3  ;;  %5930 = vmatmul.msk.f32.gmra.mxu1 %vm2238_vm2, %v2042_v25  ;;  %v414_v25 = vpack.c.bf16 %v279_v17, %v278_v30 }
 0x2d1   :  { %v1394_v44 = vadd.f32 %v7445_v11, %v1393_v8  ;;  %v7817_v50 = vpop.f32.mrf.mxu2 }
 0x2d2   :  { %v1000_v55 = vpop.f32.mrf.mxu0  ;;  %9284 = vst [vmem:[#allocation31_spill] sm:$0xff] %v7817_v50 }
 0x2d3   :  { %vm1688_vm13 = vcmp.gt.f32.partialorder %v1394_v44, 0.0  ;;  %v1944_v61 = vmul.f32 0.01, %v1394_v44  ;;  %v1001_v47 = vadd.f32 %v7445_v11, %v1000_v55 }
 0x2d5   :  { %v1787_v2 = vmul.f32 0.01, %v1001_v47  ;;  %v7802_v52 = vpop.f32.mrf.mxu1  ;;  %v2200_v28 = vsel %vm1688_vm13, %v1394_v44, %v1944_v61  ;;  %vm1531_vm14 = vcmp.gt.f32.partialorder %v1001_v47, 0.0 }
 0x2d6   :  { %6088 = vmatmul.msk.f32.gmra.mxu2 %vm2238_vm2, %v2200_v28 }
 0x2d7   :  { %v2043_v19 = vsel %vm1531_vm14, %v1001_v47, %v1787_v2 }
 0x2d8   :  { %v1395_v63 = vpop.f32.mrf.mxu3  ;;  %5931 = vmatmul.msk.f32.gmra.mxu1 %vm2238_vm2, %v2043_v19 }
 0x2d9   :  { %v1396_v12 = vadd.f32 %v7445_v11, %v1395_v63  ;;  %v7827_v2 = vpop.f32.mrf.mxu2 }
 0x2da   :  { %v1003_v8 = vpop.f32.mrf.mxu0  ;;  %9285 = vst [vmem:[#allocation32_spill] sm:$0xff] %v7827_v2 }
 0x2db   :  { %v1945_v44 = vmul.f32 0.01, %v1396_v12  ;;  %v1004_v55 = vadd.f32 %v7445_v11, %v1003_v8  ;;  %vm1689_vm15 = vcmp.gt.f32.partialorder %v1396_v12, 0.0 }
 0x2dd   :  { %vm1532_vm1 = vcmp.gt.f32.partialorder %v1004_v55, 0.0  ;;  %v1788_v61 = vmul.f32 0.01, %v1004_v55  ;;  %5775 = vmatmul.msk.bf16.gmra.mxu0 %vm424_vm0, %v335_v7  ;;  %5854 = vmatmul.msk.bf16.gmra.mxu3 %vm424_vm0, %v414_v25  ;;  %v7824_v28 = vpop.f32.mrf.mxu1  ;;  %v2201_v47 = vsel %vm1689_vm15, %v1396_v12, %v1945_v44  ;;  %v122_v12 = vld [vmem:[%s9251_s0 + $0x2e0] sm:$0xff]  ;;  %v123_v44 = vld [vmem:[%s9251_s0 + $0x2e8] sm:$0xff] }
 0x2de   :  { %6089 = vmatmul.msk.f32.gmra.mxu2 %vm2238_vm2, %v2201_v47 }
 0x2df   :  { %v2044_v56 = vsel %vm1532_vm1, %v1004_v55, %v1788_v61  ;;  %v281_v55 = vld [vmem:[%s9251_s0 + $0x7d8] sm:$0xff] }
 0x2e0   :  { %v1398_v16 = vpop.f32.mrf.mxu3  ;;  %5932 = vmatmul.msk.f32.gmra.mxu1 %vm2238_vm2, %v2044_v56 }
 0x2e1   :  { %v1399_v30 = vadd.f32 %v7445_v11, %v1398_v16  ;;  %v7847_v61 = vpop.f32.mrf.mxu2  ;;  %v7853_v16 = vld [vmem:[%s9253_s2] ss:$0 sm:$0xff] }
 0x2e2   :  { %v1005_v17 = vpop.f32.mrf.mxu0  ;;  %9286 = vst [vmem:[#allocation33_spill] sm:$0xff] %v7847_v61 }
 0x2e3   :  { %v1946_v19 = vmul.f32 0.01, %v1399_v30  ;;  %v1006_v63 = vadd.f32 %v7445_v11, %v1005_v17  ;;  %vm1690_vm3 = vcmp.gt.f32.partialorder %v1399_v30, 0.0  ;;  %v280_v11 = vld [vmem:[%s9251_s0 + $0x7d0] sm:$0xff]  ;;  %v336_v17 = vpack.c.bf16 %v123_v44, %v122_v12 }
 0x2e5   :  { %v1789_v7 = vmul.f32 0.01, %v1006_v63  ;;  %v7832_v25 = vpop.f32.mrf.mxu1  ;;  %v2202_v8 = vsel %vm1690_vm3, %v1399_v30, %v1946_v19  ;;  %vm1533_vm4 = vcmp.gt.f32.partialorder %v1006_v63, 0.0  ;;  %v415_v19 = vpack.c.bf16 %v281_v55, %v280_v11 }
 0x2e6   :  { %6090 = vmatmul.msk.f32.gmra.mxu2 %vm2238_vm2, %v2202_v8 }
 0x2e7   :  { %v2045_v47 = vsel %vm1533_vm4, %v1006_v63, %v1789_v7 }
 0x2e8   :  { %v1400_v56 = vpop.f32.mrf.mxu3  ;;  %5933 = vmatmul.msk.f32.gmra.mxu1 %vm2238_vm2, %v2045_v47 }
 0x2e9   :  { %v1401_v30 = vadd.f32 %v7853_v16, %v1400_v56  ;;  %v7862_v47 = vpop.f32.mrf.mxu2 }
 0x2ea   :  { %v1008_v8 = vpop.f32.mrf.mxu0  ;;  %9287 = vst [vmem:[#allocation34_spill] sm:$0xff] %v7862_v47 }
 0x2eb   :  { %v1947_v21 = vmul.f32 0.01, %v1401_v30  ;;  %v1009_v32 = vadd.f32 %v7853_v16, %v1008_v8  ;;  %vm1691_vm5 = vcmp.gt.f32.partialorder %v1401_v30, 0.0 }
 0x2ed   :  { %vm1534_vm6 = vcmp.gt.f32.partialorder %v1009_v32, 0.0  ;;  %v1790_v50 = vmul.f32 0.01, %v1009_v32  ;;  %5776 = vmatmul.msk.bf16.gmra.mxu0 %vm424_vm0, %v336_v17  ;;  %5855 = vmatmul.msk.bf16.gmra.mxu3 %vm424_vm0, %v415_v19  ;;  %v7859_v63 = vpop.f32.mrf.mxu1  ;;  %v2203_v7 = vsel %vm1691_vm5, %v1401_v30, %v1947_v21  ;;  %v124_v21 = vld [vmem:[%s9251_s0 + $0x2f0] sm:$0xff]  ;;  %v283_v30 = vld [vmem:[%s9251_s0 + $0x7e8] sm:$0xff] }
 0x2ee   :  { %6091 = vmatmul.msk.f32.gmra.mxu2 %vm2238_vm2, %v2203_v7 }
 0x2ef   :  { %v2046_v12 = vsel %vm1534_vm6, %v1009_v32, %v1790_v50  ;;  %v125_v32 = vld [vmem:[%s9251_s0 + $0x2f8] sm:$0xff]  ;;  %v282_v50 = vld [vmem:[%s9251_s0 + $0x7e0] sm:$0xff] }
 0x2f0   :  { %v1403_v44 = vpop.f32.mrf.mxu3  ;;  %5934 = vmatmul.msk.f32.gmra.mxu1 %vm2238_vm2, %v2046_v12 }
 0x2f1   :  { %v1404_v11 = vadd.f32 %v7853_v16, %v1403_v44  ;;  %v7880_v7 = vpop.f32.mrf.mxu2 }
 0x2f2   :  { %v1010_v55 = vpop.f32.mrf.mxu0  ;;  %9288 = vst [vmem:[#allocation35_spill] sm:$0xff] %v7880_v7 }
 0x2f3   :  { %v1948_v56 = vmul.f32 0.01, %v1404_v11  ;;  %v1011_v8 = vadd.f32 %v7853_v16, %v1010_v55  ;;  %vm1692_vm7 = vcmp.gt.f32.partialorder %v1404_v11, 0.0  ;;  %v416_v55 = vpack.c.bf16 %v283_v30, %v282_v50 }
 0x2f5   :  { %v1791_v17 = vmul.f32 0.01, %v1011_v8  ;;  %v3207_v19 = vpop.f32.mrf.mxu1  ;;  %v2204_v2 = vsel %vm1692_vm7, %v1404_v11, %v1948_v56  ;;  %vm1535_vm8 = vcmp.gt.f32.partialorder %v1011_v8, 0.0  ;;  %v337_v11 = vpack.c.bf16 %v125_v32, %v124_v21 }
 0x2f6   :  { %6092 = vmatmul.msk.f32.gmra.mxu2 %vm2238_vm2, %v2204_v2 }
 0x2f7   :  { %v2047_v12 = vsel %vm1535_vm8, %v1011_v8, %v1791_v17 }
 0x2f8   :  { %v1405_v44 = vpop.f32.mrf.mxu3  ;;  %5935 = vmatmul.msk.f32.gmra.mxu1 %vm2238_vm2, %v2047_v12 }
 0x2f9   :  { %v1406_v2 = vadd.f32 %v7853_v16, %v1405_v44  ;;  %v7888_v17 = vpop.f32.mrf.mxu2 }
 0x2fa   :  { %v1013_v56 = vpop.f32.mrf.mxu0  ;;  %9289 = vst [vmem:[#allocation36_spill] sm:$0xff] %v7888_v17 }
 0x2fb   :  { %v1949_v61 = vmul.f32 0.01, %v1406_v2  ;;  %v1014_v47 = vadd.f32 %v7853_v16, %v1013_v56  ;;  %vm1693_vm9 = vcmp.gt.f32.partialorder %v1406_v2, 0.0 }
 0x2fd   :  { %vm1536_vm10 = vcmp.gt.f32.partialorder %v1014_v47, 0.0  ;;  %v1792_v0 = vmul.f32 0.01, %v1014_v47  ;;  %5777 = vmatmul.msk.bf16.gmra.mxu0 %vm424_vm0, %v337_v11  ;;  %5856 = vmatmul.msk.bf16.gmra.mxu3 %vm424_vm0, %v416_v55  ;;  %v3210_v7 = vpop.f32.mrf.mxu1  ;;  %v2205_v8 = vsel %vm1693_vm9, %v1406_v2, %v1949_v61  ;;  %v126_v61 = vld [vmem:[%s9251_s0 + $0x300] sm:$0xff] }
 0x2fe   :  { %6093 = vmatmul.msk.f32.gmra.mxu2 %vm2238_vm2, %v2205_v8  ;;  %v127_v8 = vld [vmem:[%s9251_s0 + $0x308] sm:$0xff] }
 0x2ff   :  { %v2048_v12 = vsel %vm1536_vm10, %v1014_v47, %v1792_v0  ;;  %v7899_v0 = vld [vmem:[%s9255_s4] ss:$0 sm:$0xff] }
 0x300   :  { %v1408_v21 = vpop.f32.mrf.mxu3  ;;  %5936 = vmatmul.msk.f32.gmra.mxu1 %vm2238_vm2, %v2048_v12  ;;  %v3211_v47 = vadd.f32 %v7899_v0, %v3210_v7  ;;  %v284_v12 = vld [vmem:[%s9251_s0 + $0x7f0] sm:$0xff]  ;;  %v3208_v33 = vadd.f32 %v7899_v0, %v3207_v19  ;;  %v3205_v19 = vadd.f32 %v7899_v0, %v7859_v63 }
 0x301   :  { %v1409_v32 = vadd.f32 %v7853_v16, %v1408_v21  ;;  %v285_v21 = vld [vmem:[%s9251_s0 + $0x7f8] sm:$0xff] }
 0x302   :  { %v1015_v50 = vpop.f32.mrf.mxu0  ;;  %v417_v17 = vpack.c.bf16 %v285_v21, %v284_v12  ;;  %v4110_v14 = vmul.f32 0.01, %v3211_v47  ;;  %vm3854_vm15 = vcmp.gt.f32.partialorder %v3211_v47, 0.0  ;;  %vm3853_vm3 = vcmp.gt.f32.partialorder %v3208_v33, 0.0 }
 0x303   :  { %v1950_v30 = vmul.f32 0.01, %v1409_v32  ;;  %v1016_v44 = vadd.f32 %v7853_v16, %v1015_v50  ;;  %vm1694_vm11 = vcmp.gt.f32.partialorder %v1409_v32, 0.0  ;;  %v4108_v21 = vmul.f32 0.01, %v3205_v19 }
 0x304   :  { %vm3852_vm5 = vcmp.gt.f32.partialorder %v3205_v19, 0.0 }
 0x305   :  { %v1793_v11 = vmul.f32 0.01, %v1016_v44  ;;  %v3213_v56 = vpop.f32.mrf.mxu1  ;;  %v2206_v55 = vsel %vm1694_vm11, %v1409_v32, %v1950_v30  ;;  %vm1537_vm12 = vcmp.gt.f32.partialorder %v1016_v44, 0.0  ;;  %v7913_v32 = vpop.f32.mrf.mxu2 }
 0x306   :  { %v3214_v2 = vadd.f32 %v7899_v0, %v3213_v56  ;;  %6094 = vmatmul.msk.f32.gmra.mxu2 %vm2238_vm2, %v2206_v55  ;;  %9290 = vst [vmem:[#allocation37_spill] sm:$0xff] %v7913_v32  ;;  %v338_v55 = vpack.c.bf16 %v127_v8, %v126_v61 }
 0x307   :  { %v2049_v50 = vsel %vm1537_vm12, %v1016_v44, %v1793_v11 }
 0x308   :  { %vm3855_vm13 = vcmp.gt.f32.partialorder %v3214_v2, 0.0  ;;  %v4111_v7 = vmul.f32 0.01, %v3214_v2  ;;  %v1410_v30 = vpop.f32.mrf.mxu3  ;;  %5937 = vmatmul.msk.f32.gmra.mxu1 %vm2238_vm2, %v2049_v50 }
 0x309   :  { %v1411_v56 = vadd.f32 %v7853_v16, %v1410_v30 }
 0x30a   :  { %v1018_v27 = vpop.f32.mrf.mxu0  ;;  %v4367_v41 = vsel %vm3855_vm13, %v3214_v2, %v4111_v7  ;;  %v4109_v2 = vmul.f32 0.01, %v3208_v33 }
 0x30b   :  { %v1951_v18 = vmul.f32 0.01, %v1411_v56  ;;  %v1019_v3 = vadd.f32 %v7853_v16, %v1018_v27  ;;  %6165 = vmatpush.xpose.msk.msra.mxu3 %vm424_vm0, %v4367_v41  ;;  %vm1695_vm14 = vcmp.gt.f32.partialorder %v1411_v56, 0.0  ;;  %v4366_v27 = vsel %vm3854_vm15, %v3211_v47, %v4110_v14 }
 0x30c   :  { %v4365_v50 = vsel %vm3853_vm3, %v3208_v33, %v4109_v2  ;;  %v128_v33 = vld [vmem:[%s9251_s0 + $0x310] sm:$0xff] }
 0x30d   :  { %vm1538_vm1 = vcmp.gt.f32.partialorder %v1019_v3, 0.0  ;;  %v1794_v44 = vmul.f32 0.01, %v1019_v3  ;;  %5778 = vmatmul.msk.bf16.gmra.mxu0 %vm424_vm0, %v338_v55  ;;  %5857 = vmatmul.msk.bf16.gmra.mxu3 %vm424_vm0, %v417_v17  ;;  %v7922_v11 = vpop.f32.mrf.mxu1  ;;  %v2207_v61 = vsel %vm1695_vm14, %v1411_v56, %v1951_v18  ;;  %v7927_v8 = vpop.f32.mrf.mxu2  ;;  %v3202_v18 = vadd.f32 %v7899_v0, %v7832_v25 }
 0x30e   :  { %6095 = vmatmul.msk.f32.gmra.mxu2 %vm2238_vm2, %v2207_v61  ;;  %9291 = vst [vmem:[#allocation38_spill] sm:$0xff] %v7927_v8  ;;  %v3199_v56 = vadd.f32 %v7899_v0, %v7824_v28  ;;  %v4364_v25 = vsel %vm3852_vm5, %v3205_v19, %v4108_v21 }
 0x30f   :  { %6166 = vmatpush.xpose.msk.msra.mxu3 %vm424_vm0, %v4366_v27  ;;  %v2050_v41 = vsel %vm1538_vm1, %v1019_v3, %v1794_v44  ;;  %v4107_v55 = vmul.f32 0.01, %v3202_v18  ;;  %v129_v44 = vld [vmem:[%s9251_s0 + $0x318] sm:$0xff]  ;;  %vm3851_vm7 = vcmp.gt.f32.partialorder %v3202_v18, 0.0 }
 0x310   :  { %v1413_v12 = vpop.f32.mrf.mxu3  ;;  %5938 = vmatmul.msk.f32.gmra.mxu1 %vm2238_vm2, %v2050_v41  ;;  %v339_v19 = vpack.c.bf16 %v129_v44, %v128_v33  ;;  %v3196_v41 = vadd.f32 %v7899_v0, %v7802_v52  ;;  %vm3850_vm9 = vcmp.gt.f32.partialorder %v3199_v56, 0.0  ;;  %v3193_v52 = vadd.f32 %v7899_v0, %v7794_v4 }
 0x311   :  { %v1414_v17 = vadd.f32 %v7853_v16, %v1413_v12  ;;  %v4106_v12 = vmul.f32 0.01, %v3199_v56  ;;  %v4363_v21 = vsel %vm3851_vm7, %v3202_v18, %v4107_v55  ;;  %v3190_v44 = vadd.f32 %v7899_v0, %v7771_v35 }
 0x312   :  { %v1020_v63 = vpop.f32.mrf.mxu0  ;;  %vm3849_vm11 = vcmp.gt.f32.partialorder %v3196_v41, 0.0  ;;  %vm3848_vm13 = vcmp.gt.f32.partialorder %v3193_v52, 0.0  ;;  %v3187_v35 = vadd.f32 %v7899_v0, %v7759_v36 }
 0x313   :  { %v1952_v7 = vmul.f32 0.01, %v1414_v17  ;;  %v1021_v14 = vadd.f32 %v7853_v16, %v1020_v63  ;;  %6167 = vmatpush.xpose.msk.msra.mxu3 %vm424_vm0, %v4365_v50  ;;  %vm1696_vm4 = vcmp.gt.f32.partialorder %v1414_v17, 0.0  ;;  %v4362_v18 = vsel %vm3850_vm9, %v3199_v56, %v4106_v12 }
 0x314   :  { %vm3847_vm15 = vcmp.gt.f32.partialorder %v3190_v44, 0.0  ;;  %vm3846_vm3 = vcmp.gt.f32.partialorder %v3187_v35, 0.0 }
 0x315   :  { %v1795_v3 = vmul.f32 0.01, %v1021_v14  ;;  %v7936_v47 = vpop.f32.mrf.mxu1  ;;  %v2208_v30 = vsel %vm1696_vm4, %v1414_v17, %v1952_v7  ;;  %vm1539_vm6 = vcmp.gt.f32.partialorder %v1021_v14, 0.0  ;;  %v7949_v28 = vpop.f32.mrf.mxu2 }
 0x316   :  { %6096 = vmatmul.msk.f32.gmra.mxu2 %vm2238_vm2, %v2208_v30  ;;  %9292 = vst [vmem:[#allocation39_spill] sm:$0xff] %v7949_v28  ;;  %v4105_v30 = vmul.f32 0.01, %v3196_v41 }
 0x317   :  { %6168 = vmatpush.xpose.msk.msra.mxu3 %vm424_vm0, %v4364_v25  ;;  %v2051_v61 = vsel %vm1539_vm6, %v1021_v14, %v1795_v3 }
 0x318   :  { %v1415_v2 = vpop.f32.mrf.mxu3  ;;  %5939 = vmatmul.msk.f32.gmra.mxu1 %vm2238_vm2, %v2051_v61  ;;  %v4104_v61 = vmul.f32 0.01, %v3193_v52 }
 0x319   :  { %v1416_v27 = vadd.f32 %v7853_v16, %v1415_v2 }
 0x31a   :  { %v1023_v17 = vpop.f32.mrf.mxu0 }
 0x31b   :  { %v1953_v63 = vmul.f32 0.01, %v1416_v27  ;;  %v1024_v50 = vadd.f32 %v7853_v16, %v1023_v17  ;;  %6169 = vmatpush.xpose.msk.msra.mxu3 %vm424_vm0, %v4363_v21  ;;  %vm1697_vm8 = vcmp.gt.f32.partialorder %v1416_v27, 0.0 }
 0x31d   :  { %vm1540_vm10 = vcmp.gt.f32.partialorder %v1024_v50, 0.0  ;;  %v1796_v7 = vmul.f32 0.01, %v1024_v50  ;;  %5779 = vmatmul.msk.bf16.gmra.mxu0 %vm424_vm0, %v339_v19  ;;  %v7957_v14 = vpop.f32.mrf.mxu1  ;;  %v2209_v3 = vsel %vm1697_vm8, %v1416_v27, %v1953_v63  ;;  %v4361_v27 = vsel %vm3849_vm11, %v3196_v41, %v4105_v30  ;;  %v7967_v4 = vpop.f32.mrf.mxu2 }
 0x31e   :  { %6097 = vmatmul.msk.f32.gmra.mxu2 %vm2238_vm2, %v2209_v3  ;;  %9293 = vst [vmem:[#allocation40_spill] sm:$0xff] %v7967_v4  ;;  %v4103_v63 = vmul.f32 0.01, %v3190_v44  ;;  %v4360_v41 = vsel %vm3848_vm13, %v3193_v52, %v4104_v61  ;;  %v3184_v52 = vadd.f32 %v7899_v0, %v7731_v29  ;;  %v3181_v29 = vadd.f32 %v7899_v0, %v7717_v43 }
 0x31f   :  { %6170 = vmatpush.xpose.msk.msra.mxu3 %vm424_vm0, %v4362_v18  ;;  %v2052_v55 = vsel %vm1540_vm10, %v1024_v50, %v1796_v7  ;;  %v130_v50 = vld [vmem:[%s9251_s0 + $0x320] sm:$0xff]  ;;  %v131_v7 = vld [vmem:[%s9251_s0 + $0x328] sm:$0xff] }
 0x320   :  { %v1418_v25 = vpop.f32.mrf.mxu3  ;;  %5940 = vmatmul.msk.f32.gmra.mxu1 %vm2238_vm2, %v2052_v55  ;;  %v340_v18 = vpack.c.bf16 %v131_v7, %v130_v50  ;;  %v4102_v55 = vmul.f32 0.01, %v3187_v35  ;;  %vm3845_vm5 = vcmp.gt.f32.partialorder %v3184_v52, 0.0  ;;  %v3178_v7 = vadd.f32 %v7899_v0, %v7689_v62 }
 0x321   :  { %v1419_v33 = vadd.f32 %v7853_v16, %v1418_v25  ;;  %vm3844_vm7 = vcmp.gt.f32.partialorder %v3181_v29, 0.0 }
 0x322   :  { %v1025_v2 = vpop.f32.mrf.mxu0  ;;  %vm3843_vm9 = vcmp.gt.f32.partialorder %v3178_v7, 0.0 }
 0x323   :  { %vm1698_vm12 = vcmp.gt.f32.partialorder %v1419_v33, 0.0  ;;  %v1954_v19 = vmul.f32 0.01, %v1419_v33  ;;  %v1026_v56 = vadd.f32 %v7853_v16, %v1025_v2  ;;  %6171 = vmatpush.xpose.msk.msra.mxu3 %vm424_vm0, %v4361_v27 }
 0x325   :  { %v1797_v12 = vmul.f32 0.01, %v1026_v56  ;;  %v7971_v17 = vpop.f32.mrf.mxu1  ;;  %v2210_v21 = vsel %vm1698_vm12, %v1419_v33, %v1954_v19  ;;  %vm1541_vm14 = vcmp.gt.f32.partialorder %v1026_v56, 0.0  ;;  %v4359_v33 = vsel %vm3847_vm15, %v3190_v44, %v4103_v63  ;;  %v7989_v27 = vpop.f32.mrf.mxu2 }
 0x326   :  { %6098 = vmatmul.msk.f32.gmra.mxu2 %vm2238_vm2, %v2210_v21  ;;  %9294 = vst [vmem:[#allocation41_spill] sm:$0xff] %v7989_v27  ;;  %v4101_v44 = vmul.f32 0.01, %v3184_v52  ;;  %v4358_v21 = vsel %vm3846_vm3, %v3187_v35, %v4102_v55 }
 0x327   :  { %6172 = vmatpush.xpose.msk.msra.mxu3 %vm424_vm0, %v4360_v41  ;;  %v2053_v3 = vsel %vm1541_vm14, %v1026_v56, %v1797_v12 }
 0x328   :  { %v1420_v30 = vpop.f32.mrf.mxu3  ;;  %5941 = vmatmul.msk.f32.gmra.mxu1 %vm2238_vm2, %v2053_v3  ;;  %v4100_v3 = vmul.f32 0.01, %v3181_v29 }
 0x329   :  { %v1421_v36 = vadd.f32 %v7853_v16, %v1420_v30 }
 0x32a   :  { %v1028_v25 = vpop.f32.mrf.mxu0  ;;  %v4356_v62 = vsel %vm3844_vm7, %v3181_v29, %v4100_v3 }
 0x32b   :  { %vm1699_vm1 = vcmp.gt.f32.partialorder %v1421_v36, 0.0  ;;  %v1955_v61 = vmul.f32 0.01, %v1421_v36  ;;  %v1029_v2 = vadd.f32 %v7853_v16, %v1028_v25  ;;  %6173 = vmatpush.xpose.msk.msra.mxu3 %vm424_vm0, %v4359_v33  ;;  %v3175_v33 = vadd.f32 %v7899_v0, %v7675_v58 }
 0x32d   :  { %vm1542_vm4 = vcmp.gt.f32.partialorder %v1029_v2, 0.0  ;;  %v1798_v19 = vmul.f32 0.01, %v1029_v2  ;;  %5780 = vmatmul.msk.bf16.gmra.mxu0 %vm424_vm0, %v340_v18  ;;  %v7992_v56 = vpop.f32.mrf.mxu1  ;;  %v2211_v12 = vsel %vm1699_vm1, %v1421_v36, %v1955_v61  ;;  %v4357_v36 = vsel %vm3845_vm5, %v3184_v52, %v4101_v44  ;;  %v132_v52 = vld [vmem:[%s9251_s0 + $0x330] sm:$0xff] }
 0x32e   :  { %6099 = vmatmul.msk.f32.gmra.mxu2 %vm2238_vm2, %v2211_v12  ;;  %v4099_v61 = vmul.f32 0.01, %v3178_v7  ;;  %vm3842_vm11 = vcmp.gt.f32.partialorder %v3175_v33, 0.0 }
 0x32f   :  { %6174 = vmatpush.xpose.msk.msra.mxu3 %vm424_vm0, %v4358_v21  ;;  %v2054_v63 = vsel %vm1542_vm4, %v1029_v2, %v1798_v19  ;;  %v133_v2 = vld [vmem:[%s9251_s0 + $0x338] sm:$0xff]  ;;  %v8015_v19 = vpop.f32.mrf.mxu2  ;;  %v3172_v21 = vadd.f32 %v7899_v0, %v7647_v48  ;;  %v3169_v48 = vadd.f32 %v7899_v0, %v7633_v10 }
 0x330   :  { %v1423_v41 = vpop.f32.mrf.mxu3  ;;  %5942 = vmatmul.msk.f32.gmra.mxu1 %vm2238_vm2, %v2054_v63  ;;  %9295 = vst [vmem:[#allocation42_spill] sm:$0xff] %v8015_v19  ;;  %v341_v29 = vpack.c.bf16 %v133_v2, %v132_v52  ;;  %v4098_v63 = vmul.f32 0.01, %v3175_v33 }
 0x331   :  { %v1424_v50 = vadd.f32 %v7853_v16, %v1423_v41  ;;  %vm3841_vm13 = vcmp.gt.f32.partialorder %v3172_v21, 0.0  ;;  %v4096_v2 = vmul.f32 0.01, %v3169_v48  ;;  %vm3840_vm15 = vcmp.gt.f32.partialorder %v3169_v48, 0.0 }
 0x332   :  { %v1030_v30 = vpop.f32.mrf.mxu0 }
 0x333   :  { %vm1700_vm6 = vcmp.gt.f32.partialorder %v1424_v50, 0.0  ;;  %v1956_v43 = vmul.f32 0.01, %v1424_v50  ;;  %v1031_v18 = vadd.f32 %v7853_v16, %v1030_v30  ;;  %6175 = vmatpush.xpose.msk.msra.mxu3 %vm424_vm0, %v4357_v36 }
 0x335   :  { %v1799_v35 = vmul.f32 0.01, %v1031_v18  ;;  %v8004_v55 = vpop.f32.mrf.mxu1  ;;  %v2212_v25 = vsel %vm1700_vm6, %v1424_v50, %v1956_v43  ;;  %vm1543_vm8 = vcmp.gt.f32.partialorder %v1031_v18, 0.0  ;;  %v4355_v50 = vsel %vm3843_vm9, %v3178_v7, %v4099_v61 }
 0x336   :  { %6100 = vmatmul.msk.f32.gmra.mxu2 %vm2238_vm2, %v2212_v25  ;;  %v4354_v7 = vsel %vm3842_vm11, %v3175_v33, %v4098_v63 }
 0x337   :  { %6176 = vmatpush.xpose.msk.msra.mxu3 %vm424_vm0, %v4356_v62  ;;  %v2055_v12 = vsel %vm1543_vm8, %v1031_v18, %v1799_v35  ;;  %v4097_v35 = vmul.f32 0.01, %v3172_v21  ;;  %v8032_v62 = vpop.f32.mrf.mxu2 }
 0x338   :  { %v1425_v44 = vpop.f32.mrf.mxu3  ;;  %5943 = vmatmul.msk.f32.gmra.mxu1 %vm2238_vm2, %v2055_v12  ;;  %9296 = vst [vmem:[#allocation43_spill] sm:$0xff] %v8032_v62 }
 0x339   :  { %v1426_v58 = vadd.f32 %v7853_v16, %v1425_v44  ;;  %v4353_v44 = vsel %vm3841_vm13, %v3172_v21, %v4097_v35  ;;  %v135_v21 = vld [vmem:[%s9251_s0 + $0x348] sm:$0xff] }
 0x33a   :  { %v1033_v41 = vpop.f32.mrf.mxu0 }
 0x33b   :  { %vm1701_vm10 = vcmp.gt.f32.partialorder %v1426_v58, 0.0  ;;  %v1957_v3 = vmul.f32 0.01, %v1426_v58  ;;  %v1034_v30 = vadd.f32 %v7853_v16, %v1033_v41  ;;  %6177 = vmatpush.xpose.msk.msra.mxu3 %vm424_vm0, %v4355_v50  ;;  %v4352_v41 = vsel %vm3840_vm15, %v3169_v48, %v4096_v2  ;;  %v134_v50 = vld [vmem:[%s9251_s0 + $0x340] sm:$0xff] }
 0x33d   :  { %vm1544_vm12 = vcmp.gt.f32.partialorder %v1034_v30, 0.0  ;;  %v1800_v36 = vmul.f32 0.01, %v1034_v30  ;;  %5781 = vmatmul.msk.bf16.gmra.mxu0 %vm424_vm0, %v341_v29  ;;  %v8025_v43 = vpop.f32.mrf.mxu1  ;;  %v2213_v18 = vsel %vm1701_vm10, %v1426_v58, %v1957_v3 }
 0x33e   :  { %6101 = vmatmul.msk.f32.gmra.mxu2 %vm2238_vm2, %v2213_v18  ;;  %v342_v18 = vpack.c.bf16 %v135_v21, %v134_v50 }
 0x33f   :  { %6178 = vmatpush.xpose.msk.msra.mxu3 %vm424_vm0, %v4354_v7  ;;  %v2056_v25 = vsel %vm1544_vm12, %v1034_v30, %v1800_v36  ;;  %v8049_v7 = vpop.f32.mrf.mxu2 }
 0x340   :  { %v1428_v61 = vpop.f32.mrf.mxu3  ;;  %5944 = vmatmul.msk.f32.gmra.mxu1 %vm2238_vm2, %v2056_v25  ;;  %9297 = vst [vmem:[#allocation44_spill] sm:$0xff] %v8049_v7 }
 0x341   :  { %v1429_v52 = vadd.f32 %v7853_v16, %v1428_v61 }
 0x342   :  { %v1035_v12 = vpop.f32.mrf.mxu0 }
 0x343   :  { %vm1702_vm14 = vcmp.gt.f32.partialorder %v1429_v52, 0.0  ;;  %v1958_v10 = vmul.f32 0.01, %v1429_v52  ;;  %v1036_v58 = vadd.f32 %v7853_v16, %v1035_v12  ;;  %6179 = vmatpush.xpose.msk.msra.mxu3 %vm424_vm0, %v4353_v44 }
 0x345   :  { %v1801_v33 = vmul.f32 0.01, %v1036_v58  ;;  %v8037_v29 = vpop.f32.mrf.mxu1  ;;  %v2214_v63 = vsel %vm1702_vm14, %v1429_v52, %v1958_v10  ;;  %vm1545_vm1 = vcmp.gt.f32.partialorder %v1036_v58, 0.0 }
 0x346   :  { %6102 = vmatmul.msk.f32.gmra.mxu2 %vm2238_vm2, %v2214_v63 }
 0x347   :  { %6180 = vmatpush.xpose.msk.msra.mxu3 %vm424_vm0, %v4352_v41  ;;  %v2057_v3 = vsel %vm1545_vm1, %v1036_v58, %v1801_v33  ;;  %v8059_v41 = vpop.f32.mrf.mxu2 }
 0x348   :  { %v1430_v30 = vpop.f32.mrf.mxu3  ;;  %5945 = vmatmul.msk.f32.gmra.mxu1 %vm2238_vm2, %v2057_v3  ;;  %9298 = vst [vmem:[#allocation45_spill] sm:$0xff] %v8059_v41 }
 0x349   :  { %v1431_v36 = vadd.f32 %v7853_v16, %v1430_v30  ;;  %v136_v30 = vld [vmem:[%s9251_s0 + $0x350] sm:$0xff] }
 0x34a   :  { %v1038_v35 = vpop.f32.mrf.mxu0 }
 0x34b   :  { %vm1703_vm3 = vcmp.gt.f32.partialorder %v1431_v36, 0.0  ;;  %v1959_v48 = vmul.f32 0.01, %v1431_v36  ;;  %v1039_v25 = vadd.f32 %v7853_v16, %v1038_v35 }
 0x34d   :  { %vm1546_vm4 = vcmp.gt.f32.partialorder %v1039_v25, 0.0  ;;  %v1802_v61 = vmul.f32 0.01, %v1039_v25  ;;  %5782 = vmatmul.msk.bf16.gmra.mxu0 %vm424_vm0, %v342_v18  ;;  %v8053_v52 = vpop.f32.mrf.mxu1  ;;  %v2215_v2 = vsel %vm1703_vm3, %v1431_v36, %v1959_v48  ;;  %v137_v36 = vld [vmem:[%s9251_s0 + $0x358] sm:$0xff] }
 0x34e   :  { %6103 = vmatmul.msk.f32.gmra.mxu2 %vm2238_vm2, %v2215_v2 }
 0x34f   :  { %v2058_v12 = vsel %vm1546_vm4, %v1039_v25, %v1802_v61  ;;  %v343_v25 = vpack.c.bf16 %v137_v36, %v136_v30 }
 0x350   :  { %v1433_v44 = vpop.f32.mrf.mxu3  ;;  %5946 = vmatmul.msk.f32.gmra.mxu1 %vm2238_vm2, %v2058_v12 }
 0x351   :  { %v1434_v10 = vadd.f32 %v7853_v16, %v1433_v44 }
 0x352   :  { %v1040_v58 = vpop.f32.mrf.mxu0 }
 0x353   :  { %vm1704_vm5 = vcmp.gt.f32.partialorder %v1434_v10, 0.0  ;;  %v1960_v33 = vmul.f32 0.01, %v1434_v10  ;;  %v1041_v63 = vadd.f32 %v7853_v16, %v1040_v58 }
 0x355   :  { %v1803_v50 = vmul.f32 0.01, %v1041_v63  ;;  %v8061_v21 = vpop.f32.mrf.mxu1  ;;  %v2216_v3 = vsel %vm1704_vm5, %v1434_v10, %v1960_v33  ;;  %vm1547_vm6 = vcmp.gt.f32.partialorder %v1041_v63, 0.0  ;;  %v8077_v33 = vpop.f32.mrf.mxu2 }
 0x356   :  { %6104 = vmatmul.msk.f32.gmra.mxu2 %vm2238_vm2, %v2216_v3  ;;  %9299 = vst [vmem:[#allocation46_spill] sm:$0xff] %v8077_v33 }
 0x357   :  { %v2059_v18 = vsel %vm1547_vm6, %v1041_v63, %v1803_v50 }
 0x358   :  { %v1435_v35 = vpop.f32.mrf.mxu3  ;;  %5947 = vmatmul.msk.f32.gmra.mxu1 %vm2238_vm2, %v2059_v18 }
 0x359   :  { %v1436_v48 = vadd.f32 %v7853_v16, %v1435_v35 }
 0x35a   :  { %v1043_v61 = vpop.f32.mrf.mxu0 }
 0x35b   :  { %vm1705_vm7 = vcmp.gt.f32.partialorder %v1436_v48, 0.0  ;;  %v1961_v2 = vmul.f32 0.01, %v1436_v48  ;;  %v1044_v12 = vadd.f32 %v7853_v16, %v1043_v61 }
 0x35d   :  { %vm1548_vm8 = vcmp.gt.f32.partialorder %v1044_v12, 0.0  ;;  %v1804_v44 = vmul.f32 0.01, %v1044_v12  ;;  %5783 = vmatmul.msk.bf16.gmra.mxu0 %vm424_vm0, %v343_v25  ;;  %v8074_v10 = vpop.f32.mrf.mxu1  ;;  %v2217_v58 = vsel %vm1705_vm7, %v1436_v48, %v1961_v2  ;;  %v138_v48 = vld [vmem:[%s9251_s0 + $0x360] sm:$0xff]  ;;  %v139_v2 = vld [vmem:[%s9251_s0 + $0x368] sm:$0xff] }
 0x35e   :  { %6105 = vmatmul.msk.f32.gmra.mxu2 %vm2238_vm2, %v2217_v58  ;;  %v8092_v58 = vpop.f32.mrf.mxu2 }
 0x35f   :  { %v2060_v63 = vsel %vm1548_vm8, %v1044_v12, %v1804_v44  ;;  %9300 = vst [vmem:[#allocation47_spill] sm:$0xff] %v8092_v58 }
 0x360   :  { %v1438_v50 = vpop.f32.mrf.mxu3  ;;  %5948 = vmatmul.msk.f32.gmra.mxu1 %vm2238_vm2, %v2060_v63 }
 0x361   :  { %v1439_v3 = vadd.f32 %v7853_v16, %v1438_v50  ;;  %v344_v50 = vpack.c.bf16 %v139_v2, %v138_v48 }
 0x362   :  { %v1045_v30 = vpop.f32.mrf.mxu0 }
 0x363   :  { %vm1706_vm9 = vcmp.gt.f32.partialorder %v1439_v3, 0.0  ;;  %v1962_v36 = vmul.f32 0.01, %v1439_v3  ;;  %v1046_v18 = vadd.f32 %v7853_v16, %v1045_v30 }
 0x365   :  { %v1805_v35 = vmul.f32 0.01, %v1046_v18  ;;  %v8082_v25 = vpop.f32.mrf.mxu1  ;;  %v2218_v61 = vsel %vm1706_vm9, %v1439_v3, %v1962_v36  ;;  %vm1549_vm10 = vcmp.gt.f32.partialorder %v1046_v18, 0.0 }
 0x366   :  { %6106 = vmatmul.msk.f32.gmra.mxu2 %vm2238_vm2, %v2218_v61 }
 0x367   :  { %v2061_v12 = vsel %vm1549_vm10, %v1046_v18, %v1805_v35 }
 0x368   :  { %v1440_v44 = vpop.f32.mrf.mxu3  ;;  %5949 = vmatmul.msk.f32.gmra.mxu1 %vm2238_vm2, %v2061_v12 }
 0x369   :  { %v1441_v63 = vadd.f32 %v7853_v16, %v1440_v44  ;;  %v8102_v44 = vpop.f32.mrf.mxu2 }
 0x36a   :  { %v1048_v3 = vpop.f32.mrf.mxu0  ;;  %9301 = vst [vmem:[#allocation48_spill] sm:$0xff] %v8102_v44 }
 0x36b   :  { %vm1707_vm11 = vcmp.gt.f32.partialorder %v1441_v63, 0.0  ;;  %v1963_v30 = vmul.f32 0.01, %v1441_v63  ;;  %v1049_v36 = vadd.f32 %v7853_v16, %v1048_v3 }
 0x36d   :  { %vm1550_vm12 = vcmp.gt.f32.partialorder %v1049_v36, 0.0  ;;  %v1806_v61 = vmul.f32 0.01, %v1049_v36  ;;  %5784 = vmatmul.msk.bf16.gmra.mxu0 %vm424_vm0, %v344_v50  ;;  %v8097_v32 = vpop.f32.mrf.mxu1  ;;  %v2219_v18 = vsel %vm1707_vm11, %v1441_v63, %v1963_v30  ;;  %v140_v63 = vld [vmem:[%s9251_s0 + $0x370] sm:$0xff]  ;;  %v141_v30 = vld [vmem:[%s9251_s0 + $0x378] sm:$0xff] }
 0x36e   :  { %6107 = vmatmul.msk.f32.gmra.mxu2 %vm2238_vm2, %v2219_v18 }
 0x36f   :  { %v2062_v35 = vsel %vm1550_vm12, %v1049_v36, %v1806_v61 }
 0x370   :  { %v1443_v12 = vpop.f32.mrf.mxu3  ;;  %5950 = vmatmul.msk.f32.gmra.mxu1 %vm2238_vm2, %v2062_v35  ;;  %v345_v35 = vpack.c.bf16 %v141_v30, %v140_v63 }
 0x371   :  { %v1444_v48 = vadd.f32 %v7853_v16, %v1443_v12 }
 0x372   :  { %v1050_v2 = vpop.f32.mrf.mxu0 }
 0x373   :  { %vm1708_vm13 = vcmp.gt.f32.partialorder %v1444_v48, 0.0  ;;  %v1964_v3 = vmul.f32 0.01, %v1444_v48  ;;  %v1051_v8 = vadd.f32 %v7853_v16, %v1050_v2  ;;  %v8117_v2 = vpop.f32.mrf.mxu2 }
 0x374   :  { %9302 = vst [vmem:[#allocation49_spill] sm:$0xff] %v8117_v2 }
 0x375   :  { %v1807_v28 = vmul.f32 0.01, %v1051_v8  ;;  %v8105_v50 = vpop.f32.mrf.mxu1  ;;  %v2220_v41 = vsel %vm1708_vm13, %v1444_v48, %v1964_v3  ;;  %vm1551_vm14 = vcmp.gt.f32.partialorder %v1051_v8, 0.0 }
 0x376   :  { %6108 = vmatmul.msk.f32.gmra.mxu2 %vm2238_vm2, %v2220_v41 }
 0x377   :  { %v2063_v36 = vsel %vm1551_vm14, %v1051_v8, %v1807_v28 }
 0x378   :  { %v1445_v61 = vpop.f32.mrf.mxu3  ;;  %5951 = vmatmul.msk.f32.gmra.mxu1 %vm2238_vm2, %v2063_v36 }
 0x379   :  { %v1446_v18 = vadd.f32 %v7853_v16, %v1445_v61 }
 0x37a   :  { %v1053_v12 = vpop.f32.mrf.mxu0 }
 0x37b   :  { %vm1709_vm15 = vcmp.gt.f32.partialorder %v1446_v18, 0.0  ;;  %v1965_v48 = vmul.f32 0.01, %v1446_v18  ;;  %v1054_v41 = vadd.f32 %v7853_v16, %v1053_v12 }
 0x37d   :  { %vm1552_vm1 = vcmp.gt.f32.partialorder %v1054_v41, 0.0  ;;  %v1808_v3 = vmul.f32 0.01, %v1054_v41  ;;  %5785 = vmatmul.msk.bf16.gmra.mxu0 %vm424_vm0, %v345_v35  ;;  %v8120_v4 = vpop.f32.mrf.mxu1  ;;  %v2221_v8 = vsel %vm1709_vm15, %v1446_v18, %v1965_v48  ;;  %v8129_v18 = vld [vmem:[%s9256_s5] sm:$0x1]  ;;  %v143_v48 = vld [vmem:[%s9251_s0 + $0x388] sm:$0xff] }
 0x37e   :  { %6109 = vmatmul.msk.f32.gmra.mxu2 %vm2238_vm2, %v2221_v8  ;;  %v142_v35 = vld [vmem:[%s9251_s0 + $0x380] sm:$0xff]  ;;  %6147 = vmatmul.msk.f32.vlgmr.msrb.gmra.mxu3 %vm424_vm0, %v8129_v18 }
 0x37f   :  { %v2064_v28 = vsel %vm1552_vm1, %v1054_v41, %v1808_v3  ;;  %v8138_v41 = vpop.f32.mrf.mxu2 }
 0x380   :  { %v1448_v36 = vpop.f32.mrf.mxu3  ;;  %5952 = vmatmul.msk.f32.gmra.mxu1 %vm2238_vm2, %v2064_v28  ;;  %9303 = vst [vmem:[#allocation50_spill] sm:$0xff] %v8138_v41 }
 0x381   :  { %v1449_v63 = vadd.f32 %v7853_v16, %v1448_v36 }
 0x382   :  { %v1055_v30 = vpop.f32.mrf.mxu0 }
 0x383   :  { %vm1710_vm3 = vcmp.gt.f32.partialorder %v1449_v63, 0.0  ;;  %v1966_v61 = vmul.f32 0.01, %v1449_v63  ;;  %v1056_v12 = vadd.f32 %v7853_v16, %v1055_v30 }
 0x385   :  { %v1809_v33 = vmul.f32 0.01, %v1056_v12  ;;  %v3261_v27 = vpop.f32.mrf.mxu1  ;;  %v2222_v58 = vsel %vm1710_vm3, %v1449_v63, %v1966_v61  ;;  %vm1553_vm4 = vcmp.gt.f32.partialorder %v1056_v12, 0.0 }
 0x386   :  { %6110 = vmatmul.msk.f32.gmra.mxu2 %vm2238_vm2, %v2222_v58  ;;  %v346_v58 = vpack.c.bf16 %v143_v48, %v142_v35  ;;  %6181 = vmatmul.msk.f32.vlgmr.msra.gmra.mxu3 %vm424_vm0, %v8129_v18 }
 0x387   :  { %v2065_v3 = vsel %vm1553_vm4, %v1056_v12, %v1809_v33  ;;  %v8152_v35 = vpop.f32.mrf.mxu2 }
 0x388   :  { %v1450_v8 = vpop.f32.mrf.mxu3  ;;  %5953 = vmatmul.msk.f32.gmra.mxu1 %vm2238_vm2, %v2065_v3  ;;  %9304 = vst [vmem:[#allocation51_spill] sm:$0xff] %v8152_v35 }
 0x389   :  { %v1451_v28 = vadd.f32 %v7853_v16, %v1450_v8 }
 0x38a   :  { %v1058_v36 = vpop.f32.mrf.mxu0 }
 0x38b   :  { %vm1711_vm5 = vcmp.gt.f32.partialorder %v1451_v28, 0.0  ;;  %v1967_v63 = vmul.f32 0.01, %v1451_v28  ;;  %v1059_v30 = vadd.f32 %v7853_v16, %v1058_v36 }
 0x38d   :  { %vm1554_vm6 = vcmp.gt.f32.partialorder %v1059_v30, 0.0  ;;  %v1810_v61 = vmul.f32 0.01, %v1059_v30  ;;  %5786 = vmatmul.msk.bf16.gmra.mxu0 %vm424_vm0, %v346_v58  ;;  %v8146_v19 = vpop.f32.mrf.mxu1  ;;  %v2223_v44 = vsel %vm1711_vm5, %v1451_v28, %v1967_v63  ;;  %v144_v63 = vld [vmem:[%s9251_s0 + $0x390] sm:$0xff] }
 0x38e   :  { %6111 = vmatmul.msk.f32.gmra.mxu2 %vm2238_vm2, %v2223_v44 }
 0x38f   :  { %v2066_v33 = vsel %vm1554_vm6, %v1059_v30, %v1810_v61  ;;  %v145_v30 = vld [vmem:[%s9251_s0 + $0x398] sm:$0xff] }
 0x390   :  { %v1453_v12 = vpop.f32.mrf.mxu3  ;;  %5954 = vmatmul.msk.f32.gmra.mxu1 %vm2238_vm2, %v2066_v33 }
 0x391   :  { %v1454_v48 = vadd.f32 %v7853_v16, %v1453_v12 }
 0x392   :  { %v1060_v3 = vpop.f32.mrf.mxu0 }
 0x393   :  { %vm1712_vm7 = vcmp.gt.f32.partialorder %v1454_v48, 0.0  ;;  %v1968_v8 = vmul.f32 0.01, %v1454_v48  ;;  %v1061_v58 = vadd.f32 %v7853_v16, %v1060_v3  ;;  %v347_v3 = vpack.c.bf16 %v145_v30, %v144_v63 }
 0x394   :  { %v3259_v63 = vadd.f32 %v7899_v0, %v8120_v4  ;;  %v146_v4 = vld [vmem:[%s9251_s0 + $0x3a0] sm:$0xff] }
 0x395   :  { %v1811_v36 = vmul.f32 0.01, %v1061_v58  ;;  %v8156_v28 = vpop.f32.mrf.mxu1  ;;  %v2224_v44 = vsel %vm1712_vm7, %v1454_v48, %v1968_v8  ;;  %vm1555_vm8 = vcmp.gt.f32.partialorder %v1061_v58, 0.0  ;;  %v8167_v48 = vpop.f32.mrf.mxu2 }
 0x396   :  { %6112 = vmatmul.msk.f32.gmra.mxu2 %vm2238_vm2, %v2224_v44  ;;  %9305 = vst [vmem:[#allocation52_spill] sm:$0xff] %v8167_v48  ;;  %vm3870_vm13 = vcmp.gt.f32.partialorder %v3259_v63, 0.0 }
 0x397   :  { %v2067_v61 = vsel %vm1555_vm8, %v1061_v58, %v1811_v36  ;;  %v3262_v36 = vadd.f32 %v7899_v0, %v3261_v27  ;;  %v3256_v27 = vadd.f32 %v7899_v0, %v8105_v50 }
 0x398   :  { %v1455_v33 = vpop.f32.mrf.mxu3  ;;  %5955 = vmatmul.msk.f32.gmra.mxu1 %vm2238_vm2, %v2067_v61 }
 0x399   :  { %v1456_v12 = vadd.f32 %v7853_v16, %v1455_v33  ;;  %v4127_v30 = vmul.f32 0.01, %v3262_v36  ;;  %vm3871_vm11 = vcmp.gt.f32.partialorder %v3262_v36, 0.0  ;;  %vm3869_vm14 = vcmp.gt.f32.partialorder %v3256_v27, 0.0 }
 0x39a   :  { %v1063_v62 = vpop.f32.mrf.mxu0 }
 0x39b   :  { %vm1713_vm9 = vcmp.gt.f32.partialorder %v1456_v12, 0.0  ;;  %v1969_v8 = vmul.f32 0.01, %v1456_v12  ;;  %v1064_v44 = vadd.f32 %v7853_v16, %v1063_v62 }
 0x39d   :  { %vm1556_vm10 = vcmp.gt.f32.partialorder %v1064_v44, 0.0  ;;  %v1812_v2 = vmul.f32 0.01, %v1064_v44  ;;  %5787 = vmatmul.msk.bf16.gmra.mxu0 %vm424_vm0, %v347_v3  ;;  %v8171_v7 = vpop.f32.mrf.mxu1  ;;  %v2225_v58 = vsel %vm1713_vm9, %v1456_v12, %v1969_v8  ;;  %v8179_v41 = vpop.f32.mrf.mxu2  ;;  %v4383_v12 = vsel %vm3871_vm11, %v3262_v36, %v4127_v30  ;;  %v147_v8 = vld [vmem:[%s9251_s0 + $0x3a8] sm:$0xff] }
 0x39e   :  { %6113 = vmatmul.msk.f32.gmra.mxu2 %vm2238_vm2, %v2225_v58  ;;  %v348_v50 = vpack.c.bf16 %v147_v8, %v146_v4  ;;  %v3253_v58 = vadd.f32 %v7899_v0, %v8097_v32 }
 0x39f   :  { %v2068_v61 = vsel %vm1556_vm10, %v1064_v44, %v1812_v2  ;;  %v4126_v2 = vmul.f32 0.01, %v3259_v63 }
 0x3a0   :  { %5956 = vmatmul.msk.f32.gmra.mxu1 %vm2238_vm2, %v2068_v61  ;;  %v4125_v61 = vmul.f32 0.01, %v3256_v27  ;;  %vm3868_vm1 = vcmp.gt.f32.partialorder %v3253_v58, 0.0 }
 0x3a1   :  { %v4382_v30 = vsel %vm3870_vm13, %v3259_v63, %v4126_v2  ;;  %v3247_v63 = vadd.f32 %v7899_v0, %v8074_v10  ;;  %v148_v10 = vld [vmem:[%s9251_s0 + $0x3b0] sm:$0xff] }
 0x3a2   :  { %v1065_v33 = vpop.f32.mrf.mxu0  ;;  %v4381_v4 = vsel %vm3869_vm14, %v3256_v27, %v4125_v61 }
 0x3a3   :  { %v1066_v62 = vadd.f32 %v7853_v16, %v1065_v33  ;;  %v4122_v27 = vmul.f32 0.01, %v3247_v63  ;;  %vm3866_vm5 = vcmp.gt.f32.partialorder %v3247_v63, 0.0 }
 0x3a5   :  { %v1813_v3 = vmul.f32 0.01, %v1066_v62  ;;  %v8181_v35 = vpop.f32.mrf.mxu1  ;;  %vm1557_vm12 = vcmp.gt.f32.partialorder %v1066_v62, 0.0 }
 0x3a6   :  { %6130 = vmatmul.msk.f32.vlgmr.msrb.gmra.mxu2 %vm424_vm0, %v8129_v18 }
 0x3a7   :  { %6182 = vmatpush.xpose.msk.msrb.mxu2 %vm424_vm0, %v4383_v12  ;;  %v2069_v44 = vsel %vm1557_vm12, %v1066_v62, %v1813_v3  ;;  %v3250_v3 = vadd.f32 %v7899_v0, %v8082_v25  ;;  %v4124_v12 = vmul.f32 0.01, %v3253_v58 }
 0x3a8   :  { %5957 = vmatmul.msk.f32.gmra.mxu1 %vm2238_vm2, %v2069_v44 }
 0x3a9   :  { %v4123_v2 = vmul.f32 0.01, %v3250_v3  ;;  %v4380_v44 = vsel %vm3868_vm1, %v3253_v58, %v4124_v12  ;;  %vm3867_vm3 = vcmp.gt.f32.partialorder %v3250_v3, 0.0  ;;  %v4378_v12 = vsel %vm3866_vm5, %v3247_v63, %v4122_v27 }
 0x3aa   :  { %v1068_v36 = vpop.f32.mrf.mxu0 }
 0x3ab   :  { %v1069_v33 = vadd.f32 %v7853_v16, %v1068_v36  ;;  %6183 = vmatpush.xpose.msk.msrb.mxu2 %vm424_vm0, %v4382_v30  ;;  %v4379_v61 = vsel %vm3867_vm3, %v3250_v3, %v4123_v2 }
 0x3ad   :  { %vm1558_vm15 = vcmp.gt.f32.partialorder %v1069_v33, 0.0  ;;  %v1814_v48 = vmul.f32 0.01, %v1069_v33  ;;  %5788 = vmatmul.msk.bf16.gmra.mxu0 %vm424_vm0, %v348_v50  ;;  %v8200_v62 = vpop.f32.mrf.mxu1 }
 0x3af   :  { %6184 = vmatpush.xpose.msk.msrb.mxu2 %vm424_vm0, %v4381_v4  ;;  %v2070_v32 = vsel %vm1558_vm15, %v1069_v33, %v1814_v48  ;;  %v3244_v48 = vadd.f32 %v7899_v0, %v8061_v21  ;;  %v3241_v21 = vadd.f32 %v7899_v0, %v8053_v52  ;;  %v8227_v4 = vld [vmem:[%s9253_s2] ss:$0 sm:$0xff]  ;;  %v3238_v52 = vadd.f32 %v7899_v0, %v8037_v29 }
 0x3b0   :  { %5958 = vmatmul.msk.f32.gmra.mxu1 %vm2238_vm2, %v2070_v32 }
 0x3b1   :  { %v4121_v33 = vmul.f32 0.01, %v3244_v48  ;;  %vm3865_vm6 = vcmp.gt.f32.partialorder %v3244_v48, 0.0  ;;  %v4120_v63 = vmul.f32 0.01, %v3241_v21  ;;  %vm3864_vm8 = vcmp.gt.f32.partialorder %v3241_v21, 0.0 }
 0x3b2   :  { %v1070_v8 = vpop.f32.mrf.mxu0  ;;  %v4119_v27 = vmul.f32 0.01, %v3238_v52  ;;  %vm3863_vm9 = vcmp.gt.f32.partialorder %v3238_v52, 0.0 }
 0x3b3   :  { %v1071_v50 = vadd.f32 %v7853_v16, %v1070_v8  ;;  %6185 = vmatpush.xpose.msk.msrb.mxu2 %vm424_vm0, %v4380_v44  ;;  %v149_v16 = vld [vmem:[%s9251_s0 + $0x3b8] sm:$0xff]  ;;  %v4377_v44 = vsel %vm3865_vm6, %v3244_v48, %v4121_v33  ;;  %v3232_v48 = vadd.f32 %v7899_v0, %v8004_v55  ;;  %v3229_v55 = vadd.f32 %v7899_v0, %v7992_v56 }
 0x3b4   :  { %v349_v30 = vpack.c.bf16 %v149_v16, %v148_v10  ;;  %v4376_v10 = vsel %vm3864_vm8, %v3241_v21, %v4120_v63  ;;  %v4375_v33 = vsel %vm3863_vm9, %v3238_v52, %v4119_v27  ;;  %v151_v21 = vld [vmem:[%s9251_s0 + $0x3c8] sm:$0xff]  ;;  %v3226_v27 = vadd.f32 %v7899_v0, %v7971_v17 }
 0x3b5   :  { %v1815_v25 = vmul.f32 0.01, %v1071_v50  ;;  %v8210_v36 = vpop.f32.mrf.mxu1  ;;  %vm1559_vm4 = vcmp.gt.f32.partialorder %v1071_v50, 0.0  ;;  %vm3861_vm12 = vcmp.gt.f32.partialorder %v3232_v48, 0.0  ;;  %vm3860_vm14 = vcmp.gt.f32.partialorder %v3229_v55, 0.0 }
 0x3b6   :  { %vm3859_vm15 = vcmp.gt.f32.partialorder %v3226_v27, 0.0 }
 0x3b7   :  { %6186 = vmatpush.xpose.msk.msrb.mxu2 %vm424_vm0, %v4379_v61  ;;  %v2071_v58 = vsel %vm1559_vm4, %v1071_v50, %v1815_v25  ;;  %v3235_v25 = vadd.f32 %v7899_v0, %v8025_v43  ;;  %v150_v43 = vld [vmem:[%s9251_s0 + $0x3c0] sm:$0xff] }
 0x3b8   :  { %5959 = vmatmul.msk.f32.gmra.mxu1 %vm2238_vm2, %v2071_v58 }
 0x3b9   :  { %vm3862_vm11 = vcmp.gt.f32.partialorder %v3235_v25, 0.0 }
 0x3ba   :  { %v1073_v3 = vpop.f32.mrf.mxu0 }
 0x3bb   :  { %v1074_v32 = vadd.f32 %v8227_v4, %v1073_v3  ;;  %6187 = vmatpush.xpose.msk.msrb.mxu2 %vm424_vm0, %v4378_v12  ;;  %v350_v12 = vpack.c.bf16 %v151_v21, %v150_v43 }
 0x3bd   :  { %vm1560_vm7 = vcmp.gt.f32.partialorder %v1074_v32, 0.0  ;;  %v1816_v2 = vmul.f32 0.01, %v1074_v32  ;;  %5789 = vmatmul.msk.bf16.gmra.mxu0 %vm424_vm0, %v349_v30  ;;  %v8232_v8 = vpop.f32.mrf.mxu1  ;;  %v4118_v30 = vmul.f32 0.01, %v3235_v25 }
 0x3bf   :  { %6188 = vmatpush.xpose.msk.msrb.mxu2 %vm424_vm0, %v4377_v44  ;;  %v2072_v50 = vsel %vm1560_vm7, %v1074_v32, %v1816_v2  ;;  %v4117_v32 = vmul.f32 0.01, %v3232_v48  ;;  %v4374_v52 = vsel %vm3862_vm11, %v3235_v25, %v4118_v30  ;;  %v3223_v25 = vadd.f32 %v7899_v0, %v7957_v14 }
 0x3c0   :  { %5960 = vmatmul.msk.f32.gmra.mxu1 %vm2238_vm2, %v2072_v50 }
 0x3c1   :  { %v4114_v14 = vmul.f32 0.01, %v3223_v25  ;;  %vm3858_vm3 = vcmp.gt.f32.partialorder %v3223_v25, 0.0 }
 0x3c2   :  { %v1075_v61 = vpop.f32.mrf.mxu0 }
 0x3c3   :  { %v1076_v16 = vadd.f32 %v8227_v4, %v1075_v61  ;;  %6189 = vmatpush.xpose.msk.msrb.mxu2 %vm424_vm0, %v4376_v10  ;;  %v4116_v61 = vmul.f32 0.01, %v3229_v55  ;;  %v4373_v10 = vsel %vm3861_vm12, %v3232_v48, %v4117_v32  ;;  %v8274_v48 = vld [vmem:[%s9255_s4] ss:$0 sm:$0xff] }
 0x3c4   :  { %v3220_v0 = vadd.f32 %v8274_v48, %v7936_v47  ;;  %v3217_v47 = vadd.f32 %v8274_v48, %v7922_v11 }
 0x3c5   :  { %v1817_v29 = vmul.f32 0.01, %v1076_v16  ;;  %v8242_v58 = vpop.f32.mrf.mxu1  ;;  %vm1561_vm10 = vcmp.gt.f32.partialorder %v1076_v16, 0.0  ;;  %v4372_v30 = vsel %vm3860_vm14, %v3229_v55, %v4116_v61 }
 0x3c6   :  { %vm3857_vm4 = vcmp.gt.f32.partialorder %v3220_v0, 0.0  ;;  %vm3856_vm6 = vcmp.gt.f32.partialorder %v3217_v47, 0.0 }
 0x3c7   :  { %6190 = vmatpush.xpose.msk.msrb.mxu2 %vm424_vm0, %v4375_v33  ;;  %v2073_v3 = vsel %vm1561_vm10, %v1076_v16, %v1817_v29  ;;  %v4115_v16 = vmul.f32 0.01, %v3226_v27 }
 0x3c8   :  { %5961 = vmatmul.msk.f32.gmra.mxu1 %vm2238_vm2, %v2073_v3  ;;  %v152_v3 = vld [vmem:[%s9251_s0 + $0x3d0] sm:$0xff] }
 0x3c9   :  { %v4371_v21 = vsel %vm3859_vm15, %v3226_v27, %v4115_v16 }
 0x3ca   :  { %v1078_v2 = vpop.f32.mrf.mxu0 }
 0x3cb   :  { %v1079_v63 = vadd.f32 %v8227_v4, %v1078_v2  ;;  %6191 = vmatpush.xpose.msk.msrb.mxu2 %vm424_vm0, %v4374_v52  ;;  %v4113_v2 = vmul.f32 0.01, %v3220_v0 }
 0x3cd   :  { %vm1562_vm13 = vcmp.gt.f32.partialorder %v1079_v63, 0.0  ;;  %v1818_v44 = vmul.f32 0.01, %v1079_v63  ;;  %5790 = vmatmul.msk.bf16.gmra.mxu0 %vm424_vm0, %v350_v12  ;;  %v8259_v50 = vpop.f32.mrf.mxu1  ;;  %v153_v12 = vld [vmem:[%s9251_s0 + $0x3d8] sm:$0xff] }
 0x3ce   :  { %v351_v32 = vpack.c.bf16 %v153_v12, %v152_v3 }
 0x3cf   :  { %6192 = vmatpush.xpose.msk.msrb.mxu2 %vm424_vm0, %v4373_v10  ;;  %v2074_v56 = vsel %vm1562_vm13, %v1079_v63, %v1818_v44  ;;  %v4370_v63 = vsel %vm3858_vm3, %v3223_v25, %v4114_v14  ;;  %v4112_v10 = vmul.f32 0.01, %v3217_v47 }
 0x3d0   :  { %5962 = vmatmul.msk.f32.gmra.mxu1 %vm2238_vm2, %v2074_v56  ;;  %v4369_v56 = vsel %vm3857_vm4, %v3220_v0, %v4113_v2  ;;  %v155_v0 = vld [vmem:[%s9251_s0 + $0x3e8] sm:$0xff] }
 0x3d1   :  { %v4368_v25 = vsel %vm3856_vm6, %v3217_v47, %v4112_v10  ;;  %v157_v10 = vld [vmem:[%s9251_s0 + $0x3f8] sm:$0xff] }
 0x3d2   :  { %v1080_v29 = vpop.f32.mrf.mxu0 }
 0x3d3   :  { %v1081_v33 = vadd.f32 %v8227_v4, %v1080_v29  ;;  %6193 = vmatpush.xpose.msk.msrb.mxu2 %vm424_vm0, %v4372_v30 }
 0x3d5   :  { %v1819_v17 = vmul.f32 0.01, %v1081_v33  ;;  %v8269_v43 = vpop.f32.mrf.mxu1  ;;  %vm1563_vm1 = vcmp.gt.f32.partialorder %v1081_v33, 0.0 }
 0x3d7   :  { %6194 = vmatpush.xpose.msk.msrb.mxu2 %vm424_vm0, %v4371_v21  ;;  %v2075_v55 = vsel %vm1563_vm1, %v1081_v33, %v1819_v17  ;;  %v154_v17 = vld [vmem:[%s9251_s0 + $0x3e0] sm:$0xff] }
 0x3d8   :  { %5963 = vmatmul.msk.f32.gmra.mxu1 %vm2238_vm2, %v2075_v55  ;;  %v352_v21 = vpack.c.bf16 %v155_v0, %v154_v17 }
 0x3da   :  { %v1083_v52 = vpop.f32.mrf.mxu0 }
 0x3db   :  { %v1084_v44 = vadd.f32 %v8227_v4, %v1083_v52  ;;  %6195 = vmatpush.xpose.msk.msrb.mxu2 %vm424_vm0, %v4370_v63 }
 0x3dd   :  { %vm1564_vm5 = vcmp.gt.f32.partialorder %v1084_v44, 0.0  ;;  %v1820_v27 = vmul.f32 0.01, %v1084_v44  ;;  %5791 = vmatmul.msk.bf16.gmra.mxu0 %vm424_vm0, %v351_v32  ;;  %v8291_v61 = vpop.f32.mrf.mxu1 }
 0x3df   :  { %6196 = vmatpush.xpose.msk.msrb.mxu2 %vm424_vm0, %v4369_v56  ;;  %v2076_v16 = vsel %vm1564_vm5, %v1084_v44, %v1820_v27  ;;  %v156_v27 = vld [vmem:[%s9251_s0 + $0x3f0] sm:$0xff] }
 0x3e0   :  { %5964 = vmatmul.msk.f32.gmra.mxu1 %vm2238_vm2, %v2076_v16  ;;  %v353_v16 = vpack.c.bf16 %v157_v10, %v156_v27 }
 0x3e2   :  { %v1085_v11 = vpop.f32.mrf.mxu0 }
 0x3e3   :  { %v1086_v29 = vadd.f32 %v8227_v4, %v1085_v11  ;;  %6197 = vmatpush.xpose.msk.msrb.mxu2 %vm424_vm0, %v4368_v25 }
 0x3e5   :  { %v1821_v30 = vmul.f32 0.01, %v1086_v29  ;;  %v8297_v33 = vpop.f32.mrf.mxu1  ;;  %vm1565_vm7 = vcmp.gt.f32.partialorder %v1086_v29, 0.0 }
 0x3e7   :  { %v2077_v14 = vsel %vm1565_vm7, %v1086_v29, %v1821_v30 }
 0x3e8   :  { %5965 = vmatmul.msk.f32.gmra.mxu1 %vm2238_vm2, %v2077_v14 }
 0x3ea   :  { %v1088_v3 = vpop.f32.mrf.mxu0 }
 0x3eb   :  { %v1089_v12 = vadd.f32 %v8227_v4, %v1088_v3 }
 0x3ed   :  { %vm1566_vm8 = vcmp.gt.f32.partialorder %v1089_v12, 0.0  ;;  %v1822_v55 = vmul.f32 0.01, %v1089_v12  ;;  %5792 = vmatmul.msk.bf16.gmra.mxu0 %vm424_vm0, %v352_v21  ;;  %v3300_v32 = vpop.f32.mrf.mxu1 }
 0x3ef   :  { %v2078_v47 = vsel %vm1566_vm8, %v1089_v12, %v1822_v55 }
 0x3f0   :  { %5966 = vmatmul.msk.f32.gmra.mxu1 %vm2238_vm2, %v2078_v47  ;;  %v158_v47 = vld [vmem:[%s9251_s0 + $0x400] sm:$0xff] }
 0x3f2   :  { %v1090_v2 = vpop.f32.mrf.mxu0 }
 0x3f3   :  { %v1091_v52 = vadd.f32 %v8227_v4, %v1090_v2  ;;  %v159_v2 = vld [vmem:[%s9251_s0 + $0x408] sm:$0xff] }
 0x3f4   :  { %v354_v27 = vpack.c.bf16 %v159_v2, %v158_v47 }
 0x3f5   :  { %v1823_v63 = vmul.f32 0.01, %v1091_v52  ;;  %v3303_v44 = vpop.f32.mrf.mxu1  ;;  %vm1567_vm9 = vcmp.gt.f32.partialorder %v1091_v52, 0.0 }
 0x3f6   :  { %v3304_v10 = vadd.f32 %v8274_v48, %v3303_v44 }
 0x3f7   :  { %v2079_v56 = vsel %vm1567_vm9, %v1091_v52, %v1823_v63 }
 0x3f8   :  { %5967 = vmatmul.msk.f32.gmra.mxu1 %vm2238_vm2, %v2079_v56  ;;  %vm3885_vm15 = vcmp.gt.f32.partialorder %v3304_v10, 0.0 }
 0x3fa   :  { %v1093_v11 = vpop.f32.mrf.mxu0 }
 0x3fb   :  { %v1094_v25 = vadd.f32 %v8227_v4, %v1093_v11 }
 0x3fd   :  { %vm1568_vm10 = vcmp.gt.f32.partialorder %v1094_v25, 0.0  ;;  %v1824_v29 = vmul.f32 0.01, %v1094_v25  ;;  %5793 = vmatmul.msk.bf16.gmra.mxu0 %vm424_vm0, %v353_v16  ;;  %v3306_v30 = vpop.f32.mrf.mxu1 }
 0x3fe   :  { %v3307_v12 = vadd.f32 %v8274_v48, %v3306_v30 }
 0x3ff   :  { %v2080_v17 = vsel %vm1568_vm10, %v1094_v25, %v1824_v29 }
 0x400   :  { %5968 = vmatmul.msk.f32.gmra.mxu1 %vm2238_vm2, %v2080_v17  ;;  %v4142_v56 = vmul.f32 0.01, %v3307_v12  ;;  %vm3886_vm13 = vcmp.gt.f32.partialorder %v3307_v12, 0.0  ;;  %v3301_v17 = vadd.f32 %v8274_v48, %v3300_v32 }
 0x402   :  { %v1095_v0 = vpop.f32.mrf.mxu0  ;;  %vm3884_vm1 = vcmp.gt.f32.partialorder %v3301_v17, 0.0 }
 0x403   :  { %v1096_v14 = vadd.f32 %v8227_v4, %v1095_v0  ;;  %v4141_v0 = vmul.f32 0.01, %v3304_v10 }
 0x405   :  { %v1825_v21 = vmul.f32 0.01, %v1096_v14  ;;  %v3309_v3 = vpop.f32.mrf.mxu1  ;;  %vm1569_vm11 = vcmp.gt.f32.partialorder %v1096_v14, 0.0  ;;  %v4397_v47 = vsel %vm3885_vm15, %v3304_v10, %v4141_v0  ;;  %v161_v10 = vld [vmem:[%s9251_s0 + $0x418] sm:$0xff] }
 0x406   :  { %v3310_v55 = vadd.f32 %v8274_v48, %v3309_v3  ;;  %v4140_v3 = vmul.f32 0.01, %v3301_v17 }
 0x407   :  { %v2081_v52 = vsel %vm1569_vm11, %v1096_v14, %v1825_v21  ;;  %v4398_v14 = vsel %vm3886_vm13, %v3307_v12, %v4142_v56  ;;  %v3298_v21 = vadd.f32 %v8274_v48, %v8297_v33  ;;  %v3295_v12 = vadd.f32 %v8274_v48, %v8291_v61  ;;  %v160_v33 = vld [vmem:[%s9251_s0 + $0x410] sm:$0xff] }
 0x408   :  { %vm3887_vm12 = vcmp.gt.f32.partialorder %v3310_v55, 0.0  ;;  %v4143_v63 = vmul.f32 0.01, %v3310_v55  ;;  %5969 = vmatmul.msk.f32.gmra.mxu1 %vm2238_vm2, %v2081_v52  ;;  %v3292_v61 = vadd.f32 %v8274_v48, %v8269_v43 }
 0x409   :  { %vm3883_vm4 = vcmp.gt.f32.partialorder %v3298_v21, 0.0  ;;  %vm3882_vm5 = vcmp.gt.f32.partialorder %v3295_v12, 0.0 }
 0x40a   :  { %v1098_v16 = vpop.f32.mrf.mxu0  ;;  %v4399_v11 = vsel %vm3887_vm12, %v3310_v55, %v4143_v63  ;;  %v4139_v63 = vmul.f32 0.01, %v3298_v21  ;;  %vm3881_vm7 = vcmp.gt.f32.partialorder %v3292_v61, 0.0 }
 0x40b   :  { %v1099_v25 = vadd.f32 %v8227_v4, %v1098_v16  ;;  %6199 = vmatpush.xpose.msk.msrb.mxu3 %vm424_vm0, %v4399_v11  ;;  %v355_v16 = vpack.c.bf16 %v161_v10, %v160_v33  ;;  %v4138_v11 = vmul.f32 0.01, %v3295_v12 }
 0x40d   :  { %vm1570_vm14 = vcmp.gt.f32.partialorder %v1099_v25, 0.0  ;;  %v1826_v29 = vmul.f32 0.01, %v1099_v25  ;;  %5794 = vmatmul.msk.bf16.gmra.mxu0 %vm424_vm0, %v354_v27  ;;  %v8334_v30 = vpop.f32.mrf.mxu1  ;;  %v4396_v27 = vsel %vm3884_vm1, %v3301_v17, %v4140_v3  ;;  %v4137_v3 = vmul.f32 0.01, %v3292_v61 }
 0x40f   :  { %6200 = vmatpush.xpose.msk.msrb.mxu3 %vm424_vm0, %v4398_v14  ;;  %v2082_v44 = vsel %vm1570_vm14, %v1099_v25, %v1826_v29  ;;  %v4395_v29 = vsel %vm3883_vm4, %v3298_v21, %v4139_v63  ;;  %v3286_v21 = vadd.f32 %v8274_v48, %v8242_v58  ;;  %v162_v58 = vld [vmem:[%s9251_s0 + $0x420] sm:$0xff] }
 0x410   :  { %5970 = vmatmul.msk.f32.gmra.mxu1 %vm2238_vm2, %v2082_v44  ;;  %v3289_v44 = vadd.f32 %v8274_v48, %v8259_v50 }
 0x411   :  { %v4135_v33 = vmul.f32 0.01, %v3286_v21  ;;  %vm3879_vm10 = vcmp.gt.f32.partialorder %v3286_v21, 0.0 }
 0x412   :  { %v1100_v55 = vpop.f32.mrf.mxu0  ;;  %vm3880_vm8 = vcmp.gt.f32.partialorder %v3289_v44, 0.0 }
 0x413   :  { %v1101_v2 = vadd.f32 %v8227_v4, %v1100_v55  ;;  %6201 = vmatpush.xpose.msk.msrb.mxu3 %vm424_vm0, %v4397_v47  ;;  %v4394_v55 = vsel %vm3882_vm5, %v3295_v12, %v4138_v11  ;;  %v4136_v47 = vmul.f32 0.01, %v3289_v44  ;;  %v3283_v12 = vadd.f32 %v8274_v48, %v8232_v8 }
 0x414   :  { %v3280_v8 = vadd.f32 %v8274_v48, %v8210_v36 }
 0x415   :  { %v1827_v32 = vmul.f32 0.01, %v1101_v2  ;;  %v8343_v52 = vpop.f32.mrf.mxu1  ;;  %vm1571_vm3 = vcmp.gt.f32.partialorder %v1101_v2, 0.0  ;;  %v4392_v10 = vsel %vm3880_vm8, %v3289_v44, %v4136_v47  ;;  %v4134_v11 = vmul.f32 0.01, %v3283_v12 }
 0x416   :  { %vm3878_vm11 = vcmp.gt.f32.partialorder %v3283_v12, 0.0  ;;  %vm3877_vm13 = vcmp.gt.f32.partialorder %v3280_v8, 0.0 }
 0x417   :  { %6202 = vmatpush.xpose.msk.msrb.mxu3 %vm424_vm0, %v4396_v27  ;;  %v2083_v56 = vsel %vm1571_vm3, %v1101_v2, %v1827_v32  ;;  %v4393_v32 = vsel %vm3881_vm7, %v3292_v61, %v4137_v3  ;;  %v3277_v3 = vadd.f32 %v8274_v48, %v8200_v62 }
 0x418   :  { %5971 = vmatmul.msk.f32.gmra.mxu1 %vm2238_vm2, %v2083_v56  ;;  %v163_v56 = vld [vmem:[%s9251_s0 + $0x428] sm:$0xff] }
 0x419   :  { %v356_v61 = vpack.c.bf16 %v163_v56, %v162_v58  ;;  %v4132_v47 = vmul.f32 0.01, %v3277_v3  ;;  %vm3876_vm14 = vcmp.gt.f32.partialorder %v3277_v3, 0.0  ;;  %v165_v58 = vld [vmem:[%s9251_s0 + $0x438] sm:$0xff] }
 0x41a   :  { %v1103_v25 = vpop.f32.mrf.mxu0 }
 0x41b   :  { %v1104_v17 = vadd.f32 %v8227_v4, %v1103_v25  ;;  %6203 = vmatpush.xpose.msk.msrb.mxu3 %vm424_vm0, %v4395_v29  ;;  %v4391_v29 = vsel %vm3879_vm10, %v3286_v21, %v4135_v33  ;;  %v3274_v21 = vadd.f32 %v8274_v48, %v8181_v35  ;;  %v164_v35 = vld [vmem:[%s9251_s0 + $0x430] sm:$0xff] }
 0x41d   :  { %vm1572_vm6 = vcmp.gt.f32.partialorder %v1104_v17, 0.0  ;;  %v1828_v0 = vmul.f32 0.01, %v1104_v17  ;;  %5795 = vmatmul.msk.bf16.gmra.mxu0 %vm424_vm0, %v355_v16  ;;  %v8360_v14 = vpop.f32.mrf.mxu1  ;;  %v4131_v33 = vmul.f32 0.01, %v3274_v21  ;;  %vm3875_vm1 = vcmp.gt.f32.partialorder %v3274_v21, 0.0 }
 0x41f   :  { %6204 = vmatpush.xpose.msk.msrb.mxu3 %vm424_vm0, %v4394_v55  ;;  %v2084_v43 = vsel %vm1572_vm6, %v1104_v17, %v1828_v0  ;;  %v4133_v55 = vmul.f32 0.01, %v3280_v8 }
 0x420   :  { %5972 = vmatmul.msk.f32.gmra.mxu1 %vm2238_vm2, %v2084_v43  ;;  %v4390_v43 = vsel %vm3878_vm11, %v3283_v12, %v4134_v11  ;;  %v3271_v12 = vadd.f32 %v8274_v48, %v8171_v7  ;;  %v3268_v7 = vadd.f32 %v8274_v48, %v8156_v28  ;;  %v4387_v11 = vsel %vm3875_vm1, %v3274_v21, %v4131_v33 }
 0x422   :  { %v1105_v2 = vpop.f32.mrf.mxu0  ;;  %vm3874_vm3 = vcmp.gt.f32.partialorder %v3271_v12, 0.0  ;;  %vm3873_vm5 = vcmp.gt.f32.partialorder %v3268_v7, 0.0 }
 0x423   :  { %v1106_v63 = vadd.f32 %v8227_v4, %v1105_v2  ;;  %6205 = vmatpush.xpose.msk.msrb.mxu3 %vm424_vm0, %v4393_v32  ;;  %v4389_v32 = vsel %vm3877_vm13, %v3280_v8, %v4133_v55 }
 0x425   :  { %v1829_v50 = vmul.f32 0.01, %v1106_v63  ;;  %v8370_v27 = vpop.f32.mrf.mxu1  ;;  %vm1573_vm9 = vcmp.gt.f32.partialorder %v1106_v63, 0.0 }
 0x427   :  { %6206 = vmatpush.xpose.msk.msrb.mxu3 %vm424_vm0, %v4392_v10  ;;  %v2085_v16 = vsel %vm1573_vm9, %v1106_v63, %v1829_v50  ;;  %v4388_v10 = vsel %vm3876_vm14, %v3277_v3, %v4132_v47  ;;  %v4129_v3 = vmul.f32 0.01, %v3268_v7 }
 0x428   :  { %5973 = vmatmul.msk.f32.gmra.mxu1 %vm2238_vm2, %v2085_v16  ;;  %v357_v16 = vpack.c.bf16 %v165_v58, %v164_v35 }
 0x429   :  { %v4385_v21 = vsel %vm3873_vm5, %v3268_v7, %v4129_v3 }
 0x42a   :  { %v1108_v25 = vpop.f32.mrf.mxu0 }
 0x42b   :  { %v1109_v17 = vadd.f32 %v8227_v4, %v1108_v25  ;;  %6207 = vmatpush.xpose.msk.msrb.mxu3 %vm424_vm0, %v4391_v29 }
 0x42d   :  { %vm1574_vm12 = vcmp.gt.f32.partialorder %v1109_v17, 0.0  ;;  %v1830_v0 = vmul.f32 0.01, %v1109_v17  ;;  %5796 = vmatmul.msk.bf16.gmra.mxu0 %vm424_vm0, %v356_v61  ;;  %v8387_v44 = vpop.f32.mrf.mxu1  ;;  %v4130_v61 = vmul.f32 0.01, %v3271_v12 }
 0x42f   :  { %6208 = vmatpush.xpose.msk.msrb.mxu3 %vm424_vm0, %v4390_v43  ;;  %v2086_v36 = vsel %vm1574_vm12, %v1109_v17, %v1830_v0  ;;  %v3265_v0 = vadd.f32 %v8274_v48, %v8146_v19  ;;  %v4386_v55 = vsel %vm3874_vm3, %v3271_v12, %v4130_v61 }
 0x430   :  { %5974 = vmatmul.msk.f32.gmra.mxu1 %vm2238_vm2, %v2086_v36 }
 0x431   :  { %v4128_v43 = vmul.f32 0.01, %v3265_v0  ;;  %vm3872_vm6 = vcmp.gt.f32.partialorder %v3265_v0, 0.0 }
 0x432   :  { %v1110_v2 = vpop.f32.mrf.mxu0 }
 0x433   :  { %v1111_v63 = vadd.f32 %v8227_v4, %v1110_v2  ;;  %6209 = vmatpush.xpose.msk.msrb.mxu3 %vm424_vm0, %v4389_v32  ;;  %v4384_v19 = vsel %vm3872_vm6, %v3265_v0, %v4128_v43 }
 0x435   :  { %v1831_v62 = vmul.f32 0.01, %v1111_v63  ;;  %v8397_v50 = vpop.f32.mrf.mxu1  ;;  %vm1575_vm15 = vcmp.gt.f32.partialorder %v1111_v63, 0.0 }
 0x437   :  { %6210 = vmatpush.xpose.msk.msrb.mxu3 %vm424_vm0, %v4388_v10  ;;  %v2087_v56 = vsel %vm1575_vm15, %v1111_v63, %v1831_v62  ;;  %v166_v63 = vld [vmem:[%s9251_s0 + $0x440] sm:$0xff]  ;;  %v167_v62 = vld [vmem:[%s9251_s0 + $0x448] sm:$0xff] }
 0x438   :  { %5975 = vmatmul.msk.f32.gmra.mxu1 %vm2238_vm2, %v2087_v56  ;;  %v358_v33 = vpack.c.bf16 %v167_v62, %v166_v63  ;;  %v170_v62 = vld [vmem:[%s9251_s0 + $0x460] sm:$0xff] }
 0x43a   :  { %v1113_v8 = vpop.f32.mrf.mxu0 }
 0x43b   :  { %v1114_v25 = vadd.f32 %v8227_v4, %v1113_v8  ;;  %6211 = vmatpush.xpose.msk.msrb.mxu3 %vm424_vm0, %v4387_v11 }
 0x43d   :  { %vm1576_vm4 = vcmp.gt.f32.partialorder %v1114_v25, 0.0  ;;  %v1832_v29 = vmul.f32 0.01, %v1114_v25  ;;  %5797 = vmatmul.msk.bf16.gmra.mxu0 %vm424_vm0, %v357_v16  ;;  %v8414_v17 = vpop.f32.mrf.mxu1 }
 0x43f   :  { %6212 = vmatpush.xpose.msk.msrb.mxu3 %vm424_vm0, %v4386_v55  ;;  %v2088_v28 = vsel %vm1576_vm4, %v1114_v25, %v1832_v29  ;;  %v168_v25 = vld [vmem:[%s9251_s0 + $0x450] sm:$0xff]  ;;  %v169_v29 = vld [vmem:[%s9251_s0 + $0x458] sm:$0xff] }
 0x440   :  { %5976 = vmatmul.msk.f32.gmra.mxu1 %vm2238_vm2, %v2088_v28  ;;  %v359_v3 = vpack.c.bf16 %v169_v29, %v168_v25 }
 0x442   :  { %v1115_v36 = vpop.f32.mrf.mxu0 }
 0x443   :  { %v1116_v47 = vadd.f32 %v8227_v4, %v1115_v36  ;;  %6213 = vmatpush.xpose.msk.msrb.mxu3 %vm424_vm0, %v4385_v21 }
 0x445   :  { %v1833_v2 = vmul.f32 0.01, %v1116_v47  ;;  %v8422_v32 = vpop.f32.mrf.mxu1  ;;  %vm1577_vm7 = vcmp.gt.f32.partialorder %v1116_v47, 0.0 }
 0x447   :  { %6214 = vmatpush.xpose.msk.msrb.mxu3 %vm424_vm0, %v4384_v19  ;;  %v2089_v12 = vsel %vm1577_vm7, %v1116_v47, %v1833_v2 }
 0x448   :  { %5977 = vmatmul.msk.f32.gmra.mxu1 %vm2238_vm2, %v2089_v12  ;;  %v171_v12 = vld [vmem:[%s9251_s0 + $0x468] sm:$0xff] }
 0x44a   :  { %v1118_v10 = vpop.f32.mrf.mxu0  ;;  %6215 = vmatmul.msk.f32.vlgmr.msrb.gmra.mxu3 %vm424_vm0, %v8129_v18 }
 0x44b   :  { %v1119_v35 = vadd.f32 %v8227_v4, %v1118_v10  ;;  %v360_v10 = vpack.c.bf16 %v171_v12, %v170_v62 }
 0x44d   :  { %vm1578_vm8 = vcmp.gt.f32.partialorder %v1119_v35, 0.0  ;;  %v1834_v58 = vmul.f32 0.01, %v1119_v35  ;;  %5798 = vmatmul.msk.bf16.gmra.mxu0 %vm424_vm0, %v358_v33  ;;  %v8436_v56 = vpop.f32.mrf.mxu1 }
 0x44f   :  { %v2090_v16 = vsel %vm1578_vm8, %v1119_v35, %v1834_v58 }
 0x450   :  { %5978 = vmatmul.msk.f32.gmra.mxu1 %vm2238_vm2, %v2090_v16  ;;  %v8465_v16 = vpop.f32.mrf.mxu2  ;;  %6164 = vmatmul.msk.f32.vlgmr.msra.gmra.mxu2 %vm424_vm0, %v8129_v18  ;;  %v173_v18 = vld [vmem:[%s9251_s0 + $0x478] sm:$0xff] }
 0x452   :  { %v1120_v7 = vpop.f32.mrf.mxu0 }
 0x453   :  { %v1121_v61 = vadd.f32 %v8227_v4, %v1120_v7 }
 0x455   :  { %v1835_v8 = vmul.f32 0.01, %v1121_v61  ;;  %v8440_v11 = vpop.f32.mrf.mxu1  ;;  %vm1579_vm9 = vcmp.gt.f32.partialorder %v1121_v61, 0.0 }
 0x457   :  { %v2091_v0 = vsel %vm1579_vm9, %v1121_v61, %v1835_v8 }
 0x458   :  { %5979 = vmatmul.msk.f32.gmra.mxu1 %vm2238_vm2, %v2091_v0 }
 0x45a   :  { %v1123_v55 = vpop.f32.mrf.mxu0 }
 0x45b   :  { %v1124_v28 = vadd.f32 %v8227_v4, %v1123_v55  ;;  %v172_v55 = vld [vmem:[%s9251_s0 + $0x470] sm:$0xff] }
 0x45d   :  { %vm1580_vm10 = vcmp.gt.f32.partialorder %v1124_v28, 0.0  ;;  %v1836_v43 = vmul.f32 0.01, %v1124_v28  ;;  %5799 = vmatmul.msk.bf16.gmra.mxu0 %vm424_vm0, %v359_v3  ;;  %v8451_v36 = vpop.f32.mrf.mxu1 }
 0x45f   :  { %v2092_v21 = vsel %vm1580_vm10, %v1124_v28, %v1836_v43  ;;  %v361_v43 = vpack.c.bf16 %v173_v18, %v172_v55 }
 0x460   :  { %5980 = vmatmul.msk.f32.gmra.mxu1 %vm2238_vm2, %v2092_v21 }
 0x462   :  { %v1125_v47 = vpop.f32.mrf.mxu0 }
 0x463   :  { %v1126_v2 = vadd.f32 %v8227_v4, %v1125_v47 }
 0x465   :  { %v1837_v19 = vmul.f32 0.01, %v1126_v2  ;;  %v8455_v63 = vpop.f32.mrf.mxu1  ;;  %vm1581_vm11 = vcmp.gt.f32.partialorder %v1126_v2, 0.0 }
 0x467   :  { %v2093_v33 = vsel %vm1581_vm11, %v1126_v2, %v1837_v19 }
 0x468   :  { %5981 = vmatmul.msk.f32.gmra.mxu1 %vm2238_vm2, %v2093_v33 }
 0x46a   :  { %v1128_v35 = vpop.f32.mrf.mxu0 }
 0x46b   :  { %v1129_v58 = vadd.f32 %v8227_v4, %v1128_v35 }
 0x46d   :  { %vm1582_vm12 = vcmp.gt.f32.partialorder %v1129_v58, 0.0  ;;  %v1838_v7 = vmul.f32 0.01, %v1129_v58  ;;  %5800 = vmatmul.msk.bf16.gmra.mxu0 %vm424_vm0, %v360_v10  ;;  %v3348_v61 = vpop.f32.mrf.mxu1 }
 0x46f   :  { %v2094_v8 = vsel %vm1582_vm12, %v1129_v58, %v1838_v7 }
 0x470   :  { %5982 = vmatmul.msk.f32.gmra.mxu1 %vm2238_vm2, %v2094_v8  ;;  %v174_v8 = vld [vmem:[%s9251_s0 + $0x480] sm:$0xff] }
 0x472   :  { %v1130_v25 = vpop.f32.mrf.mxu0 }
 0x473   :  { %v1131_v29 = vadd.f32 %v8227_v4, %v1130_v25  ;;  %v175_v25 = vld [vmem:[%s9251_s0 + $0x488] sm:$0xff] }
 0x474   :  { %v362_v55 = vpack.c.bf16 %v175_v25, %v174_v8 }
 0x475   :  { %v1839_v0 = vmul.f32 0.01, %v1131_v29  ;;  %v3351_v3 = vpop.f32.mrf.mxu1  ;;  %vm1583_vm13 = vcmp.gt.f32.partialorder %v1131_v29, 0.0 }
 0x476   :  { %v3352_v18 = vadd.f32 %v8274_v48, %v3351_v3 }
 0x477   :  { %v2095_v28 = vsel %vm1583_vm13, %v1131_v29, %v1839_v0 }
 0x478   :  { %5983 = vmatmul.msk.f32.gmra.mxu1 %vm2238_vm2, %v2095_v28  ;;  %vm3901_vm5 = vcmp.gt.f32.partialorder %v3352_v18, 0.0 }
 0x47a   :  { %v1133_v21 = vpop.f32.mrf.mxu0 }
 0x47b   :  { %v1134_v47 = vadd.f32 %v8227_v4, %v1133_v21 }
 0x47d   :  { %vm1584_vm14 = vcmp.gt.f32.partialorder %v1134_v47, 0.0  ;;  %v1840_v2 = vmul.f32 0.01, %v1134_v47  ;;  %5801 = vmatmul.msk.bf16.gmra.mxu0 %vm424_vm0, %v361_v43  ;;  %v3354_v19 = vpop.f32.mrf.mxu1 }
 0x47e   :  { %v3355_v58 = vadd.f32 %v8274_v48, %v3354_v19 }
 0x47f   :  { %v2096_v62 = vsel %vm1584_vm14, %v1134_v47, %v1840_v2 }
 0x480   :  { %5984 = vmatmul.msk.f32.gmra.mxu1 %vm2238_vm2, %v2096_v62  ;;  %v4158_v28 = vmul.f32 0.01, %v3355_v58  ;;  %vm3902_vm3 = vcmp.gt.f32.partialorder %v3355_v58, 0.0  ;;  %v3349_v62 = vadd.f32 %v8274_v48, %v3348_v61 }
 0x482   :  { %v1135_v12 = vpop.f32.mrf.mxu0  ;;  %vm3900_vm6 = vcmp.gt.f32.partialorder %v3349_v62, 0.0 }
 0x483   :  { %v1136_v33 = vadd.f32 %v8227_v4, %v1135_v12  ;;  %v4157_v12 = vmul.f32 0.01, %v3352_v18 }
 0x485   :  { %v1841_v10 = vmul.f32 0.01, %v1136_v33  ;;  %v3357_v35 = vpop.f32.mrf.mxu1  ;;  %vm1585_vm15 = vcmp.gt.f32.partialorder %v1136_v33, 0.0  ;;  %v4413_v8 = vsel %vm3901_vm5, %v3352_v18, %v4157_v12  ;;  %v177_v18 = vld [vmem:[%s9251_s0 + $0x498] sm:$0xff] }
 0x486   :  { %v3358_v7 = vadd.f32 %v8274_v48, %v3357_v35  ;;  %v4156_v35 = vmul.f32 0.01, %v3349_v62 }
 0x487   :  { %v2097_v29 = vsel %vm1585_vm15, %v1136_v33, %v1841_v10  ;;  %v4414_v33 = vsel %vm3902_vm3, %v3355_v58, %v4158_v28  ;;  %v3346_v10 = vadd.f32 %v8274_v48, %v8455_v63  ;;  %v3343_v58 = vadd.f32 %v8274_v48, %v8451_v36  ;;  %v176_v63 = vld [vmem:[%s9251_s0 + $0x490] sm:$0xff] }
 0x488   :  { %vm3903_vm1 = vcmp.gt.f32.partialorder %v3358_v7, 0.0  ;;  %v4159_v0 = vmul.f32 0.01, %v3358_v7  ;;  %5985 = vmatmul.msk.f32.gmra.mxu1 %vm2238_vm2, %v2097_v29  ;;  %v3340_v36 = vadd.f32 %v8274_v48, %v8440_v11 }
 0x489   :  { %vm3899_vm8 = vcmp.gt.f32.partialorder %v3346_v10, 0.0  ;;  %vm3898_vm9 = vcmp.gt.f32.partialorder %v3343_v58, 0.0 }
 0x48a   :  { %v1138_v43 = vpop.f32.mrf.mxu0  ;;  %v4415_v21 = vsel %vm3903_vm1, %v3358_v7, %v4159_v0  ;;  %v4155_v0 = vmul.f32 0.01, %v3346_v10  ;;  %vm3897_vm11 = vcmp.gt.f32.partialorder %v3340_v36, 0.0 }
 0x48b   :  { %v1139_v47 = vadd.f32 %v8227_v4, %v1138_v43  ;;  %6216 = vmatpush.xpose.msk.msra.mxu2 %vm424_vm0, %v4415_v21  ;;  %v363_v43 = vpack.c.bf16 %v177_v18, %v176_v63  ;;  %v4154_v21 = vmul.f32 0.01, %v3343_v58 }
 0x48d   :  { %vm1586_vm4 = vcmp.gt.f32.partialorder %v1139_v47, 0.0  ;;  %v1842_v2 = vmul.f32 0.01, %v1139_v47  ;;  %5802 = vmatmul.msk.bf16.gmra.mxu0 %vm424_vm0, %v362_v55  ;;  %v8496_v19 = vpop.f32.mrf.mxu1  ;;  %v4412_v55 = vsel %vm3900_vm6, %v3349_v62, %v4156_v35  ;;  %v4153_v35 = vmul.f32 0.01, %v3340_v36 }
 0x48f   :  { %6217 = vmatpush.xpose.msk.msra.mxu2 %vm424_vm0, %v4414_v33  ;;  %v2098_v3 = vsel %vm1586_vm4, %v1139_v47, %v1842_v2  ;;  %v4411_v2 = vsel %vm3899_vm8, %v3346_v10, %v4155_v0  ;;  %v3334_v10 = vadd.f32 %v8274_v48, %v8422_v32  ;;  %v178_v32 = vld [vmem:[%s9251_s0 + $0x4a0] sm:$0xff] }
 0x490   :  { %5986 = vmatmul.msk.f32.gmra.mxu1 %vm2238_vm2, %v2098_v3  ;;  %v3337_v3 = vadd.f32 %v8274_v48, %v8436_v56 }
 0x491   :  { %v4151_v63 = vmul.f32 0.01, %v3334_v10  ;;  %vm3895_vm14 = vcmp.gt.f32.partialorder %v3334_v10, 0.0 }
 0x492   :  { %v1140_v7 = vpop.f32.mrf.mxu0  ;;  %vm3896_vm12 = vcmp.gt.f32.partialorder %v3337_v3, 0.0 }
 0x493   :  { %v1141_v25 = vadd.f32 %v8227_v4, %v1140_v7  ;;  %6218 = vmatpush.xpose.msk.msra.mxu2 %vm424_vm0, %v4413_v8  ;;  %v4410_v7 = vsel %vm3898_vm9, %v3343_v58, %v4154_v21  ;;  %v4152_v8 = vmul.f32 0.01, %v3337_v3  ;;  %v3331_v58 = vadd.f32 %v8274_v48, %v8414_v17 }
 0x494   :  { %v3328_v17 = vadd.f32 %v8274_v48, %v8397_v50 }
 0x495   :  { %v1843_v61 = vmul.f32 0.01, %v1141_v25  ;;  %v8505_v29 = vpop.f32.mrf.mxu1  ;;  %vm1587_vm7 = vcmp.gt.f32.partialorder %v1141_v25, 0.0  ;;  %v4408_v18 = vsel %vm3896_vm12, %v3337_v3, %v4152_v8  ;;  %v4150_v21 = vmul.f32 0.01, %v3331_v58 }
 0x496   :  { %vm3894_vm15 = vcmp.gt.f32.partialorder %v3331_v58, 0.0  ;;  %vm3893_vm3 = vcmp.gt.f32.partialorder %v3328_v17, 0.0 }
 0x497   :  { %6219 = vmatpush.xpose.msk.msra.mxu2 %vm424_vm0, %v4412_v55  ;;  %v2099_v28 = vsel %vm1587_vm7, %v1141_v25, %v1843_v61  ;;  %v4409_v61 = vsel %vm3897_vm11, %v3340_v36, %v4153_v35  ;;  %v3325_v35 = vadd.f32 %v8274_v48, %v8387_v44 }
 0x498   :  { %5987 = vmatmul.msk.f32.gmra.mxu1 %vm2238_vm2, %v2099_v28  ;;  %v179_v28 = vld [vmem:[%s9251_s0 + $0x4a8] sm:$0xff] }
 0x499   :  { %v364_v36 = vpack.c.bf16 %v179_v28, %v178_v32  ;;  %v4148_v8 = vmul.f32 0.01, %v3325_v35  ;;  %vm3892_vm4 = vcmp.gt.f32.partialorder %v3325_v35, 0.0  ;;  %v181_v32 = vld [vmem:[%s9251_s0 + $0x4b8] sm:$0xff] }
 0x49a   :  { %v1143_v47 = vpop.f32.mrf.mxu0 }
 0x49b   :  { %v1144_v62 = vadd.f32 %v8227_v4, %v1143_v47  ;;  %6220 = vmatpush.xpose.msk.msra.mxu2 %vm424_vm0, %v4411_v2  ;;  %v4407_v2 = vsel %vm3895_vm14, %v3334_v10, %v4151_v63  ;;  %v3322_v10 = vadd.f32 %v8274_v48, %v8370_v27  ;;  %v180_v27 = vld [vmem:[%s9251_s0 + $0x4b0] sm:$0xff] }
 0x49d   :  { %vm1588_vm10 = vcmp.gt.f32.partialorder %v1144_v62, 0.0  ;;  %v1844_v12 = vmul.f32 0.01, %v1144_v62  ;;  %5803 = vmatmul.msk.bf16.gmra.mxu0 %vm424_vm0, %v363_v43  ;;  %v8522_v33 = vpop.f32.mrf.mxu1  ;;  %v4147_v63 = vmul.f32 0.01, %v3322_v10  ;;  %vm3891_vm6 = vcmp.gt.f32.partialorder %v3322_v10, 0.0 }
 0x49f   :  { %6221 = vmatpush.xpose.msk.msra.mxu2 %vm424_vm0, %v4410_v7  ;;  %v2100_v11 = vsel %vm1588_vm10, %v1144_v62, %v1844_v12  ;;  %v4149_v7 = vmul.f32 0.01, %v3328_v17 }
 0x4a0   :  { %5988 = vmatmul.msk.f32.gmra.mxu1 %vm2238_vm2, %v2100_v11  ;;  %v4406_v11 = vsel %vm3894_vm15, %v3331_v58, %v4150_v21  ;;  %v3319_v58 = vadd.f32 %v8274_v48, %v8360_v14  ;;  %v3316_v14 = vadd.f32 %v8274_v48, %v8343_v52  ;;  %v4403_v21 = vsel %vm3891_vm6, %v3322_v10, %v4147_v63  ;;  %v8597_v63 = vld [vmem:[%s9253_s2] ss:$0 sm:$0xff] }
 0x4a2   :  { %v1145_v25 = vpop.f32.mrf.mxu0  ;;  %vm3890_vm7 = vcmp.gt.f32.partialorder %v3319_v58, 0.0  ;;  %vm3889_vm9 = vcmp.gt.f32.partialorder %v3316_v14, 0.0 }
 0x4a3   :  { %v1146_v0 = vadd.f32 %v8227_v4, %v1145_v25  ;;  %6222 = vmatpush.xpose.msk.msra.mxu2 %vm424_vm0, %v4409_v61  ;;  %v4405_v61 = vsel %vm3893_vm3, %v3328_v17, %v4149_v7 }
 0x4a5   :  { %v1845_v56 = vmul.f32 0.01, %v1146_v0  ;;  %v8532_v55 = vpop.f32.mrf.mxu1  ;;  %vm1589_vm13 = vcmp.gt.f32.partialorder %v1146_v0, 0.0 }
 0x4a7   :  { %6223 = vmatpush.xpose.msk.msra.mxu2 %vm424_vm0, %v4408_v18  ;;  %v2101_v43 = vsel %vm1589_vm13, %v1146_v0, %v1845_v56  ;;  %v4404_v18 = vsel %vm3892_vm4, %v3325_v35, %v4148_v8  ;;  %v4145_v35 = vmul.f32 0.01, %v3316_v14 }
 0x4a8   :  { %5989 = vmatmul.msk.f32.gmra.mxu1 %vm2238_vm2, %v2101_v43  ;;  %v365_v43 = vpack.c.bf16 %v181_v32, %v180_v27 }
 0x4a9   :  { %v4401_v10 = vsel %vm3889_vm9, %v3316_v14, %v4145_v35 }
 0x4aa   :  { %v1148_v47 = vpop.f32.mrf.mxu0 }
 0x4ab   :  { %v1149_v62 = vadd.f32 %v8227_v4, %v1148_v47  ;;  %6224 = vmatpush.xpose.msk.msra.mxu2 %vm424_vm0, %v4407_v2 }
 0x4ad   :  { %vm1590_vm1 = vcmp.gt.f32.partialorder %v1149_v62, 0.0  ;;  %v1846_v12 = vmul.f32 0.01, %v1149_v62  ;;  %5804 = vmatmul.msk.bf16.gmra.mxu0 %vm424_vm0, %v364_v36  ;;  %v8549_v3 = vpop.f32.mrf.mxu1  ;;  %v4146_v36 = vmul.f32 0.01, %v3319_v58 }
 0x4af   :  { %6225 = vmatpush.xpose.msk.msra.mxu2 %vm424_vm0, %v4406_v11  ;;  %v2102_v50 = vsel %vm1590_vm1, %v1149_v62, %v1846_v12  ;;  %v3313_v12 = vadd.f32 %v8274_v48, %v8334_v30  ;;  %v4402_v7 = vsel %vm3890_vm7, %v3319_v58, %v4146_v36  ;;  %v182_v30 = vld [vmem:[%s9251_s0 + $0x4c0] sm:$0xff] }
 0x4b0   :  { %5990 = vmatmul.msk.f32.gmra.mxu1 %vm2238_vm2, %v2102_v50 }
 0x4b1   :  { %v4144_v11 = vmul.f32 0.01, %v3313_v12  ;;  %vm3888_vm10 = vcmp.gt.f32.partialorder %v3313_v12, 0.0 }
 0x4b2   :  { %v1150_v25 = vpop.f32.mrf.mxu0 }
 0x4b3   :  { %v1151_v0 = vadd.f32 %v8227_v4, %v1150_v25  ;;  %6226 = vmatpush.xpose.msk.msra.mxu2 %vm424_vm0, %v4405_v61  ;;  %v4400_v48 = vsel %vm3888_vm10, %v3313_v12, %v4144_v11 }
 0x4b5   :  { %v1847_v44 = vmul.f32 0.01, %v1151_v0  ;;  %v8559_v56 = vpop.f32.mrf.mxu1  ;;  %vm1591_vm5 = vcmp.gt.f32.partialorder %v1151_v0, 0.0 }
 0x4b7   :  { %6227 = vmatpush.xpose.msk.msra.mxu2 %vm424_vm0, %v4404_v18  ;;  %v2103_v28 = vsel %vm1591_vm5, %v1151_v0, %v1847_v44  ;;  %v183_v0 = vld [vmem:[%s9251_s0 + $0x4c8] sm:$0xff] }
 0x4b8   :  { %5991 = vmatmul.msk.f32.gmra.mxu1 %vm2238_vm2, %v2103_v28 }
 0x4ba   :  { %v1153_v17 = vpop.f32.mrf.mxu0 }
 0x4bb   :  { %v1154_v47 = vadd.f32 %v8227_v4, %v1153_v17  ;;  %6228 = vmatpush.xpose.msk.msra.mxu2 %vm424_vm0, %v4403_v21  ;;  %v184_v21 = vld [vmem:[%s9251_s0 + $0x4d0] sm:$0xff] }
 0x4bd   :  { %vm1592_vm8 = vcmp.gt.f32.partialorder %v1154_v47, 0.0  ;;  %v1848_v2 = vmul.f32 0.01, %v1154_v47  ;;  %5805 = vmatmul.msk.bf16.gmra.mxu0 %vm424_vm0, %v365_v43  ;;  %v8576_v62 = vpop.f32.mrf.mxu1 }
 0x4bf   :  { %6229 = vmatpush.xpose.msk.msra.mxu2 %vm424_vm0, %v4402_v7  ;;  %v2104_v52 = vsel %vm1592_vm8, %v1154_v47, %v1848_v2  ;;  %v185_v47 = vld [vmem:[%s9251_s0 + $0x4d8] sm:$0xff] }
 0x4c0   :  { %5992 = vmatmul.msk.f32.gmra.mxu1 %vm2238_vm2, %v2104_v52  ;;  %v367_v12 = vpack.c.bf16 %v185_v47, %v184_v21 }
 0x4c2   :  { %v1155_v50 = vpop.f32.mrf.mxu0 }
 0x4c3   :  { %v1156_v8 = vadd.f32 %v8227_v4, %v1155_v50  ;;  %6230 = vmatpush.xpose.msk.msra.mxu2 %vm424_vm0, %v4401_v10  ;;  %v366_v4 = vpack.c.bf16 %v183_v0, %v182_v30  ;;  %v186_v30 = vld [vmem:[%s9251_s0 + $0x4e0] sm:$0xff]  ;;  %v187_v0 = vld [vmem:[%s9251_s0 + $0x4e8] sm:$0xff] }
 0x4c5   :  { %vm1593_vm11 = vcmp.gt.f32.partialorder %v1156_v8, 0.0  ;;  %v1849_v25 = vmul.f32 0.01, %v1156_v8  ;;  %v8584_v61 = vpop.f32.mrf.mxu1 }
 0x4c7   :  { %6231 = vmatpush.xpose.msk.msra.mxu2 %vm424_vm0, %v4400_v48  ;;  %v2105_v44 = vsel %vm1593_vm11, %v1156_v8, %v1849_v25 }
 0x4c8   :  { %5993 = vmatmul.msk.f32.gmra.mxu1 %vm2238_vm2, %v2105_v44 }
 0x4ca   :  { %v1158_v58 = vpop.f32.mrf.mxu0 }
 0x4cb   :  { %v1159_v18 = vadd.f32 %v8597_v63, %v1158_v58 }
 0x4cd   :  { %vm1594_vm12 = vcmp.gt.f32.partialorder %v1159_v18, 0.0  ;;  %v1850_v27 = vmul.f32 0.01, %v1159_v18  ;;  %5806 = vmatmul.msk.bf16.gmra.mxu0 %vm424_vm0, %v366_v4  ;;  %v8601_v32 = vpop.f32.mrf.mxu1  ;;  %v368_v4 = vpack.c.bf16 %v187_v0, %v186_v30  ;;  %v8638_v0 = vld [vmem:[%s9255_s4] ss:$0 sm:$0xff] }
 0x4cf   :  { %v2106_v28 = vsel %vm1594_vm12, %v1159_v18, %v1850_v27 }
 0x4d0   :  { %5994 = vmatmul.msk.f32.gmra.mxu1 %vm2238_vm2, %v2106_v28 }
 0x4d2   :  { %v1160_v43 = vpop.f32.mrf.mxu0 }
 0x4d3   :  { %v1161_v14 = vadd.f32 %v8597_v63, %v1160_v43 }
 0x4d5   :  { %vm1595_vm13 = vcmp.gt.f32.partialorder %v1161_v14, 0.0  ;;  %v1851_v36 = vmul.f32 0.01, %v1161_v14  ;;  %v8605_v17 = vpop.f32.mrf.mxu1 }
 0x4d7   :  { %v2107_v2 = vsel %vm1595_vm13, %v1161_v14, %v1851_v36 }
 0x4d8   :  { %5995 = vmatmul.msk.f32.gmra.mxu1 %vm2238_vm2, %v2107_v2 }
 0x4da   :  { %v1163_v35 = vpop.f32.mrf.mxu0 }
 0x4db   :  { %v1164_v7 = vadd.f32 %v8597_v63, %v1163_v35 }
 0x4dd   :  { %vm1596_vm14 = vcmp.gt.f32.partialorder %v1164_v7, 0.0  ;;  %v1852_v52 = vmul.f32 0.01, %v1164_v7  ;;  %5807 = vmatmul.msk.bf16.gmra.mxu0 %vm424_vm0, %v367_v12  ;;  %v8616_v11 = vpop.f32.mrf.mxu1 }
 0x4df   :  { %v2108_v50 = vsel %vm1596_vm14, %v1164_v7, %v1852_v52 }
 0x4e0   :  { %5996 = vmatmul.msk.f32.gmra.mxu1 %vm2238_vm2, %v2108_v50 }
 0x4e2   :  { %v1165_v10 = vpop.f32.mrf.mxu0 }
 0x4e3   :  { %v1166_v8 = vadd.f32 %v8597_v63, %v1165_v10 }
 0x4e5   :  { %vm1597_vm15 = vcmp.gt.f32.partialorder %v1166_v8, 0.0  ;;  %v1853_v25 = vmul.f32 0.01, %v1166_v8  ;;  %v3393_v48 = vpop.f32.mrf.mxu1 }
 0x4e7   :  { %v2109_v44 = vsel %vm1597_vm15, %v1166_v8, %v1853_v25 }
 0x4e8   :  { %5997 = vmatmul.msk.f32.gmra.mxu1 %vm2238_vm2, %v2109_v44 }
 0x4ea   :  { %v1168_v58 = vpop.f32.mrf.mxu0 }
 0x4eb   :  { %v1169_v18 = vadd.f32 %v8597_v63, %v1168_v58 }
 0x4ed   :  { %vm1598_vm1 = vcmp.gt.f32.partialorder %v1169_v18, 0.0  ;;  %v1854_v27 = vmul.f32 0.01, %v1169_v18  ;;  %5808 = vmatmul.msk.bf16.gmra.mxu0 %vm424_vm0, %v368_v4  ;;  %v3396_v28 = vpop.f32.mrf.mxu1 }
 0x4ef   :  { %v2110_v43 = vsel %vm1598_vm1, %v1169_v18, %v1854_v27 }
 0x4f0   :  { %5998 = vmatmul.msk.f32.gmra.mxu1 %vm2238_vm2, %v2110_v43 }
 0x4f2   :  { %v1170_v14 = vpop.f32.mrf.mxu0 }
 0x4f3   :  { %v1171_v36 = vadd.f32 %v8597_v63, %v1170_v14 }
 0x4f5   :  { %vm1599_vm3 = vcmp.gt.f32.partialorder %v1171_v36, 0.0  ;;  %v1855_v21 = vmul.f32 0.01, %v1171_v36  ;;  %v3399_v47 = vpop.f32.mrf.mxu1 }
 0x4f6   :  { %v3400_v27 = vadd.f32 %v8638_v0, %v3399_v47  ;;  %v3394_v47 = vadd.f32 %v8638_v0, %v3393_v48 }
 0x4f7   :  { %v2111_v2 = vsel %vm1599_vm3, %v1171_v36, %v1855_v21 }
 0x4f8   :  { %5999 = vmatmul.msk.f32.gmra.mxu1 %vm2238_vm2, %v2111_v2  ;;  %vm3917_vm9 = vcmp.gt.f32.partialorder %v3400_v27, 0.0  ;;  %vm3915_vm12 = vcmp.gt.f32.partialorder %v3394_v47, 0.0 }
 0x4fa   :  { %v1173_v12 = vpop.f32.mrf.mxu0 }
 0x4fb   :  { %v1174_v35 = vadd.f32 %v8597_v63, %v1173_v12 }
 0x4fd   :  { %vm1600_vm4 = vcmp.gt.f32.partialorder %v1174_v35, 0.0  ;;  %v1856_v7 = vmul.f32 0.01, %v1174_v35  ;;  %v3402_v52 = vpop.f32.mrf.mxu1 }
 0x4fe   :  { %v3403_v44 = vadd.f32 %v8638_v0, %v3402_v52 }
 0x4ff   :  { %v2112_v50 = vsel %vm1600_vm4, %v1174_v35, %v1856_v7  ;;  %v3397_v35 = vadd.f32 %v8638_v0, %v3396_v28  ;;  %v4173_v7 = vmul.f32 0.01, %v3400_v27  ;;  %v8659_v28 = vld [vmem:[%s9256_s5] sm:$0x1] }
 0x500   :  { %6000 = vmatmul.msk.f32.gmra.mxu1 %vm2238_vm2, %v2112_v50  ;;  %v4174_v43 = vmul.f32 0.01, %v3403_v44  ;;  %vm3918_vm7 = vcmp.gt.f32.partialorder %v3403_v44, 0.0 }
 0x501   :  { %vm3916_vm10 = vcmp.gt.f32.partialorder %v3397_v35, 0.0 }
 0x502   :  { %v1175_v10 = vpop.f32.mrf.mxu0  ;;  %v4430_v52 = vsel %vm3918_vm7, %v3403_v44, %v4174_v43 }
 0x503   :  { %v1176_v8 = vadd.f32 %v8597_v63, %v1175_v10  ;;  %v4172_v10 = vmul.f32 0.01, %v3397_v35 }
 0x505   :  { %vm1601_vm5 = vcmp.gt.f32.partialorder %v1176_v8, 0.0  ;;  %v1857_v25 = vmul.f32 0.01, %v1176_v8  ;;  %v3405_v30 = vpop.f32.mrf.mxu1 }
 0x506   :  { %v3406_v4 = vadd.f32 %v8638_v0, %v3405_v30 }
 0x507   :  { %v2113_v58 = vsel %vm1601_vm5, %v1176_v8, %v1857_v25  ;;  %v4429_v25 = vsel %vm3917_vm9, %v3400_v27, %v4173_v7  ;;  %v4428_v27 = vsel %vm3916_vm10, %v3397_v35, %v4172_v10 }
 0x508   :  { %vm3919_vm6 = vcmp.gt.f32.partialorder %v3406_v4, 0.0  ;;  %v4175_v18 = vmul.f32 0.01, %v3406_v4  ;;  %6001 = vmatmul.msk.f32.gmra.mxu1 %vm2238_vm2, %v2113_v58  ;;  %v3391_v58 = vadd.f32 %v8638_v0, %v8616_v11 }
 0x50a   :  { %v1178_v14 = vpop.f32.mrf.mxu0  ;;  %v4431_v36 = vsel %vm3919_vm6, %v3406_v4, %v4175_v18  ;;  %v8654_v4 = vpop.f32.mrf.mxu2  ;;  %6198 = vmatmul.msk.f32.vlgmr.msrb.gmra.mxu2 %vm424_vm0, %v8659_v28  ;;  %v4171_v18 = vmul.f32 0.01, %v3394_v47  ;;  %vm3914_vm13 = vcmp.gt.f32.partialorder %v3391_v58, 0.0 }
 0x50b   :  { %v1179_v21 = vadd.f32 %v8597_v63, %v1178_v14  ;;  %6233 = vmatpush.xpose.msk.msra.mxu3 %vm424_vm0, %v4431_v36  ;;  %v3388_v14 = vadd.f32 %v8638_v0, %v8605_v17  ;;  %v4170_v36 = vmul.f32 0.01, %v3391_v58  ;;  %v3385_v17 = vadd.f32 %v8638_v0, %v8601_v32 }
 0x50d   :  { %vm1602_vm8 = vcmp.gt.f32.partialorder %v1179_v21, 0.0  ;;  %v1858_v2 = vmul.f32 0.01, %v1179_v21  ;;  %v8646_v12 = vpop.f32.mrf.mxu1  ;;  %v4426_v10 = vsel %vm3914_vm13, %v3391_v58, %v4170_v36  ;;  %vm3913_vm15 = vcmp.gt.f32.partialorder %v3388_v14, 0.0 }
 0x50e   :  { %vm3912_vm1 = vcmp.gt.f32.partialorder %v3385_v17, 0.0 }
 0x50f   :  { %6234 = vmatpush.xpose.msk.msra.mxu3 %vm424_vm0, %v4430_v52  ;;  %v2114_v50 = vsel %vm1602_vm8, %v1179_v21, %v1858_v2  ;;  %v4427_v2 = vsel %vm3915_vm12, %v3394_v47, %v4171_v18 }
 0x510   :  { %6002 = vmatmul.msk.f32.gmra.mxu1 %vm2238_vm2, %v2114_v50  ;;  %v4169_v50 = vmul.f32 0.01, %v3388_v14 }
 0x512   :  { %v1180_v8 = vpop.f32.mrf.mxu0  ;;  %v8673_v11 = vpop.f32.mrf.mxu2  ;;  %6232 = vmatmul.msk.f32.vlgmr.msra.gmra.mxu2 %vm424_vm0, %v8659_v28 }
 0x513   :  { %v1181_v30 = vadd.f32 %v8597_v63, %v1180_v8  ;;  %6235 = vmatpush.xpose.msk.msra.mxu3 %vm424_vm0, %v4429_v25  ;;  %v3382_v8 = vadd.f32 %v8638_v0, %v8584_v61  ;;  %v4168_v25 = vmul.f32 0.01, %v3385_v17 }
 0x515   :  { %vm1603_vm11 = vcmp.gt.f32.partialorder %v1181_v30, 0.0  ;;  %v1859_v48 = vmul.f32 0.01, %v1181_v30  ;;  %v8663_v44 = vpop.f32.mrf.mxu1  ;;  %v4167_v36 = vmul.f32 0.01, %v3382_v8  ;;  %vm3911_vm4 = vcmp.gt.f32.partialorder %v3382_v8, 0.0 }
 0x517   :  { %6236 = vmatpush.xpose.msk.msra.mxu3 %vm424_vm0, %v4428_v27  ;;  %v2115_v43 = vsel %vm1603_vm11, %v1181_v30, %v1859_v48  ;;  %v4425_v48 = vsel %vm3913_vm15, %v3388_v14, %v4169_v50  ;;  %v3376_v14 = vadd.f32 %v8638_v0, %v8559_v56 }
 0x518   :  { %6003 = vmatmul.msk.f32.gmra.mxu1 %vm2238_vm2, %v2115_v43  ;;  %v3379_v43 = vadd.f32 %v8638_v0, %v8576_v62 }
 0x519   :  { %vm3909_vm7 = vcmp.gt.f32.partialorder %v3376_v14, 0.0 }
 0x51a   :  { %v1183_v21 = vpop.f32.mrf.mxu0  ;;  %v8687_v32 = vpop.f32.mrf.mxu2  ;;  %vm3910_vm5 = vcmp.gt.f32.partialorder %v3379_v43, 0.0 }
 0x51b   :  { %v1184_v7 = vadd.f32 %v8597_v63, %v1183_v21  ;;  %6237 = vmatpush.xpose.msk.msra.mxu3 %vm424_vm0, %v4427_v2  ;;  %v4424_v21 = vsel %vm3912_vm1, %v3385_v17, %v4168_v25  ;;  %v4166_v2 = vmul.f32 0.01, %v3379_v43  ;;  %v4165_v25 = vmul.f32 0.01, %v3376_v14 }
 0x51d   :  { %vm1604_vm14 = vcmp.gt.f32.partialorder %v1184_v7, 0.0  ;;  %v1860_v35 = vmul.f32 0.01, %v1184_v7  ;;  %v8677_v52 = vpop.f32.mrf.mxu1 }
 0x51f   :  { %6238 = vmatpush.xpose.msk.msra.mxu3 %vm424_vm0, %v4426_v10  ;;  %v2116_v47 = vsel %vm1604_vm14, %v1184_v7, %v1860_v35  ;;  %v4423_v35 = vsel %vm3911_vm4, %v3382_v8, %v4167_v36  ;;  %v3370_v8 = vadd.f32 %v8638_v0, %v8532_v55 }
 0x520   :  { %6004 = vmatmul.msk.f32.gmra.mxu1 %vm2238_vm2, %v2116_v47  ;;  %v3373_v47 = vadd.f32 %v8638_v0, %v8549_v3 }
 0x521   :  { %vm3907_vm10 = vcmp.gt.f32.partialorder %v3370_v8, 0.0 }
 0x522   :  { %v1185_v30 = vpop.f32.mrf.mxu0  ;;  %v8699_v62 = vpop.f32.mrf.mxu2  ;;  %vm3908_vm8 = vcmp.gt.f32.partialorder %v3373_v47, 0.0 }
 0x523   :  { %v1186_v18 = vadd.f32 %v8597_v63, %v1185_v30  ;;  %6239 = vmatpush.xpose.msk.msra.mxu3 %vm424_vm0, %v4425_v48  ;;  %v4422_v30 = vsel %vm3910_vm5, %v3379_v43, %v4166_v2  ;;  %v4164_v48 = vmul.f32 0.01, %v3373_v47  ;;  %v4163_v2 = vmul.f32 0.01, %v3370_v8 }
 0x525   :  { %vm1605_vm3 = vcmp.gt.f32.partialorder %v1186_v18, 0.0  ;;  %v1861_v58 = vmul.f32 0.01, %v1186_v18  ;;  %v8689_v27 = vpop.f32.mrf.mxu1 }
 0x527   :  { %6240 = vmatpush.xpose.msk.msra.mxu3 %vm424_vm0, %v4424_v21  ;;  %v2117_v61 = vsel %vm1605_vm3, %v1186_v18, %v1861_v58  ;;  %v4421_v58 = vsel %vm3909_vm7, %v3376_v14, %v4165_v25  ;;  %v3364_v14 = vadd.f32 %v8638_v0, %v8505_v29  ;;  %v3502_v29 = vadd.f32 %v8638_v0, %v6910_v9 }
 0x528   :  { %6005 = vmatmul.msk.f32.gmra.mxu1 %vm2238_vm2, %v2117_v61  ;;  %v3367_v61 = vadd.f32 %v8638_v0, %v8522_v33 }
 0x529   :  { %vm3905_vm13 = vcmp.gt.f32.partialorder %v3364_v14, 0.0  ;;  %vm3951_vm15 = vcmp.gt.f32.partialorder %v3502_v29, 0.0 }
 0x52a   :  { %v1188_v7 = vpop.f32.mrf.mxu0  ;;  %v8711_v3 = vpop.f32.mrf.mxu2  ;;  %vm3906_vm11 = vcmp.gt.f32.partialorder %v3367_v61, 0.0 }
 0x52b   :  { %v1189_v50 = vadd.f32 %v8597_v63, %v1188_v7  ;;  %6241 = vmatpush.xpose.msk.msra.mxu3 %vm424_vm0, %v4423_v35  ;;  %v4420_v7 = vsel %vm3908_vm8, %v3373_v47, %v4164_v48  ;;  %v4162_v35 = vmul.f32 0.01, %v3367_v61  ;;  %v4161_v48 = vmul.f32 0.01, %v3364_v14 }
 0x52d   :  { %vm1606_vm6 = vcmp.gt.f32.partialorder %v1189_v50, 0.0  ;;  %v1862_v17 = vmul.f32 0.01, %v1189_v50  ;;  %v8701_v10 = vpop.f32.mrf.mxu1 }
 0x52f   :  { %6242 = vmatpush.xpose.msk.msra.mxu3 %vm424_vm0, %v4422_v30  ;;  %v2118_v56 = vsel %vm1606_vm6, %v1189_v50, %v1862_v17  ;;  %v4419_v17 = vsel %vm3907_vm10, %v3370_v8, %v4163_v2  ;;  %v3499_v2 = vadd.f32 %v8638_v0, %v6900_v59 }
 0x530   :  { %6006 = vmatmul.msk.f32.gmra.mxu1 %vm2238_vm2, %v2118_v56  ;;  %v3361_v56 = vadd.f32 %v8638_v0, %v8496_v19 }
 0x531   :  { %vm3950_vm3 = vcmp.gt.f32.partialorder %v3499_v2, 0.0 }
 0x532   :  { %v1190_v18 = vpop.f32.mrf.mxu0  ;;  %v8723_v33 = vpop.f32.mrf.mxu2  ;;  %vm3904_vm14 = vcmp.gt.f32.partialorder %v3361_v56, 0.0 }
 0x533   :  { %v1191_v36 = vadd.f32 %v8597_v63, %v1190_v18  ;;  %6243 = vmatpush.xpose.msk.msra.mxu3 %vm424_vm0, %v4421_v58  ;;  %v4418_v18 = vsel %vm3906_vm11, %v3367_v61, %v4162_v35  ;;  %v4160_v58 = vmul.f32 0.01, %v3361_v56 }
 0x535   :  { %vm1607_vm9 = vcmp.gt.f32.partialorder %v1191_v36, 0.0  ;;  %v1863_v43 = vmul.f32 0.01, %v1191_v36  ;;  %v8713_v21 = vpop.f32.mrf.mxu1  ;;  %v4416_v35 = vsel %vm3904_vm14, %v3361_v56, %v4160_v58 }
 0x537   :  { %6244 = vmatpush.xpose.msk.msra.mxu3 %vm424_vm0, %v4420_v7  ;;  %v2119_v55 = vsel %vm1607_vm9, %v1191_v36, %v1863_v43  ;;  %v4417_v43 = vsel %vm3905_vm13, %v3364_v14, %v4161_v48  ;;  %v4207_v7 = vmul.f32 0.01, %v3502_v29 }
 0x538   :  { %6007 = vmatmul.msk.f32.gmra.mxu1 %vm2238_vm2, %v2119_v55 }
 0x53a   :  { %v1193_v50 = vpop.f32.mrf.mxu0  ;;  %v8737_v61 = vpop.f32.mrf.mxu2 }
 0x53b   :  { %v1194_v25 = vadd.f32 %v8597_v63, %v1193_v50  ;;  %6245 = vmatpush.xpose.msk.msra.mxu3 %vm424_vm0, %v4419_v17  ;;  %9306 = vst [vmem:[#allocation53_spill] sm:$0xff] %v8737_v61  ;;  %v4206_v50 = vmul.f32 0.01, %v3499_v2  ;;  %v4463_v17 = vsel %vm3951_vm15, %v3502_v29, %v4207_v7 }
 0x53d   :  { %vm1608_vm12 = vcmp.gt.f32.partialorder %v1194_v25, 0.0  ;;  %v1864_v47 = vmul.f32 0.01, %v1194_v25  ;;  %v8725_v30 = vpop.f32.mrf.mxu1 }
 0x53f   :  { %6246 = vmatpush.xpose.msk.msra.mxu3 %vm424_vm0, %v4418_v18  ;;  %v2120_v8 = vsel %vm1608_vm12, %v1194_v25, %v1864_v47  ;;  %v4462_v47 = vsel %vm3950_vm3, %v3499_v2, %v4206_v50 }
 0x540   :  { %6008 = vmatmul.msk.f32.gmra.mxu1 %vm2238_vm2, %v2120_v8 }
 0x542   :  { %v1195_v36 = vpop.f32.mrf.mxu0  ;;  %v8747_v48 = vpop.f32.mrf.mxu2 }
 0x543   :  { %v1196_v19 = vadd.f32 %v8597_v63, %v1195_v36  ;;  %6247 = vmatpush.xpose.msk.msra.mxu3 %vm424_vm0, %v4417_v43  ;;  %9307 = vst [vmem:[#allocation54_spill] sm:$0xff] %v8747_v48 }
 0x545   :  { %vm1609_vm1 = vcmp.gt.f32.partialorder %v1196_v19, 0.0  ;;  %v1865_v9 = vmul.f32 0.01, %v1196_v19  ;;  %v8739_v55 = vpop.f32.mrf.mxu1 }
 0x547   :  { %6248 = vmatpush.xpose.msk.msra.mxu3 %vm424_vm0, %v4416_v35  ;;  %v2121_v14 = vsel %vm1609_vm1, %v1196_v19, %v1865_v9 }
 0x548   :  { %6009 = vmatmul.msk.f32.gmra.mxu1 %vm2238_vm2, %v2121_v14 }
 0x54a   :  { %v1198_v59 = vpop.f32.mrf.mxu0  ;;  %6249 = vmatmul.msk.f32.vlgmr.msra.gmra.mxu3 %vm424_vm0, %v8659_v28  ;;  %v8754_v36 = vpop.f32.mrf.mxu2 }
 0x54b   :  { %6267 = vmatpush.xpose.msk.msrb.mxu3 %vm424_vm0, %v4463_v17  ;;  %v1199_v25 = vadd.f32 %v8597_v63, %v1198_v59  ;;  %9308 = vst [vmem:[#allocation55_spill] sm:$0xff] %v8754_v36  ;;  %v6439_v59 = vmov 0  }
 0x54c   :  { %6398 = vset.pattern.permute.xlu0 %v6439_v59 }
 0x54d   :  { %vm1610_vm4 = vcmp.gt.f32.partialorder %v1199_v25, 0.0  ;;  %v1866_v56 = vmul.f32 0.01, %v1199_v25  ;;  %v8750_v18 = vpop.f32.mrf.mxu1 }
 0x54f   :  { %6268 = vmatpush.xpose.msk.msrb.mxu3 %vm424_vm0, %v4462_v47  ;;  %v2122_v29 = vsel %vm1610_vm4, %v1199_v25, %v1866_v56 }
 0x550   :  { %6010 = vmatmul.msk.f32.gmra.mxu1 %vm2238_vm2, %v2122_v29 }
 0x552   :  { %v1200_v8 = vpop.f32.mrf.mxu0  ;;  %v8760_v35 = vpop.f32.mrf.mxu2 }
 0x553   :  { %v1201_v58 = vadd.f32 %v8597_v63, %v1200_v8  ;;  %9309 = vst [vmem:[#allocation56_spill] sm:$0xff] %v8760_v35 }
 0x555   :  { %vm1611_vm5 = vcmp.gt.f32.partialorder %v1201_v58, 0.0  ;;  %v1867_v43 = vmul.f32 0.01, %v1201_v58  ;;  %v8756_v7 = vpop.f32.mrf.mxu1 }
 0x557   :  { %v2123_v2 = vsel %vm1611_vm5, %v1201_v58, %v1867_v43  ;;  %v4561_v58 = vld [vmem:[#allocation2] sm:$0x1] }
 0x558   :  { %6011 = vmatmul.msk.f32.gmra.mxu1 %vm2238_vm2, %v2123_v2  ;;  %4564 = vperm.xlu0 %6398, %v4561_v58  }
 0x55a   :  { %v1203_v19 = vpop.f32.mrf.mxu0  ;;  %v8764_v56 = vpop.f32.mrf.mxu2 }
 0x55b   :  { %v1204_v9 = vadd.f32 %v8597_v63, %v1203_v19  ;;  %9310 = vst [vmem:[#allocation57_spill] sm:$0xff] %v8764_v56 }
 0x55d   :  { %vm1612_vm6 = vcmp.gt.f32.partialorder %v1204_v9, 0.0  ;;  %v1868_v50 = vmul.f32 0.01, %v1204_v9  ;;  %v3438_v14 = vpop.f32.mrf.mxu1 }
 0x55f   :  { %v2124_v17 = vsel %vm1612_vm6, %v1204_v9, %v1868_v50 }
 0x560   :  { %6012 = vmatmul.msk.f32.gmra.mxu1 %vm2238_vm2, %v2124_v17 }
 0x562   :  { %v1205_v25 = vpop.f32.mrf.mxu0  ;;  %v8768_v9 = vpop.f32.mrf.mxu2 }
 0x563   :  { %v1206_v47 = vadd.f32 %v8597_v63, %v1205_v25  ;;  %9311 = vst [vmem:[#allocation58_spill] sm:$0xff] %v8768_v9 }
 0x565   :  { %vm1613_vm7 = vcmp.gt.f32.partialorder %v1206_v47, 0.0  ;;  %v1869_v29 = vmul.f32 0.01, %v1206_v47  ;;  %v3441_v8 = vpop.f32.mrf.mxu1 }
 0x567   :  { %v2125_v43 = vsel %vm1613_vm7, %v1206_v47, %v1869_v29 }
 0x568   :  { %6013 = vmatmul.msk.f32.gmra.mxu1 %vm2238_vm2, %v2125_v43 }
 0x56a   :  { %v1208_v2 = vpop.f32.mrf.mxu0  ;;  %v8772_v48 = vpop.f32.mrf.mxu2 }
 0x56b   :  { %v1209_v19 = vadd.f32 %v8597_v63, %v1208_v2  ;;  %9312 = vst [vmem:[#allocation59_spill] sm:$0xff] %v8772_v48 }
 0x56d   :  { %vm1614_vm8 = vcmp.gt.f32.partialorder %v1209_v19, 0.0  ;;  %v1870_v50 = vmul.f32 0.01, %v1209_v19  ;;  %v3444_v17 = vpop.f32.mrf.mxu1 }
 0x56f   :  { %v2126_v59 = vsel %vm1614_vm8, %v1209_v19, %v1870_v50 }
 0x570   :  { %6014 = vmatmul.msk.f32.gmra.mxu1 %vm2238_vm2, %v2126_v59 }
 0x572   :  { %v1210_v25 = vpop.f32.mrf.mxu0  ;;  %v8775_v43 = vpop.f32.mrf.mxu2 }
 0x573   :  { %v1211_v61 = vadd.f32 %v8597_v63, %v1210_v25  ;;  %9313 = vst [vmem:[#allocation60_spill] sm:$0xff] %v8775_v43 }
 0x575   :  { %vm1615_vm9 = vcmp.gt.f32.partialorder %v1211_v61, 0.0  ;;  %v1871_v47 = vmul.f32 0.01, %v1211_v61  ;;  %v3447_v29 = vpop.f32.mrf.mxu1 }
 0x576   :  { %v3448_v59 = vadd.f32 %v8638_v0, %v3447_v29 }
 0x577   :  { %v2127_v58 = vsel %vm1615_vm9, %v1211_v61, %v1871_v47 }
 0x578   :  { %6015 = vmatmul.msk.f32.gmra.mxu1 %vm2238_vm2, %v2127_v58  ;;  %v3445_v58 = vadd.f32 %v8638_v0, %v3444_v17  ;;  %v4189_v9 = vmul.f32 0.01, %v3448_v59  ;;  %vm3933_vm2 = vcmp.gt.f32.partialorder %v3448_v59, 0.0 }
 0x57a   :  { %v8777_v36 = vpop.f32.mrf.mxu2  ;;  %v4445_v29 = vsel %vm3933_vm2, %v3448_v59, %v4189_v9  ;;  %vm3932_vm12 = vcmp.gt.f32.partialorder %v3445_v58, 0.0 }
 0x57b   :  { %9314 = vst [vmem:[#allocation61_spill] sm:$0xff] %v8777_v36 }
 0x57d   :  { %v3450_v2 = vpop.f32.mrf.mxu1 }
 0x57e   :  { %v3451_v19 = vadd.f32 %v8638_v0, %v3450_v2  ;;  %v4188_v2 = vmul.f32 0.01, %v3445_v58 }
 0x580   :  { %v4190_v25 = vmul.f32 0.01, %v3451_v19  ;;  %vm3934_vm11 = vcmp.gt.f32.partialorder %v3451_v19, 0.0  ;;  %v4444_v17 = vsel %vm3932_vm12, %v3445_v58, %v4188_v2 }
 0x582   :  { %v8783_v61 = vpop.f32.mrf.mxu2  ;;  %v4446_v48 = vsel %vm3934_vm11, %v3451_v19, %v4190_v25 }
 0x583   :  { %9315 = vst [vmem:[#allocation62_spill] sm:$0xff] %v8783_v61 }
 0x585   :  { %v3453_v35 = vpop.f32.mrf.mxu1 }
 0x586   :  { %v3454_v50 = vadd.f32 %v8638_v0, %v3453_v35  ;;  %v3442_v35 = vadd.f32 %v8638_v0, %v3441_v8 }
 0x588   :  { %vm3935_vm10 = vcmp.gt.f32.partialorder %v3454_v50, 0.0  ;;  %v4191_v63 = vmul.f32 0.01, %v3454_v50  ;;  %v4187_v43 = vmul.f32 0.01, %v3442_v35  ;;  %vm3931_vm13 = vcmp.gt.f32.partialorder %v3442_v35, 0.0 }
 0x58a   :  { %v4447_v56 = vsel %vm3935_vm10, %v3454_v50, %v4191_v63  ;;  %v8791_v50 = vpop.f32.mrf.mxu2  ;;  %v3439_v63 = vadd.f32 %v8638_v0, %v3438_v14  ;;  %v4443_v19 = vsel %vm3931_vm13, %v3442_v35, %v4187_v43  ;;  %v3433_v14 = vadd.f32 %v8638_v0, %v8750_v18 }
 0x58b   :  { %6250 = vmatpush.xpose.msk.msrb.mxu2 %vm424_vm0, %v4447_v56  ;;  %9316 = vst [vmem:[#allocation63_spill] sm:$0xff] %v8791_v50  ;;  %v3427_v18 = vadd.f32 %v8638_v0, %v8725_v30  ;;  %v3421_v30 = vadd.f32 %v8638_v0, %v8701_v10  ;;  %v3415_v10 = vadd.f32 %v8638_v0, %v8677_v52 }
 0x58c   :  { %v4186_v8 = vmul.f32 0.01, %v3439_v63  ;;  %vm3930_vm14 = vcmp.gt.f32.partialorder %v3439_v63, 0.0  ;;  %v4184_v2 = vmul.f32 0.01, %v3433_v14  ;;  %vm3928_vm1 = vcmp.gt.f32.partialorder %v3433_v14, 0.0 }
 0x58d   :  { %v8785_v47 = vpop.f32.mrf.mxu1  ;;  %vm3926_vm4 = vcmp.gt.f32.partialorder %v3427_v18, 0.0  ;;  %vm3924_vm6 = vcmp.gt.f32.partialorder %v3421_v30, 0.0  ;;  %vm3922_vm8 = vcmp.gt.f32.partialorder %v3415_v10, 0.0  ;;  %v3409_v52 = vadd.f32 %v8638_v0, %v8646_v12 }
 0x58e   :  { %v4442_v58 = vsel %vm3930_vm14, %v3439_v63, %v4186_v8  ;;  %v4440_v63 = vsel %vm3928_vm1, %v3433_v14, %v4184_v2  ;;  %v4182_v8 = vmul.f32 0.01, %v3427_v18  ;;  %v4180_v2 = vmul.f32 0.01, %v3421_v30 }
 0x58f   :  { %6251 = vmatpush.xpose.msk.msrb.mxu2 %vm424_vm0, %v4446_v48  ;;  %v3436_v48 = vadd.f32 %v8638_v0, %v8756_v7  ;;  %v3430_v7 = vadd.f32 %v8638_v0, %v8739_v55  ;;  %v3424_v55 = vadd.f32 %v8638_v0, %v8713_v21  ;;  %v3418_v21 = vadd.f32 %v8638_v0, %v8689_v27 }
 0x590   :  { %v4438_v14 = vsel %vm3926_vm4, %v3427_v18, %v4182_v8  ;;  %v4436_v18 = vsel %vm3924_vm6, %v3421_v30, %v4180_v2  ;;  %v3412_v27 = vadd.f32 %v8638_v0, %v8663_v44  ;;  %v4178_v8 = vmul.f32 0.01, %v3415_v10  ;;  %v8849_v44 = vpop.f32.mrf.mxu3 }
 0x591   :  { %v4185_v25 = vmul.f32 0.01, %v3436_v48  ;;  %vm3929_vm15 = vcmp.gt.f32.partialorder %v3436_v48, 0.0  ;;  %vm3927_vm3 = vcmp.gt.f32.partialorder %v3430_v7, 0.0  ;;  %vm3925_vm5 = vcmp.gt.f32.partialorder %v3424_v55, 0.0 }
 0x592   :  { %v8800_v9 = vpop.f32.mrf.mxu2  ;;  %vm3923_vm7 = vcmp.gt.f32.partialorder %v3418_v21, 0.0  ;;  %v4434_v30 = vsel %vm3922_vm8, %v3415_v10, %v4178_v8  ;;  %v3550_v2 = vadd.f32 %v8638_v0, %v7196_v51  ;;  %vm3921_vm9 = vcmp.gt.f32.partialorder %v3412_v27, 0.0 }
 0x593   :  { %6252 = vmatpush.xpose.msk.msrb.mxu2 %vm424_vm0, %v4445_v29  ;;  %9317 = vst [vmem:[#allocation64_spill] sm:$0xff] %v8800_v9  ;;  %v4441_v43 = vsel %vm3929_vm15, %v3436_v48, %v4185_v25  ;;  %vm3920_vm10 = vcmp.gt.f32.partialorder %v3409_v52, 0.0  ;;  %v3544_v8 = vadd.f32 %v8638_v0, %v7154_v46  ;;  %vm5697_vm4 = vcmask 1046534  }
 0x594   :  { %vm3967_vm11 = vcmp.gt.f32.partialorder %v3550_v2, 0.0  ;;  %vm5689_vm6 = vcmask 1040384   ;;  %vm5691_vm8 = vcmask 1042434  }
 0x595   :  { %v8793_v56 = vpop.f32.mrf.mxu1  ;;  %vm3965_vm12 = vcmp.gt.f32.partialorder %v3544_v8, 0.0 }
 0x597   :  { %6253 = vmatpush.xpose.msk.msrb.mxu2 %vm424_vm0, %v4444_v17  ;;  %v4183_v17 = vmul.f32 0.01, %v3430_v7 }
 0x599   :  { %v4439_v48 = vsel %vm3927_vm3, %v3430_v7, %v4183_v17  ;;  %vm5695_vm3 = vcmask 1044484  }
 0x59a   :  { %v8810_v35 = vpop.f32.mrf.mxu2 }
 0x59b   :  { %6254 = vmatpush.xpose.msk.msrb.mxu2 %vm424_vm0, %v4443_v19  ;;  %9318 = vst [vmem:[#allocation65_spill] sm:$0xff] %v8810_v35 }
 0x59d   :  { %v8802_v59 = vpop.f32.mrf.mxu1 }
 0x59f   :  { %6255 = vmatpush.xpose.msk.msrb.mxu2 %vm424_vm0, %v4442_v58  ;;  %v4181_v58 = vmul.f32 0.01, %v3424_v55 }
 0x5a1   :  { %v4437_v7 = vsel %vm3925_vm5, %v3424_v55, %v4181_v58  ;;  %vm5699_vm5 = vcmask 1045508  }
 0x5a2   :  { %v8820_v19 = vpop.f32.mrf.mxu2 }
 0x5a3   :  { %6256 = vmatpush.xpose.msk.msrb.mxu2 %vm424_vm0, %v4441_v43 }
 0x5a5   :  { %v8812_v29 = vpop.f32.mrf.mxu1 }
 0x5a7   :  { %6257 = vmatpush.xpose.msk.msrb.mxu2 %vm424_vm0, %v4440_v63  ;;  %v4179_v63 = vmul.f32 0.01, %v3418_v21 }
 0x5a9   :  { %v4435_v55 = vsel %vm3923_vm7, %v3418_v21, %v4179_v63  ;;  %v4176_v21 = vmul.f32 0.01, %v3409_v52  ;;  %v3547_v63 = vadd.f32 %v8638_v0, %v7180_v15  ;;  %v5416_v15 = vpop.f32.mrf.mxu3 }
 0x5aa   :  { %v8830_v43 = vpop.f32.mrf.mxu2 }
 0x5ab   :  { %6258 = vmatpush.xpose.msk.msrb.mxu2 %vm424_vm0, %v4439_v48  ;;  %v4432_v51 = vsel %vm3920_vm10, %v3409_v52, %v4176_v21  ;;  %vm3966_vm2 = vcmp.gt.f32.partialorder %v3547_v63, 0.0  ;;  %vm5701_vm10 = vcmask 1043456  }
 0x5ad   :  { %v8822_v25 = vpop.f32.mrf.mxu1 }
 0x5af   :  { %6259 = vmatpush.xpose.msk.msrb.mxu2 %vm424_vm0, %v4438_v14  ;;  %v4177_v14 = vmul.f32 0.01, %v3412_v27 }
 0x5b2   :  { %v8840_v48 = vpop.f32.mrf.mxu2 }
 0x5b3   :  { %6260 = vmatpush.xpose.msk.msrb.mxu2 %vm424_vm0, %v4437_v7  ;;  %v4433_v7 = vsel %vm3921_vm9, %v3412_v27, %v4177_v14  ;;  %v3541_v14 = vadd.f32 %v8638_v0, %v7138_v31  ;;  %v3532_v31 = vadd.f32 %v8638_v0, %v7070_v6  ;;  %vm5693_vm9 = vcmask 1041408  }
 0x5b5   :  { %v8832_v17 = vpop.f32.mrf.mxu1  ;;  %v4220_v21 = vmul.f32 0.01, %v3541_v14  ;;  %vm3964_vm13 = vcmp.gt.f32.partialorder %v3541_v14, 0.0  ;;  %vm3961_vm1 = vcmp.gt.f32.partialorder %v3532_v31, 0.0 }
 0x5b7   :  { %6261 = vmatpush.xpose.msk.msrb.mxu2 %vm424_vm0, %v4436_v18  ;;  %v4223_v18 = vmul.f32 0.01, %v3550_v2 }
 0x5b9   :  { %v4479_v27 = vsel %vm3967_vm11, %v3550_v2, %v4223_v18  ;;  %v3538_v2 = vadd.f32 %v8638_v0, %v7112_v49  ;;  %v3529_v49 = vadd.f32 %v8638_v0, %v7056_v40 }
 0x5ba   :  { %v8854_v12 = vpop.f32.mrf.mxu2 }
 0x5bb   :  { %6262 = vmatpush.xpose.msk.msrb.mxu2 %vm424_vm0, %v4435_v55  ;;  %v4222_v55 = vmul.f32 0.01, %v3547_v63  ;;  %vm3963_vm14 = vcmp.gt.f32.partialorder %v3538_v2, 0.0  ;;  %vm3960_vm7 = vcmp.gt.f32.partialorder %v3529_v49, 0.0 }
 0x5bd   :  { %v8842_v58 = vpop.f32.mrf.mxu1 }
 0x5bf   :  { %6263 = vmatpush.xpose.msk.msrb.mxu2 %vm424_vm0, %v4434_v30  ;;  %v4221_v30 = vmul.f32 0.01, %v3544_v8 }
 0x5c1   :  { %v4477_v18 = vsel %vm3965_vm12, %v3544_v8, %v4221_v30  ;;  %v4217_v8 = vmul.f32 0.01, %v3532_v31 }
 0x5c2   :  { %v5396_v52 = vpop.f32.mrf.mxu2 }
 0x5c3   :  { %6264 = vmatpush.xpose.msk.msrb.mxu2 %vm424_vm0, %v4433_v7  ;;  %v4478_v7 = vsel %vm3966_vm2, %v3547_v63, %v4222_v55  ;;  %v3535_v63 = vadd.f32 %v8638_v0, %v7096_v34  ;;  %v4219_v55 = vmul.f32 0.01, %v3538_v2  ;;  %v4473_v50 = vsel %vm3961_vm1, %v3532_v31, %v4217_v8 }
 0x5c5   :  { %v8856_v10 = vpop.f32.mrf.mxu1  ;;  %v4218_v30 = vmul.f32 0.01, %v3535_v63  ;;  %vm3962_vm15 = vcmp.gt.f32.partialorder %v3535_v63, 0.0 }
 0x5c7   :  { %6265 = vmatpush.xpose.msk.msrb.mxu2 %vm424_vm0, %v4432_v51  ;;  %v5456_v51 = vpop.f32.mrf.mxu3  ;;  %v4474_v61 = vsel %vm3962_vm15, %v3535_v63, %v4218_v30 }
 0x5ca   :  { %6266 = vmatmul.msk.f32.vlgmr.msrb.gmra.mxu2 %vm424_vm0, %v8659_v28  ;;  %v4565_v6 = vpop.permute.xlu0 %4564 }
 0x5cb   :  { %6284 = vmatpush.xpose.msk.msra.mxu2 %vm424_vm0, %v4479_v27  ;;  %v4476_v27 = vsel %vm3964_vm13, %v3541_v14, %v4220_v21  ;;  %v3526_v14 = vadd.f32 %v8638_v0, %v7026_v13  ;;  %v8884_v21 = vperm.slane %v4565_v6, 0 }
 0x5cd   :  { %v8867_v46 = vpop.f32.mrf.mxu1  ;;  %v5377_v13 = vadd.f32 %v8849_v44, %v8884_v21  ;;  %v5397_v31 = vadd.f32 %v5396_v52, %v8884_v21  ;;  %v5417_v63 = vadd.f32 %v5416_v15, %v8884_v21  ;;  %vm3959_vm11 = vcmp.gt.f32.partialorder %v3526_v14, 0.0 }
 0x5cf   :  { %6285 = vmatpush.xpose.msk.msra.mxu2 %vm424_vm0, %v4478_v7  ;;  %v5436_v7 = vpop.f32.mrf.mxu2  ;;  %v5496_v34 = vpop.f32.mrf.mxu3  ;;  %v5676_v44 = vrot.slane %v5397_v31, 6 }
 0x5d3   :  { %6286 = vmatpush.xpose.msk.msra.mxu2 %vm424_vm0, %v4477_v18  ;;  %v4475_v18 = vsel %vm3963_vm14, %v3538_v2, %v4219_v55  ;;  %v5437_v2 = vadd.f32 %v5436_v7, %v8884_v21  ;;  %v5457_v55 = vadd.f32 %v5456_v51, %v8884_v21  ;;  %v5357_v51 = vadd.f32 %v8854_v12, %v8884_v21 }
 0x5d4   :  { %v5675_v7 = vrot.slane %v5377_v13, 7  ;;  %v3523_v12 = vadd.f32 %v8638_v0, %v7018_v57  ;;  %v3517_v57 = vadd.f32 %v8638_v0, %v6990_v23 }
 0x5d5   :  { %v8877_v36 = vpop.f32.mrf.mxu1  ;;  %v5679_v30 = vrot.slane %v5457_v55, 3 }
 0x5d6   :  { %v5690_v15 = vsel %vm5689_vm6, %v5357_v51, %v5675_v7  ;;  %vm3958_vm2 = vcmp.gt.f32.partialorder %v3523_v12, 0.0  ;;  %v4212_v51 = vmul.f32 0.01, %v3517_v57  ;;  %vm3956_vm13 = vcmp.gt.f32.partialorder %v3517_v57, 0.0 }
 0x5d7   :  { %6287 = vmatpush.xpose.msk.msra.mxu2 %vm424_vm0, %v4476_v27  ;;  %v4216_v27 = vmul.f32 0.01, %v3529_v49  ;;  %v5476_v9 = vpop.f32.mrf.mxu2 }
 0x5d8   :  { %v5477_v40 = vadd.f32 %v5476_v9, %v8884_v21 }
 0x5d9   :  { %v4472_v55 = vsel %vm3960_vm7, %v3529_v49, %v4216_v27 }
 0x5da   :  { %v5680_v8 = vrot.slane %v5477_v40, 2 }
 0x5db   :  { %6288 = vmatpush.xpose.msk.msra.mxu2 %vm424_vm0, %v4475_v18  ;;  %v5497_v18 = vadd.f32 %v5496_v34, %v8884_v21  ;;  %v5677_v34 = vrot.slane %v5417_v63, 5  ;;  %v3520_v63 = vadd.f32 %v8638_v0, %v7000_v39  ;;  %v3511_v39 = vadd.f32 %v8638_v0, %v6960_v53 }
 0x5dd   :  { %v8891_v35 = vpop.f32.mrf.mxu1  ;;  %v5681_v9 = vrot.slane %v5497_v18, 1  ;;  %v4213_v49 = vmul.f32 0.01, %v3520_v63  ;;  %vm3957_vm12 = vcmp.gt.f32.partialorder %v3520_v63, 0.0  ;;  %vm3954_vm1 = vcmp.gt.f32.partialorder %v3511_v39, 0.0 }
 0x5df   :  { %6289 = vmatpush.xpose.msk.msra.mxu2 %vm424_vm0, %v4474_v61  ;;  %v5678_v61 = vrot.slane %v5437_v2, 4  ;;  %v5698_v52 = vsel %vm5697_vm4, %v5680_v8, %v5681_v9  ;;  %v4215_v2 = vmul.f32 0.01, %v3526_v14  ;;  %v4214_v8 = vmul.f32 0.01, %v3523_v12 }
 0x5e0   :  { %v3514_v9 = vadd.f32 %v8638_v0, %v6970_v5  ;;  %v4469_v7 = vsel %vm3957_vm12, %v3520_v63, %v4213_v49  ;;  %v3508_v5 = vadd.f32 %v8638_v0, %v6940_v37  ;;  %v3646_v37 = vadd.f32 %v8638_v0, %v7764_v42 }
 0x5e1   :  { %v5696_v6 = vsel %vm5695_vm3, %v5678_v61, %v5679_v30  ;;  %v4471_v61 = vsel %vm3959_vm11, %v3526_v14, %v4215_v2  ;;  %v4470_v27 = vsel %vm3958_vm2, %v3523_v12, %v4214_v8  ;;  %v3484_v42 = vadd.f32 %v8638_v0, %v8877_v36 }
 0x5e2   :  { %v5700_v40 = vsel %vm5699_vm5, %v5696_v6, %v5698_v52  ;;  %v4211_v14 = vmul.f32 0.01, %v3514_v9  ;;  %v4468_v6 = vsel %vm3956_vm13, %v3517_v57, %v4212_v51  ;;  %vm3955_vm14 = vcmp.gt.f32.partialorder %v3514_v9, 0.0 }
 0x5e3   :  { %6290 = vmatpush.xpose.msk.msra.mxu2 %vm424_vm0, %v4473_v50  ;;  %v5692_v50 = vsel %vm5691_vm8, %v5676_v44, %v5677_v34  ;;  %vm3953_vm11 = vcmp.gt.f32.partialorder %v3508_v5, 0.0  ;;  %v4255_v57 = vmul.f32 0.01, %v3646_v37  ;;  %vm3999_vm13 = vcmp.gt.f32.partialorder %v3646_v37, 0.0 }
 0x5e4   :  { %v5694_v18 = vsel %vm5693_vm9, %v5690_v15, %v5692_v50  ;;  %v4210_v15 = vmul.f32 0.01, %v3511_v39  ;;  %v4467_v34 = vsel %vm3955_vm14, %v3514_v9, %v4211_v14  ;;  %v4209_v50 = vmul.f32 0.01, %v3508_v5 }
 0x5e5   :  { %v3489_v13 = vpop.f32.mrf.mxu1  ;;  %v5702_v31 = vsel %vm5701_vm10, %v5694_v18, %v5700_v40  ;;  %v3481_v51 = vadd.f32 %v8638_v0, %v8867_v46  ;;  %v4201_v36 = vmul.f32 0.01, %v3484_v42 }
 0x5e6   :  { %5712 = vst [vmem:[#allocation3] sm:$0xff] %v5702_v31  ;;  %v3490_v53 = vadd.f32 %v8638_v0, %v3489_v13  ;;  %v4466_v18 = vsel %vm3954_vm1, %v3511_v39, %v4210_v15  ;;  %v3487_v31 = vadd.f32 %v8638_v0, %v8891_v35  ;;  %vm3945_vm1 = vcmp.gt.f32.partialorder %v3484_v42, 0.0 }
 0x5e7   :  { %6291 = vmatpush.xpose.msk.msra.mxu2 %vm424_vm0, %v4472_v55  ;;  %v3505_v55 = vadd.f32 %v8638_v0, %v6930_v24  ;;  %v4465_v24 = vsel %vm3953_vm11, %v3508_v5, %v4209_v50  ;;  %v4200_v46 = vmul.f32 0.01, %v3481_v51  ;;  %vm3944_vm11 = vcmp.gt.f32.partialorder %v3481_v51, 0.0 }
 0x5e8   :  { %v4203_v13 = vmul.f32 0.01, %v3490_v53  ;;  %vm3947_vm2 = vcmp.gt.f32.partialorder %v3490_v53, 0.0  ;;  %v4202_v49 = vmul.f32 0.01, %v3487_v31  ;;  %vm3946_vm14 = vcmp.gt.f32.partialorder %v3487_v31, 0.0 }
 0x5e9   :  { %v4208_v8 = vmul.f32 0.01, %v3505_v55  ;;  %vm3952_vm12 = vcmp.gt.f32.partialorder %v3505_v55, 0.0  ;;  %v4456_v15 = vsel %vm3944_vm11, %v3481_v51, %v4200_v46 }
 0x5ea   :  { %v4459_v35 = vsel %vm3947_vm2, %v3490_v53, %v4203_v13 }
 0x5eb   :  { %6292 = vmatpush.xpose.msk.msra.mxu2 %vm424_vm0, %v4471_v61  ;;  %v3643_v61 = vadd.f32 %v8638_v0, %v7748_v20  ;;  %v4511_v20 = vsel %vm3999_vm13, %v3646_v37, %v4255_v57 }
 0x5ed   :  { %v3492_v30 = vpop.f32.mrf.mxu1  ;;  %v4254_v9 = vmul.f32 0.01, %v3643_v61 }
 0x5ee   :  { %v3493_v44 = vadd.f32 %v8638_v0, %v3492_v30  ;;  %v3640_v30 = vadd.f32 %v8638_v0, %v7722_v26  ;;  %v3637_v26 = vadd.f32 %v8638_v0, %v7706_v45  ;;  %v3475_v45 = vadd.f32 %v8638_v0, %v8842_v58 }
 0x5ef   :  { %6293 = vmatpush.xpose.msk.msra.mxu2 %vm424_vm0, %v4470_v27  ;;  %v4464_v27 = vsel %vm3952_vm12, %v3505_v55, %v4208_v8  ;;  %v3628_v58 = vadd.f32 %v8638_v0, %v7638_v54  ;;  %v8982_v54 = vld [vmem:[%s9255_s4] ss:$0 sm:$0xff] }
 0x5f0   :  { %v4204_v12 = vmul.f32 0.01, %v3493_v44  ;;  %vm3948_vm7 = vcmp.gt.f32.partialorder %v3493_v44, 0.0  ;;  %v4253_v39 = vmul.f32 0.01, %v3640_v30  ;;  %vm3996_vm2 = vcmp.gt.f32.partialorder %v3637_v26, 0.0 }
 0x5f1   :  { %v4198_v53 = vmul.f32 0.01, %v3475_v45  ;;  %v4249_v37 = vmul.f32 0.01, %v3628_v58 }
 0x5f2   :  { %v4460_v63 = vsel %vm3948_vm7, %v3493_v44, %v4204_v12  ;;  %vm3997_vm7 = vcmp.gt.f32.partialorder %v3640_v30, 0.0  ;;  %v3634_v44 = vadd.f32 %v8638_v0, %v7680_v22  ;;  %v3472_v22 = vadd.f32 %v8638_v0, %v8832_v17 }
 0x5f3   :  { %6294 = vmatpush.xpose.msk.msra.mxu2 %vm424_vm0, %v4469_v7  ;;  %v4458_v7 = vsel %vm3946_vm14, %v3487_v31, %v4202_v49  ;;  %vm3942_vm14 = vcmp.gt.f32.partialorder %v3475_v45, 0.0  ;;  %v3625_v17 = vadd.f32 %v8638_v0, %v7624_v38  ;;  %v3622_v38 = vadd.f32 %v8982_v54, %v7604_v60 }
 0x5f4   :  { %vm3995_vm13 = vcmp.gt.f32.partialorder %v3634_v44, 0.0  ;;  %v4197_v50 = vmul.f32 0.01, %v3472_v22  ;;  %v3460_v60 = vadd.f32 %v8982_v54, %v8793_v56 }
 0x5f5   :  { %v3495_v23 = vpop.f32.mrf.mxu1  ;;  %v4247_v49 = vmul.f32 0.01, %v3622_v38 }
 0x5f6   :  { %v3496_v52 = vadd.f32 %v8638_v0, %v3495_v23  ;;  %v4457_v23 = vsel %vm3945_vm1, %v3484_v42, %v4201_v36  ;;  %vm3941_vm1 = vcmp.gt.f32.partialorder %v3472_v22, 0.0  ;;  %v3457_v36 = vadd.f32 %v8982_v54, %v8785_v47 }
 0x5f7   :  { %6295 = vmatpush.xpose.msk.msra.mxu2 %vm424_vm0, %v4468_v6  ;;  %v3478_v6 = vadd.f32 %v8638_v0, %v8856_v10  ;;  %v3631_v10 = vadd.f32 %v8638_v0, %v7664_v1  ;;  %v3469_v1 = vadd.f32 %v8638_v0, %v8822_v25  ;;  %v3466_v25 = vadd.f32 %v8982_v54, %v8812_v29  ;;  %v9319_v29 = vld [vmem:[#allocation28_spill] sm:$0xff] }
 0x5f8   :  { %vm3949_vm15 = vcmp.gt.f32.partialorder %v3496_v52, 0.0  ;;  %v4205_v40 = vmul.f32 0.01, %v3496_v52  ;;  %v4248_v0 = vmul.f32 0.01, %v3625_v17  ;;  %v3619_v42 = vadd.f32 %v8982_v54, %v9319_v29  ;;  %v9330_v29 = vld [vmem:[#allocation22_spill] sm:$0xff] }
 0x5f9   :  { %v4199_v5 = vmul.f32 0.01, %v3478_v6  ;;  %vm3943_vm12 = vcmp.gt.f32.partialorder %v3478_v6, 0.0  ;;  %v4196_v13 = vmul.f32 0.01, %v3469_v1  ;;  %vm3940_vm11 = vcmp.gt.f32.partialorder %v3469_v1, 0.0 }
 0x5fa   :  { %v4461_v2 = vsel %vm3949_vm15, %v3496_v52, %v4205_v40  ;;  %vm3998_vm15 = vcmp.gt.f32.partialorder %v3643_v61, 0.0  ;;  %v4509_v52 = vsel %vm3997_vm7, %v3640_v30, %v4253_v39  ;;  %vm3993_vm7 = vcmp.gt.f32.partialorder %v3628_v58, 0.0  ;;  %v9321_v39 = vld [vmem:[#allocation21_spill] sm:$0xff] }
 0x5fb   :  { %6296 = vmatpush.xpose.msk.msra.mxu2 %vm424_vm0, %v4467_v34  ;;  %6269 = vmatpush.xpose.msk.msrb.mxu3 %vm424_vm0, %v4461_v2  ;;  %v4510_v14 = vsel %vm3998_vm15, %v3643_v61, %v4254_v9  ;;  %v4251_v34 = vmul.f32 0.01, %v3634_v44  ;;  %v4455_v12 = vsel %vm3943_vm12, %v3478_v6, %v4199_v5  ;;  %v4250_v2 = vmul.f32 0.01, %v3631_v10  ;;  %v9324_v5 = vld [vmem:[#allocation25_spill] sm:$0xff] }
 0x5fc   :  { %vm3994_vm15 = vcmp.gt.f32.partialorder %v3631_v10, 0.0  ;;  %v4505_v8 = vsel %vm3993_vm7, %v3628_v58, %v4249_v37  ;;  %v4195_v61 = vmul.f32 0.01, %v3466_v25  ;;  %v4452_v57 = vsel %vm3940_vm11, %v3469_v1, %v4196_v13  ;;  %v9328_v13 = vld [vmem:[#allocation23_spill] sm:$0xff] }
 0x5fd   :  { %v4507_v55 = vsel %vm3995_vm13, %v3634_v44, %v4251_v34  ;;  %v4506_v31 = vsel %vm3994_vm15, %v3631_v10, %v4250_v2  ;;  %vm3939_vm12 = vcmp.gt.f32.partialorder %v3466_v25, 0.0  ;;  %vm3991_vm13 = vcmp.gt.f32.partialorder %v3622_v38, 0.0  ;;  %v9326_v2 = vld [vmem:[#allocation24_spill] sm:$0xff] }
 0x5fe   :  { %v4451_v30 = vsel %vm3939_vm12, %v3466_v25, %v4195_v61  ;;  %v4503_v51 = vsel %vm3991_vm13, %v3622_v38, %v4247_v49  ;;  %vm3990_vm15 = vcmp.gt.f32.partialorder %v3619_v42, 0.0  ;;  %v3598_v56 = vadd.f32 %v8982_v54, %v9321_v39 }
 0x5ff   :  { %6297 = vmatpush.xpose.msk.msra.mxu2 %vm424_vm0, %v4466_v18  ;;  %6270 = vmatpush.xpose.msk.msrb.mxu3 %vm424_vm0, %v4460_v63  ;;  %v4454_v18 = vsel %vm3942_vm14, %v3475_v45, %v4198_v53  ;;  %v4453_v63 = vsel %vm3941_vm1, %v3472_v22, %v4197_v50  ;;  %vm3937_vm1 = vcmp.gt.f32.partialorder %v3460_v60, 0.0  ;;  %v4192_v44 = vmul.f32 0.01, %v3457_v36  ;;  %v9325_v22 = vld [vmem:[#allocation19_spill] sm:$0xff] }
 0x600   :  { %v4239_v45 = vmul.f32 0.01, %v3598_v56  ;;  %vm3936_vm11 = vcmp.gt.f32.partialorder %v3457_v36, 0.0  ;;  %v3592_v53 = vadd.f32 %v8982_v54, %v9325_v22 }
 0x603   :  { %6298 = vmatpush.xpose.msk.msra.mxu2 %vm424_vm0, %v4465_v24  ;;  %6271 = vmatpush.xpose.msk.msrb.mxu3 %vm424_vm0, %v4459_v35  ;;  %v3463_v24 = vadd.f32 %v8982_v54, %v8802_v59  ;;  %v9320_v59 = vld [vmem:[#allocation27_spill] sm:$0xff] }
 0x604   :  { %v3616_v9 = vadd.f32 %v8982_v54, %v9320_v59 }
 0x605   :  { %vm3938_vm14 = vcmp.gt.f32.partialorder %v3463_v24, 0.0 }
 0x606   :  { %v4245_v46 = vmul.f32 0.01, %v3616_v9  ;;  %vm3989_vm7 = vcmp.gt.f32.partialorder %v3616_v9, 0.0 }
 0x607   :  { %6299 = vmatpush.xpose.msk.msra.mxu2 %vm424_vm0, %v4464_v27  ;;  %6272 = vmatpush.xpose.msk.msrb.mxu3 %vm424_vm0, %v4458_v7  ;;  %v4194_v27 = vmul.f32 0.01, %v3463_v24  ;;  %v4193_v7 = vmul.f32 0.01, %v3460_v60 }
 0x608   :  { %v4501_v34 = vsel %vm3989_vm7, %v3616_v9, %v4245_v46 }
 0x60a   :  { %6300 = vmatmul.msk.f32.vlgmr.msra.gmra.mxu2 %vm424_vm0, %v8659_v28  ;;  %v4252_v28 = vmul.f32 0.01, %v3637_v26 }
 0x60b   :  { %6318 = vmatpush.xpose.msk.msrb.mxu2 %vm424_vm0, %v4511_v20  ;;  %6273 = vmatpush.xpose.msk.msrb.mxu3 %vm424_vm0, %v4457_v23  ;;  %v4246_v20 = vmul.f32 0.01, %v3619_v42 }
 0x60c   :  { %v4508_v40 = vsel %vm3996_vm2, %v3637_v26, %v4252_v28  ;;  %vm3992_vm2 = vcmp.gt.f32.partialorder %v3625_v17, 0.0  ;;  %v4450_v26 = vsel %vm3938_vm14, %v3463_v24, %v4194_v27  ;;  %v4449_v28 = vsel %vm3937_vm1, %v3460_v60, %v4193_v7  ;;  %v9331_v27 = vld [vmem:[#allocation16_spill] sm:$0xff] }
 0x60d   :  { %v4504_v35 = vsel %vm3992_vm2, %v3625_v17, %v4248_v0  ;;  %v4502_v23 = vsel %vm3990_vm15, %v3619_v42, %v4246_v20  ;;  %vm3983_vm2 = vcmp.gt.f32.partialorder %v3598_v56, 0.0  ;;  %v9327_v17 = vld [vmem:[#allocation18_spill] sm:$0xff]  ;;  %vm3981_vm15 = vcmp.gt.f32.partialorder %v3592_v53, 0.0 }
 0x60e   :  { %v4495_v58 = vsel %vm3983_vm2, %v3598_v56, %v4239_v45  ;;  %v3589_v37 = vadd.f32 %v8982_v54, %v9327_v17  ;;  %v3601_v42 = vadd.f32 %v8982_v54, %v9330_v29  ;;  %v3742_v60 = vadd.f32 %v8982_v54, %v8723_v33  ;;  %v9332_v33 = vld [vmem:[#allocation15_spill] sm:$0xff] }
 0x60f   :  { %6319 = vmatpush.xpose.msk.msrb.mxu2 %vm424_vm0, %v4510_v14  ;;  %6274 = vmatpush.xpose.msk.msrb.mxu3 %vm424_vm0, %v4456_v15  ;;  %v9322_v14 = vld [vmem:[#allocation26_spill] sm:$0xff]  ;;  %v3610_v15 = vadd.f32 %v8982_v54, %v9324_v5  ;;  %v9334_v5 = vld [vmem:[#allocation13_spill] sm:$0xff] }
 0x610   :  { %v3613_v6 = vadd.f32 %v8982_v54, %v9322_v14  ;;  %v4236_v61 = vmul.f32 0.01, %v3589_v37  ;;  %vm3980_vm7 = vcmp.gt.f32.partialorder %v3589_v37, 0.0  ;;  %v4240_v20 = vmul.f32 0.01, %v3601_v42 }
 0x611   :  { %v4243_v1 = vmul.f32 0.01, %v3610_v15  ;;  %vm3987_vm14 = vcmp.gt.f32.partialorder %v3610_v15, 0.0  ;;  %v4287_v7 = vmul.f32 0.01, %v3742_v60 }
 0x612   :  { %v4244_v10 = vmul.f32 0.01, %v3613_v6  ;;  %vm3988_vm12 = vcmp.gt.f32.partialorder %v3613_v6, 0.0  ;;  %v4492_v9 = vsel %vm3980_vm7, %v3589_v37, %v4236_v61 }
 0x613   :  { %6320 = vmatpush.xpose.msk.msrb.mxu2 %vm424_vm0, %v4509_v52  ;;  %6275 = vmatpush.xpose.msk.msrb.mxu3 %vm424_vm0, %v4455_v12  ;;  %v9323_v52 = vld [vmem:[#allocation20_spill] sm:$0xff]  ;;  %v4499_v0 = vsel %vm3987_vm14, %v3610_v15, %v4243_v1  ;;  %v3574_v15 = vadd.f32 %v8982_v54, %v9334_v5  ;;  %v9346_v5 = vld [vmem:[#allocation49_spill] sm:$0xff] }
 0x614   :  { %v3595_v47 = vadd.f32 %v8982_v54, %v9323_v52  ;;  %v4500_v50 = vsel %vm3988_vm12, %v3613_v6, %v4244_v10  ;;  %vm3984_vm12 = vcmp.gt.f32.partialorder %v3601_v42, 0.0  ;;  %v3736_v6 = vadd.f32 %v8982_v54, %v8699_v62 }
 0x615   :  { %v4496_v14 = vsel %vm3984_vm12, %v3601_v42, %v4240_v20  ;;  %v3733_v62 = vadd.f32 %v8982_v54, %v8687_v32  ;;  %v9335_v32 = vld [vmem:[#allocation12_spill] sm:$0xff]  ;;  %vm3975_vm12 = vcmp.gt.f32.partialorder %v3574_v15, 0.0 }
 0x616   :  { %v4238_v12 = vmul.f32 0.01, %v3595_v47  ;;  %vm3982_vm13 = vcmp.gt.f32.partialorder %v3595_v47, 0.0  ;;  %vm4029_vm7 = vcmp.gt.f32.partialorder %v3736_v6, 0.0 }
 0x617   :  { %6321 = vmatpush.xpose.msk.msrb.mxu2 %vm424_vm0, %v4508_v40  ;;  %6276 = vmatpush.xpose.msk.msrb.mxu3 %vm424_vm0, %v4454_v18  ;;  %v4448_v40 = vsel %vm3936_vm11, %v3457_v36, %v4192_v44  ;;  %v9026_v18 = vld [vmem:[%s9256_s5] sm:$0x1]  ;;  %v3739_v36 = vadd.f32 %v8982_v54, %v8711_v3  ;;  %v4284_v22 = vmul.f32 0.01, %v3733_v62  ;;  %s6440_s5 = smov [#allocation3]  }
 0x618   :  { %v4494_v25 = vsel %vm3982_vm13, %v3595_v47, %v4238_v12  ;;  %vm4031_vm13 = vcmp.gt.f32.partialorder %v3742_v60, 0.0  ;;  %v4285_v47 = vmul.f32 0.01, %v3736_v6  ;;  %v3571_v12 = vadd.f32 %v8982_v54, %v9335_v32  ;;  %s5719_s20 = sshll.u32 %s6440_s5, 4  ;;  %s5720_s20 = int_to_ptr.vmem [resolvable:$true] %s5719_s20 }
 0x619   :  { %v4286_v46 = vmul.f32 0.01, %v3739_v36  ;;  %v4543_v3 = vsel %vm4031_vm13, %v3742_v60, %v4287_v7 }
 0x61a   :  { %v4230_v37 = vmul.f32 0.01, %v3571_v12 }
 0x61b   :  { %6322 = vmatpush.xpose.msk.msrb.mxu2 %vm424_vm0, %v4507_v55  ;;  %6277 = vmatpush.xpose.msk.msrb.mxu3 %vm424_vm0, %v4453_v63  ;;  %v3607_v55 = vadd.f32 %v8982_v54, %v9326_v2  ;;  %v3604_v63 = vadd.f32 %v8982_v54, %v9328_v13 }
 0x61d   :  { %v4242_v38 = vmul.f32 0.01, %v3607_v55  ;;  %vm3986_vm1 = vcmp.gt.f32.partialorder %v3607_v55, 0.0  ;;  %v4241_v49 = vmul.f32 0.01, %v3604_v63  ;;  %vm3985_vm11 = vcmp.gt.f32.partialorder %v3604_v63, 0.0 }
 0x61f   :  { %6323 = vmatpush.xpose.msk.msrb.mxu2 %vm424_vm0, %v4506_v31  ;;  %6278 = vmatpush.xpose.msk.msrb.mxu3 %vm424_vm0, %v4452_v57  ;;  %v4237_v31 = vmul.f32 0.01, %v3592_v53 }
 0x621   :  { %v4493_v57 = vsel %vm3981_vm15, %v3592_v53, %v4237_v31  ;;  %vm4030_vm15 = vcmp.gt.f32.partialorder %v3739_v36, 0.0  ;;  %v4541_v53 = vsel %vm4029_vm7, %v3736_v6, %v4285_v47  ;;  %v9343_v6 = vld [vmem:[#allocation50_spill] sm:$0xff]  ;;  %v9345_v47 = vld [vmem:[#allocation44_spill] sm:$0xff] }
 0x622   :  { %v4542_v45 = vsel %vm4030_vm15, %v3739_v36, %v4286_v46  ;;  %v3712_v46 = vadd.f32 %v8982_v54, %v9343_v6 }
 0x623   :  { %6324 = vmatpush.xpose.msk.msrb.mxu2 %vm424_vm0, %v4505_v8  ;;  %6279 = vmatpush.xpose.msk.msrb.mxu3 %vm424_vm0, %v4451_v30  ;;  %v9329_v8 = vld [vmem:[#allocation17_spill] sm:$0xff]  ;;  %v3583_v30 = vadd.f32 %v8982_v54, %v9331_v27 }
 0x624   :  { %v3586_v24 = vadd.f32 %v8982_v54, %v9329_v8 }
 0x625   :  { %v4234_v39 = vmul.f32 0.01, %v3583_v30  ;;  %vm3978_vm14 = vcmp.gt.f32.partialorder %v3583_v30, 0.0 }
 0x626   :  { %v4235_v59 = vmul.f32 0.01, %v3586_v24  ;;  %vm3979_vm2 = vcmp.gt.f32.partialorder %v3586_v24, 0.0 }
 0x627   :  { %6325 = vmatpush.xpose.msk.msrb.mxu2 %vm424_vm0, %v4504_v35  ;;  %6280 = vmatpush.xpose.msk.msrb.mxu3 %vm424_vm0, %v4450_v26  ;;  %v4498_v35 = vsel %vm3986_vm1, %v3607_v55, %v4242_v38  ;;  %v3580_v26 = vadd.f32 %v8982_v54, %v9332_v33  ;;  %v4490_v52 = vsel %vm3978_vm14, %v3583_v30, %v4234_v39  ;;  %vm3974_vm14 = vcmp.gt.f32.partialorder %v3571_v12, 0.0 }
 0x628   :  { %v4491_v56 = vsel %vm3979_vm2, %v3586_v24, %v4235_v59  ;;  %vm4028_vm2 = vcmp.gt.f32.partialorder %v3733_v62, 0.0  ;;  %v3727_v55 = vadd.f32 %v8982_v54, %v8654_v4  ;;  %v9337_v4 = vld [vmem:[#allocation10_spill] sm:$0xff]  ;;  %v4486_v8 = vsel %vm3974_vm14, %v3571_v12, %v4230_v37 }
 0x629   :  { %vm3977_vm1 = vcmp.gt.f32.partialorder %v3580_v26, 0.0  ;;  %v3565_v38 = vadd.f32 %v8982_v54, %v9337_v4  ;;  %v3721_v24 = vadd.f32 %v8982_v54, %v8179_v41  ;;  %v9340_v41 = vld [vmem:[#allocation8_spill] sm:$0xff] }
 0x62a   :  { %v4282_v13 = vmul.f32 0.01, %v3727_v55  ;;  %vm4026_vm15 = vcmp.gt.f32.partialorder %v3727_v55, 0.0  ;;  %v3559_v59 = vadd.f32 %v8982_v54, %v9340_v41 }
 0x62b   :  { %6326 = vmatpush.xpose.msk.msrb.mxu2 %vm424_vm0, %v4503_v51  ;;  %6281 = vmatpush.xpose.msk.msrb.mxu3 %vm424_vm0, %v4449_v28  ;;  %v4497_v51 = vsel %vm3985_vm11, %v3604_v63, %v4241_v49  ;;  %v4233_v28 = vmul.f32 0.01, %v3580_v26  ;;  %v4228_v42 = vmul.f32 0.01, %v3565_v38  ;;  %v4280_v27 = vmul.f32 0.01, %v3721_v24 }
 0x62c   :  { %vm3970_vm14 = vcmp.gt.f32.partialorder %v3559_v59, 0.0 }
 0x62f   :  { %6327 = vmatpush.xpose.msk.msrb.mxu2 %vm424_vm0, %v4502_v23  ;;  %6282 = vmatpush.xpose.msk.msrb.mxu3 %vm424_vm0, %v4448_v40  ;;  %v9333_v23 = vld [vmem:[#allocation14_spill] sm:$0xff]  ;;  %v3730_v40 = vadd.f32 %v8982_v54, %v8673_v11  ;;  %v9336_v11 = vld [vmem:[#allocation11_spill] sm:$0xff] }
 0x630   :  { %v3577_v44 = vadd.f32 %v8982_v54, %v9333_v23  ;;  %v3568_v17 = vadd.f32 %v8982_v54, %v9336_v11  ;;  %v9349_v11 = vld [vmem:[#allocation42_spill] sm:$0xff] }
 0x631   :  { %v4283_v1 = vmul.f32 0.01, %v3730_v40  ;;  %vm4027_vm13 = vcmp.gt.f32.partialorder %v3730_v40, 0.0 }
 0x632   :  { %6283 = vmatmul.msk.f32.vlgmr.msrb.gmra.mxu3 %vm424_vm0, %v9026_v18  ;;  %v4232_v10 = vmul.f32 0.01, %v3577_v44  ;;  %vm3976_vm11 = vcmp.gt.f32.partialorder %v3577_v44, 0.0 }
 0x633   :  { %6328 = vmatpush.xpose.msk.msrb.mxu2 %vm424_vm0, %v4501_v34  ;;  %6301 = vmatpush.xpose.msk.msra.mxu3 %vm424_vm0, %v4495_v58  ;;  %v4489_v34 = vsel %vm3977_vm1, %v3580_v26, %v4233_v28  ;;  %v4231_v58 = vmul.f32 0.01, %v3574_v15  ;;  %v4539_v63 = vsel %vm4027_vm13, %v3730_v40, %v4283_v1  ;;  %vm3973_vm1 = vcmp.gt.f32.partialorder %v3568_v17, 0.0  ;;  %v9342_v26 = vld [vmem:[#allocation7_spill] sm:$0xff] }
 0x634   :  { %v4488_v2 = vsel %vm3976_vm11, %v3577_v44, %v4232_v10  ;;  %vm3972_vm11 = vcmp.gt.f32.partialorder %v3565_v38, 0.0  ;;  %v3556_v39 = vadd.f32 %v8982_v54, %v9342_v26  ;;  %v9344_v44 = vld [vmem:[#allocation6_spill] sm:$0xff]  ;;  %v4277_v10 = vmul.f32 0.01, %v3712_v46 }
 0x635   :  { %v4487_v31 = vsel %vm3975_vm12, %v3574_v15, %v4231_v58  ;;  %v4484_v20 = vsel %vm3972_vm11, %v3565_v38, %v4228_v42  ;;  %v3553_v28 = vadd.f32 %v8982_v54, %v9344_v44  ;;  %v3709_v15 = vadd.f32 %v8982_v54, %v9346_v5  ;;  %v9348_v58 = vld [vmem:[#allocation48_spill] sm:$0xff]  ;;  %v9351_v38 = vld [vmem:[#allocation41_spill] sm:$0xff]  ;;  %v9356_v26 = vld [vmem:[#allocation38_spill] sm:$0xff] }
 0x636   :  { %v9353_v42 = vld [vmem:[#allocation40_spill] sm:$0xff] }
 0x637   :  { %6329 = vmatpush.xpose.msk.msrb.mxu2 %vm424_vm0, %v4500_v50  ;;  %6302 = vmatpush.xpose.msk.msra.mxu3 %vm424_vm0, %v4494_v25  ;;  %v4540_v50 = vsel %vm4028_vm2, %v3733_v62, %v4284_v22  ;;  %v3724_v25 = vadd.f32 %v8982_v54, %v8465_v16  ;;  %v9338_v16 = vld [vmem:[#allocation9_spill] sm:$0xff]  ;;  %vm4024_vm2 = vcmp.gt.f32.partialorder %v3721_v24, 0.0  ;;  %v4224_v40 = vmul.f32 0.01, %v3553_v28 }
 0x638   :  { %v3562_v29 = vadd.f32 %v8982_v54, %v9338_v16  ;;  %v4536_v33 = vsel %vm4024_vm2, %v3721_v24, %v4280_v27  ;;  %vm3968_vm11 = vcmp.gt.f32.partialorder %v3553_v28, 0.0  ;;  %v9354_v27 = vld [vmem:[#allocation45_spill] sm:$0xff] }
 0x639   :  { %v4281_v61 = vmul.f32 0.01, %v3724_v25  ;;  %vm4025_vm7 = vcmp.gt.f32.partialorder %v3724_v25, 0.0 }
 0x63a   :  { %vm3971_vm12 = vcmp.gt.f32.partialorder %v3562_v29, 0.0 }
 0x63b   :  { %6330 = vmatpush.xpose.msk.msrb.mxu2 %vm424_vm0, %v4499_v0  ;;  %6303 = vmatpush.xpose.msk.msra.mxu3 %vm424_vm0, %v4493_v57  ;;  %v4229_v0 = vmul.f32 0.01, %v3568_v17  ;;  %v4538_v57 = vsel %vm4026_vm15, %v3727_v55, %v4282_v13  ;;  %v4537_v30 = vsel %vm4025_vm7, %v3724_v25, %v4281_v61  ;;  %vm4021_vm7 = vcmp.gt.f32.partialorder %v3712_v46, 0.0  ;;  %v9350_v25 = vld [vmem:[#allocation47_spill] sm:$0xff]  ;;  %v9352_v61 = vld [vmem:[#allocation46_spill] sm:$0xff] }
 0x63c   :  { %v4276_v55 = vmul.f32 0.01, %v3709_v15  ;;  %v4533_v1 = vsel %vm4021_vm7, %v3712_v46, %v4277_v10  ;;  %v3703_v13 = vadd.f32 %v8982_v54, %v9350_v25  ;;  %v9357_v46 = vld [vmem:[#allocation37_spill] sm:$0xff] }
 0x63d   :  { %v4485_v49 = vsel %vm3973_vm1, %v3568_v17, %v4229_v0  ;;  %vm3969_vm1 = vcmp.gt.f32.partialorder %v3556_v39, 0.0  ;;  %v3688_v17 = vadd.f32 %v8982_v54, %v9349_v11  ;;  %v3685_v0 = vadd.f32 %v8982_v54, %v9351_v38 }
 0x63e   :  { %v4274_v16 = vmul.f32 0.01, %v3703_v13 }
 0x63f   :  { %6331 = vmatpush.xpose.msk.msrb.mxu2 %vm424_vm0, %v4498_v35  ;;  %6304 = vmatpush.xpose.msk.msra.mxu3 %vm424_vm0, %v4492_v9  ;;  %v9339_v35 = vld [vmem:[#allocation52_spill] sm:$0xff]  ;;  %v4227_v9 = vmul.f32 0.01, %v3562_v29  ;;  %vm4012_vm7 = vcmp.gt.f32.partialorder %v3685_v0, 0.0 }
 0x640   :  { %v3718_v60 = vadd.f32 %v8982_v54, %v9339_v35  ;;  %v4268_v35 = vmul.f32 0.01, %v3685_v0 }
 0x642   :  { %v4279_v7 = vmul.f32 0.01, %v3718_v60  ;;  %vm4023_vm13 = vcmp.gt.f32.partialorder %v3718_v60, 0.0 }
 0x643   :  { %6332 = vmatpush.xpose.msk.msrb.mxu2 %vm424_vm0, %v4497_v51  ;;  %6305 = vmatpush.xpose.msk.msra.mxu3 %vm424_vm0, %v4491_v56  ;;  %v9341_v51 = vld [vmem:[#allocation51_spill] sm:$0xff]  ;;  %v4226_v56 = vmul.f32 0.01, %v3559_v59 }
 0x644   :  { %v3715_v36 = vadd.f32 %v8982_v54, %v9341_v51  ;;  %v4535_v23 = vsel %vm4023_vm13, %v3718_v60, %v4279_v7 }
 0x645   :  { %v4482_v62 = vsel %vm3970_vm14, %v3559_v59, %v4226_v56 }
 0x646   :  { %vm4022_vm15 = vcmp.gt.f32.partialorder %v3715_v36, 0.0 }
 0x647   :  { %6333 = vmatpush.xpose.msk.msrb.mxu2 %vm424_vm0, %v4496_v14  ;;  %6306 = vmatpush.xpose.msk.msra.mxu3 %vm424_vm0, %v4490_v52  ;;  %v4483_v14 = vsel %vm3971_vm12, %v3562_v29, %v4227_v9  ;;  %v4225_v52 = vmul.f32 0.01, %v3556_v39  ;;  %vm4020_vm12 = vcmp.gt.f32.partialorder %v3709_v15, 0.0  ;;  %v9355_v9 = vld [vmem:[#allocation39_spill] sm:$0xff] }
 0x648   :  { %v4532_v4 = vsel %vm4020_vm12, %v3709_v15, %v4276_v55  ;;  %v9362_v55 = vld [vmem:[#allocation32_spill] sm:$0xff] }
 0x649   :  { %v4481_v22 = vsel %vm3969_vm1, %v3556_v39, %v4225_v52  ;;  %vm4018_vm1 = vcmp.gt.f32.partialorder %v3703_v13, 0.0  ;;  %v3676_v39 = vadd.f32 %v8982_v54, %v9356_v26 }
 0x64a   :  { %6334 = vmatmul.msk.f32.vlgmr.msrb.gmra.mxu2 %vm424_vm0, %v9026_v18  ;;  %v4530_v59 = vsel %vm4018_vm1, %v3703_v13, %v4274_v16  ;;  %v9364_v13 = vld [vmem:[#allocation30_spill] sm:$0xff] }
 0x64b   :  { %6352 = vmatpush.xpose.msk.msra.mxu2 %vm424_vm0, %v4543_v3  ;;  %6307 = vmatpush.xpose.msk.msra.mxu3 %vm424_vm0, %v4489_v34  ;;  %v4278_v3 = vmul.f32 0.01, %v3715_v36 }
 0x64d   :  { %v4534_v34 = vsel %vm4022_vm15, %v3715_v36, %v4278_v3  ;;  %vm4013_vm15 = vcmp.gt.f32.partialorder %v3688_v17, 0.0  ;;  %v4524_v36 = vsel %vm4012_vm7, %v3685_v0, %v4268_v35  ;;  %v3673_v3 = vadd.f32 %v8982_v54, %v9357_v46  ;;  %v9365_v0 = vld [vmem:[#allocation29_spill] sm:$0xff] }
 0x64e   :  { %v9370_v46 = vld [vmem:[#allocation61_spill] sm:$0xff] }
 0x64f   :  { %6353 = vmatpush.xpose.msk.msra.mxu2 %vm424_vm0, %v4542_v45  ;;  %6308 = vmatpush.xpose.msk.msra.mxu3 %vm424_vm0, %v4488_v2  ;;  %v3694_v45 = vadd.f32 %v8982_v54, %v9345_v47  ;;  %v3706_v2 = vadd.f32 %v8982_v54, %v9348_v58 }
 0x651   :  { %v4271_v12 = vmul.f32 0.01, %v3694_v45  ;;  %vm4015_vm2 = vcmp.gt.f32.partialorder %v3694_v45, 0.0  ;;  %vm4019_vm14 = vcmp.gt.f32.partialorder %v3706_v2, 0.0 }
 0x653   :  { %6354 = vmatpush.xpose.msk.msra.mxu2 %vm424_vm0, %v4541_v53  ;;  %6309 = vmatpush.xpose.msk.msra.mxu3 %vm424_vm0, %v4487_v31  ;;  %v9347_v53 = vld [vmem:[#allocation43_spill] sm:$0xff]  ;;  %v4527_v31 = vsel %vm4015_vm2, %v3694_v45, %v4271_v12 }
 0x654   :  { %v3691_v32 = vadd.f32 %v8982_v54, %v9347_v53  ;;  %v9359_v45 = vld [vmem:[#allocation35_spill] sm:$0xff] }
 0x655   :  { %v3667_v5 = vadd.f32 %v8982_v54, %v9359_v45  ;;  %v9372_v45 = vld [vmem:[#allocation59_spill] sm:$0xff] }
 0x656   :  { %v4270_v37 = vmul.f32 0.01, %v3691_v32  ;;  %vm4014_vm13 = vcmp.gt.f32.partialorder %v3691_v32, 0.0 }
 0x657   :  { %6355 = vmatpush.xpose.msk.msra.mxu2 %vm424_vm0, %v4540_v50  ;;  %6310 = vmatpush.xpose.msk.msra.mxu3 %vm424_vm0, %v4486_v8  ;;  %v4480_v50 = vsel %vm3968_vm11, %v3553_v28, %v4224_v40  ;;  %v4269_v8 = vmul.f32 0.01, %v3688_v17  ;;  %v9358_v28 = vld [vmem:[#allocation36_spill] sm:$0xff]  ;;  %vm4006_vm7 = vcmp.gt.f32.partialorder %v3667_v5, 0.0 }
 0x658   :  { %v4526_v24 = vsel %vm4014_vm13, %v3691_v32, %v4270_v37  ;;  %v3670_v52 = vadd.f32 %v8982_v54, %v9358_v28  ;;  %v9361_v32 = vld [vmem:[#allocation33_spill] sm:$0xff]  ;;  %v9371_v28 = vld [vmem:[#allocation60_spill] sm:$0xff] }
 0x659   :  { %v4525_v60 = vsel %vm4013_vm15, %v3688_v17, %v4269_v8  ;;  %vm4008_vm15 = vcmp.gt.f32.partialorder %v3673_v3, 0.0  ;;  %v3661_v12 = vadd.f32 %v8982_v54, %v9361_v32  ;;  %v9363_v17 = vld [vmem:[#allocation31_spill] sm:$0xff]  ;;  %v3649_v8 = vadd.f32 %v8982_v54, %v9365_v0  ;;  %v9374_v32 = vld [vmem:[#allocation57_spill] sm:$0xff] }
 0x65a   :  { %v4263_v15 = vmul.f32 0.01, %v3670_v52  ;;  %vm4007_vm1 = vcmp.gt.f32.partialorder %v3670_v52, 0.0  ;;  %v3655_v37 = vadd.f32 %v8982_v54, %v9363_v17  ;;  %v9376_v17 = vld [vmem:[#allocation55_spill] sm:$0xff]  ;;  %v9378_v0 = vld [vmem:[#allocation53_spill] sm:$0xff] }
 0x65b   :  { %6356 = vmatpush.xpose.msk.msra.mxu2 %vm424_vm0, %v4539_v63  ;;  %6311 = vmatpush.xpose.msk.msra.mxu3 %vm424_vm0, %v4485_v49  ;;  %v4275_v63 = vmul.f32 0.01, %v3706_v2  ;;  %v3682_v49 = vadd.f32 %v8982_v54, %v9353_v42  ;;  %v4256_v16 = vmul.f32 0.01, %v3649_v8  ;;  %v3787_v42 = vadd.f32 %v8982_v54, %v8830_v43  ;;  %v9366_v43 = vld [vmem:[#allocation65_spill] sm:$0xff] }
 0x65c   :  { %v4519_v53 = vsel %vm4007_vm1, %v3670_v52, %v4263_v15  ;;  %v3766_v52 = vadd.f32 %v8982_v54, %v9371_v28 }
 0x65d   :  { %v4531_v29 = vsel %vm4019_vm14, %v3706_v2, %v4275_v63  ;;  %v4267_v51 = vmul.f32 0.01, %v3682_v49  ;;  %vm4011_vm2 = vcmp.gt.f32.partialorder %v3682_v49, 0.0  ;;  %vm4009_vm14 = vcmp.gt.f32.partialorder %v3676_v39, 0.0 }
 0x65e   :  { %v3652_v63 = vadd.f32 %v8982_v54, %v9364_v13  ;;  %v4295_v15 = vmul.f32 0.01, %v3766_v52  ;;  %v9377_v13 = vld [vmem:[#allocation54_spill] sm:$0xff] }
 0x65f   :  { %6357 = vmatpush.xpose.msk.msra.mxu2 %vm424_vm0, %v4538_v57  ;;  %6312 = vmatpush.xpose.msk.msra.mxu3 %vm424_vm0, %v4484_v20  ;;  %v3700_v57 = vadd.f32 %v8982_v54, %v9352_v61  ;;  %v3679_v20 = vadd.f32 %v8982_v54, %v9355_v9  ;;  %v9367_v9 = vld [vmem:[#allocation64_spill] sm:$0xff] }
 0x661   :  { %v4273_v41 = vmul.f32 0.01, %v3700_v57  ;;  %vm4017_vm11 = vcmp.gt.f32.partialorder %v3700_v57, 0.0  ;;  %v4266_v56 = vmul.f32 0.01, %v3679_v20  ;;  %vm4010_vm13 = vcmp.gt.f32.partialorder %v3679_v20, 0.0 }
 0x663   :  { %6358 = vmatpush.xpose.msk.msra.mxu2 %vm424_vm0, %v4537_v30  ;;  %6313 = vmatpush.xpose.msk.msra.mxu3 %vm424_vm0, %v4483_v14  ;;  %v3697_v30 = vadd.f32 %v8982_v54, %v9354_v27  ;;  %v4523_v14 = vsel %vm4011_vm2, %v3682_v49, %v4267_v51  ;;  %v4522_v44 = vsel %vm4010_vm13, %v3679_v20, %v4266_v56  ;;  %vm4004_vm2 = vcmp.gt.f32.partialorder %v3661_v12, 0.0 }
 0x664   :  { %vm4002_vm13 = vcmp.gt.f32.partialorder %v3655_v37, 0.0  ;;  %v4302_v27 = vmul.f32 0.01, %v3787_v42 }
 0x665   :  { %v4272_v7 = vmul.f32 0.01, %v3697_v30  ;;  %vm4016_vm12 = vcmp.gt.f32.partialorder %v3697_v30, 0.0 }
 0x667   :  { %6359 = vmatpush.xpose.msk.msra.mxu2 %vm424_vm0, %v4536_v33  ;;  %6314 = vmatpush.xpose.msk.msra.mxu3 %vm424_vm0, %v4482_v62  ;;  %v4529_v33 = vsel %vm4017_vm11, %v3700_v57, %v4273_v41  ;;  %v4528_v6 = vsel %vm4016_vm12, %v3697_v30, %v4272_v7  ;;  %v4264_v62 = vmul.f32 0.01, %v3673_v3  ;;  %v3790_v57 = vadd.f32 %v8982_v54, %v8840_v48 }
 0x668   :  { %v3781_v48 = vadd.f32 %v8982_v54, %v9366_v43 }
 0x669   :  { %v4520_v10 = vsel %vm4008_vm15, %v3673_v3, %v4264_v62  ;;  %v4303_v49 = vmul.f32 0.01, %v3790_v57  ;;  %vm4000_vm15 = vcmp.gt.f32.partialorder %v3649_v8, 0.0  ;;  %vm4047_vm1 = vcmp.gt.f32.partialorder %v3790_v57, 0.0 }
 0x66a   :  { %v4512_v35 = vsel %vm4000_vm15, %v3649_v8, %v4256_v16  ;;  %v4300_v20 = vmul.f32 0.01, %v3781_v48  ;;  %v3769_v3 = vadd.f32 %v8982_v54, %v9370_v46  ;;  %v3745_v8 = vadd.f32 %v8982_v54, %v9378_v0 }
 0x66b   :  { %6360 = vmatpush.xpose.msk.msra.mxu2 %vm424_vm0, %v4535_v23  ;;  %6315 = vmatpush.xpose.msk.msra.mxu3 %vm424_vm0, %v4481_v22  ;;  %v4265_v23 = vmul.f32 0.01, %v3676_v39  ;;  %v4262_v22 = vmul.f32 0.01, %v3667_v5  ;;  %v4559_v30 = vsel %vm4047_vm1, %v3790_v57, %v4303_v49  ;;  %vm4039_vm1 = vcmp.gt.f32.partialorder %v3766_v52, 0.0 }
 0x66c   :  { %v4296_v62 = vmul.f32 0.01, %v3769_v3  ;;  %vm4040_vm15 = vcmp.gt.f32.partialorder %v3769_v3, 0.0  ;;  %v4288_v57 = vmul.f32 0.01, %v3745_v8 }
 0x66d   :  { %v4521_v47 = vsel %vm4009_vm14, %v3676_v39, %v4265_v23  ;;  %v4518_v2 = vsel %vm4006_vm7, %v3667_v5, %v4262_v22  ;;  %vm4001_vm14 = vcmp.gt.f32.partialorder %v3652_v63, 0.0  ;;  %vm4046_vm7 = vcmp.gt.f32.partialorder %v3787_v42, 0.0  ;;  %v9369_v39 = vld [vmem:[#allocation62_spill] sm:$0xff] }
 0x66e   :  { %v3772_v56 = vadd.f32 %v8982_v54, %v9369_v39  ;;  %v3763_v5 = vadd.f32 %v8982_v54, %v9372_v45 }
 0x66f   :  { %6361 = vmatpush.xpose.msk.msra.mxu2 %vm424_vm0, %v4534_v34  ;;  %6316 = vmatpush.xpose.msk.msra.mxu3 %vm424_vm0, %v4480_v50  ;;  %v9360_v34 = vld [vmem:[#allocation34_spill] sm:$0xff]  ;;  %v4260_v50 = vmul.f32 0.01, %v3661_v12 }
 0x670   :  { %v3664_v40 = vadd.f32 %v8982_v54, %v9360_v34  ;;  %v4297_v23 = vmul.f32 0.01, %v3772_v56  ;;  %v9373_v34 = vld [vmem:[#allocation58_spill] sm:$0xff]  ;;  %v4294_v22 = vmul.f32 0.01, %v3763_v5 }
 0x671   :  { %v4516_v25 = vsel %vm4004_vm2, %v3661_v12, %v4260_v50  ;;  %vm4044_vm2 = vcmp.gt.f32.partialorder %v3781_v48, 0.0  ;;  %v3757_v12 = vadd.f32 %v8982_v54, %v9374_v32 }
 0x672   :  { %6317 = vmatmul.msk.f32.vlgmr.msra.gmra.mxu3 %vm424_vm0, %v9026_v18  ;;  %v4261_v58 = vmul.f32 0.01, %v3664_v40  ;;  %vm4005_vm11 = vcmp.gt.f32.partialorder %v3664_v40, 0.0  ;;  %v4556_v26 = vsel %vm4044_vm2, %v3781_v48, %v4300_v20 }
 0x673   :  { %6362 = vmatpush.xpose.msk.msra.mxu2 %vm424_vm0, %v4533_v1  ;;  %6335 = vmatpush.xpose.msk.msrb.mxu3 %vm424_vm0, %v4527_v31  ;;  %v3658_v1 = vadd.f32 %v8982_v54, %v9362_v55  ;;  %v9375_v55 = vld [vmem:[#allocation56_spill] sm:$0xff]  ;;  %v4292_v50 = vmul.f32 0.01, %v3757_v12  ;;  %vm4036_vm2 = vcmp.gt.f32.partialorder %v3757_v12, 0.0 }
 0x674   :  { %v4517_v11 = vsel %vm4005_vm11, %v3664_v40, %v4261_v58  ;;  %v3760_v40 = vadd.f32 %v8982_v54, %v9373_v34 }
 0x675   :  { %v4259_v31 = vmul.f32 0.01, %v3658_v1  ;;  %vm4003_vm12 = vcmp.gt.f32.partialorder %v3658_v1, 0.0 }
 0x676   :  { %v4293_v58 = vmul.f32 0.01, %v3760_v40 }
 0x677   :  { %6363 = vmatpush.xpose.msk.msra.mxu2 %vm424_vm0, %v4532_v4  ;;  %6336 = vmatpush.xpose.msk.msrb.mxu3 %vm424_vm0, %v4526_v24  ;;  %v4258_v4 = vmul.f32 0.01, %v3655_v37  ;;  %v4515_v38 = vsel %vm4003_vm12, %v3658_v1, %v4259_v31  ;;  %v4257_v24 = vmul.f32 0.01, %v3652_v63  ;;  %v3754_v1 = vadd.f32 %v8982_v54, %v9375_v55 }
 0x679   :  { %v4514_v61 = vsel %vm4002_vm13, %v3655_v37, %v4258_v4  ;;  %v3751_v37 = vadd.f32 %v8982_v54, %v9376_v17  ;;  %v4291_v31 = vmul.f32 0.01, %v3754_v1 }
 0x67b   :  { %6364 = vmatpush.xpose.msk.msra.mxu2 %vm424_vm0, %v4531_v29  ;;  %6337 = vmatpush.xpose.msk.msrb.mxu3 %vm424_vm0, %v4525_v60  ;;  %v4513_v29 = vsel %vm4001_vm14, %v3652_v63, %v4257_v24  ;;  %v3784_v60 = vadd.f32 %v8982_v54, %v8820_v19  ;;  %v3778_v19 = vadd.f32 %v8982_v54, %v9367_v9  ;;  %vm4041_vm14 = vcmp.gt.f32.partialorder %v3772_v56, 0.0 }
 0x67c   :  { %v3748_v63 = vadd.f32 %v8982_v54, %v9377_v13  ;;  %v4290_v4 = vmul.f32 0.01, %v3751_v37 }
 0x67d   :  { %v4301_v41 = vmul.f32 0.01, %v3784_v60  ;;  %vm4045_vm11 = vcmp.gt.f32.partialorder %v3784_v60, 0.0  ;;  %vm4043_vm12 = vcmp.gt.f32.partialorder %v3778_v19, 0.0 }
 0x67e   :  { %v4289_v24 = vmul.f32 0.01, %v3748_v63 }
 0x67f   :  { %6365 = vmatpush.xpose.msk.msra.mxu2 %vm424_vm0, %v4530_v59  ;;  %6338 = vmatpush.xpose.msk.msrb.mxu3 %vm424_vm0, %v4524_v36  ;;  %v4558_v59 = vsel %vm4046_vm7, %v3787_v42, %v4302_v27  ;;  %v4557_v51 = vsel %vm4045_vm11, %v3784_v60, %v4301_v41  ;;  %v9368_v36 = vld [vmem:[#allocation63_spill] sm:$0xff]  ;;  %vm4038_vm7 = vcmp.gt.f32.partialorder %v3763_v5, 0.0  ;;  %vm4037_vm11 = vcmp.gt.f32.partialorder %v3760_v40, 0.0  ;;  %v5516_v42 = vpop.f32.mrf.mxu2 }
 0x680   :  { %v3775_v7 = vadd.f32 %v8982_v54, %v9368_v36 }
 0x682   :  { %vm4042_vm13 = vcmp.gt.f32.partialorder %v3775_v7, 0.0 }
 0x683   :  { %6366 = vmatpush.xpose.msk.msra.mxu2 %vm424_vm0, %v4529_v33  ;;  %6339 = vmatpush.xpose.msk.msrb.mxu3 %vm424_vm0, %v4523_v14  ;;  %v4299_v33 = vmul.f32 0.01, %v3778_v19  ;;  %v4298_v14 = vmul.f32 0.01, %v3775_v7 }
 0x687   :  { %6367 = vmatpush.xpose.msk.msra.mxu2 %vm424_vm0, %v4528_v6  ;;  %6340 = vmatpush.xpose.msk.msrb.mxu3 %vm424_vm0, %v4522_v44  ;;  %v4555_v6 = vsel %vm4043_vm12, %v3778_v19, %v4299_v33  ;;  %v4554_v44 = vsel %vm4042_vm13, %v3775_v7, %v4298_v14  ;;  %vm4035_vm12 = vcmp.gt.f32.partialorder %v3754_v1, 0.0  ;;  %vm4034_vm13 = vcmp.gt.f32.partialorder %v3751_v37, 0.0 }
 0x68a   :  { %6368 = vmatmul.msk.f32.vlgmr.msra.gmra.mxu2 %vm424_vm0, %v9026_v18 }
 0x68b   :  { %6341 = vmatpush.xpose.msk.msrb.mxu3 %vm424_vm0, %v4521_v47  ;;  %v4553_v47 = vsel %vm4041_vm14, %v3772_v56, %v4297_v23  ;;  %vm4033_vm14 = vcmp.gt.f32.partialorder %v3748_v63, 0.0 }
 0x68c   :  { %v4545_v16 = vsel %vm4033_vm14, %v3748_v63, %v4289_v24 }
 0x68f   :  { %6342 = vmatpush.xpose.msk.msrb.mxu3 %vm424_vm0, %v4520_v10  ;;  %v4552_v10 = vsel %vm4040_vm15, %v3769_v3, %v4296_v62  ;;  %vm4032_vm15 = vcmp.gt.f32.partialorder %v3745_v8, 0.0 }
 0x693   :  { %6343 = vmatpush.xpose.msk.msrb.mxu3 %vm424_vm0, %v4519_v53  ;;  %v4551_v53 = vsel %vm4039_vm1, %v3766_v52, %v4295_v15 }
 0x697   :  { %6344 = vmatpush.xpose.msk.msrb.mxu3 %vm424_vm0, %v4518_v2  ;;  %v4550_v2 = vsel %vm4038_vm7, %v3763_v5, %v4294_v22 }
 0x69b   :  { %6345 = vmatpush.xpose.msk.msrb.mxu3 %vm424_vm0, %v4517_v11  ;;  %v4549_v11 = vsel %vm4037_vm11, %v3760_v40, %v4293_v58 }
 0x69f   :  { %6346 = vmatpush.xpose.msk.msrb.mxu3 %vm424_vm0, %v4516_v25  ;;  %v4548_v25 = vsel %vm4036_vm2, %v3757_v12, %v4292_v50 }
 0x6a3   :  { %6347 = vmatpush.xpose.msk.msrb.mxu3 %vm424_vm0, %v4515_v38  ;;  %v4547_v38 = vsel %vm4035_vm12, %v3754_v1, %v4291_v31 }
 0x6a7   :  { %6348 = vmatpush.xpose.msk.msrb.mxu3 %vm424_vm0, %v4514_v61  ;;  %v4546_v61 = vsel %vm4034_vm13, %v3751_v37, %v4290_v4 }
 0x6ab   :  { %6349 = vmatpush.xpose.msk.msrb.mxu3 %vm424_vm0, %v4513_v29  ;;  %v4544_v29 = vsel %vm4032_vm15, %v3745_v8, %v4288_v57 }
 0x6af   :  { %6350 = vmatpush.xpose.msk.msrb.mxu3 %vm424_vm0, %v4512_v35  ;;  %v5556_v35 = vpop.f32.mrf.mxu2 }
 0x6b0   :  { %v5557_v43 = vadd.f32 %v5556_v35, %v8884_v21 }
 0x6b2   :  { %6351 = vmatmul.msk.f32.vlgmr.msrb.gmra.mxu3 %vm424_vm0, %v9026_v18 }
 0x6b3   :  { %6369 = vmatpush.xpose.msk.msra.mxu3 %vm424_vm0, %v4559_v30 }
 0x6b5   :  { %v5536_v49 = vpop.f32.mrf.mxu3 }
 0x6b6   :  { %v5537_v41 = vadd.f32 %v5536_v49, %v8884_v21 }
 0x6b7   :  { %6370 = vmatpush.xpose.msk.msra.mxu3 %vm424_vm0, %v4558_v59 }
 0x6b8   :  { %v5682_v36 = vrot.slane %v5537_v41, 7 }
 0x6bb   :  { %6371 = vmatpush.xpose.msk.msra.mxu3 %vm424_vm0, %v4557_v51  ;;  %v5517_v51 = vadd.f32 %v5516_v42, %v8884_v21 }
 0x6bd   :  { %v5703_v46 = vsel %vm5689_vm6, %v5517_v51, %v5682_v36 }
 0x6bf   :  { %6372 = vmatpush.xpose.msk.msra.mxu3 %vm424_vm0, %v4556_v26 }
 0x6c3   :  { %6373 = vmatpush.xpose.msk.msra.mxu3 %vm424_vm0, %v4555_v6 }
 0x6c7   :  { %6374 = vmatpush.xpose.msk.msra.mxu3 %vm424_vm0, %v4554_v44 }
 0x6cb   :  { %6375 = vmatpush.xpose.msk.msra.mxu3 %vm424_vm0, %v4553_v47 }
 0x6cd   :  { %v5596_v60 = vpop.f32.mrf.mxu2 }
 0x6ce   :  { %v5597_v59 = vadd.f32 %v5596_v60, %v8884_v21 }
 0x6cf   :  { %6376 = vmatpush.xpose.msk.msra.mxu3 %vm424_vm0, %v4552_v10 }
 0x6d0   :  { %v5685_v33 = vrot.slane %v5597_v59, 4 }
 0x6d3   :  { %6377 = vmatpush.xpose.msk.msra.mxu3 %vm424_vm0, %v4551_v53 }
 0x6d7   :  { %6378 = vmatpush.xpose.msk.msra.mxu3 %vm424_vm0, %v4550_v2 }
 0x6db   :  { %6379 = vmatpush.xpose.msk.msra.mxu3 %vm424_vm0, %v4549_v11 }
 0x6df   :  { %6380 = vmatpush.xpose.msk.msra.mxu3 %vm424_vm0, %v4548_v25 }
 0x6e3   :  { %6381 = vmatpush.xpose.msk.msra.mxu3 %vm424_vm0, %v4547_v38 }
 0x6e7   :  { %6382 = vmatpush.xpose.msk.msra.mxu3 %vm424_vm0, %v4546_v61 }
 0x6eb   :  { %6383 = vmatpush.xpose.msk.msra.mxu3 %vm424_vm0, %v4545_v16 }
 0x6ef   :  { %6384 = vmatpush.xpose.msk.msra.mxu3 %vm424_vm0, %v4544_v29 }
 0x6f2   :  { %6385 = vmatmul.msk.f32.vlgmr.msra.gmra.mxu3 %vm424_vm0, %v9026_v18  ;;  %v5683_v18 = vrot.slane %v5557_v43, 6 }
 0x6f5   :  { %v5576_v54 = vpop.f32.mrf.mxu3 }
 0x6f6   :  { %v5577_v48 = vadd.f32 %v5576_v54, %v8884_v21 }
 0x6f8   :  { %v5684_v20 = vrot.slane %v5577_v48, 5 }
 0x6fa   :  { %v5704_v14 = vsel %vm5691_vm8, %v5683_v18, %v5684_v20 }
 0x6fb   :  { %v5705_v44 = vsel %vm5693_vm9, %v5703_v46, %v5704_v14 }
 0x70d   :  { %v5636_v30 = vpop.f32.mrf.mxu2 }
 0x70e   :  { %v5637_v19 = vadd.f32 %v5636_v30, %v8884_v21 }
 0x710   :  { %v5687_v39 = vrot.slane %v5637_v19, 2 }
 0x735   :  { %v5616_v27 = vpop.f32.mrf.mxu3 }
 0x736   :  { %v5617_v9 = vadd.f32 %v5616_v27, %v8884_v21 }
 0x738   :  { %v5686_v26 = vrot.slane %v5617_v9, 3 }
 0x73a   :  { %v5706_v3 = vsel %vm5695_vm3, %v5685_v33, %v5686_v26 }
 0x775   :  { %v5656_v7 = vpop.f32.mrf.mxu3 }
 0x776   :  { %v5657_v56 = vadd.f32 %v5656_v7, %v8884_v21 }
 0x778   :  { %v5688_v6 = vrot.slane %v5657_v56, 1 }
 0x77a   :  { %v5707_v23 = vsel %vm5697_vm4, %v5687_v39, %v5688_v6 }
 0x77b   :  { %v5708_v28 = vsel %vm5699_vm5, %v5706_v3, %v5707_v23 }
 0x77c   :  { %v5709_v21 = vsel %vm5701_vm10, %v5705_v44, %v5708_v28 }
 0x77d   :  { %5713 = vst [vmem:[#allocation3 + $0x8] sm:$0xff] %v5709_v21 }
 0x77e   :  { %5724 = dma.vmem_to_hbm [thread:$0]  %s5720_s20, 256, %s5722_s23, [#allocation4]  }
 0x77f   :  { %6437 = dma.done.wait [#allocation4], 256  }
 0x780   :  { %6438 = vsyncadd [#allocation4], 4294967040 }
 0x781   :  { %5729 = vsyncpa [#allocation4], 1 }

</bundles_post_ra>
